<compile_context>
chip_gen: v5e
topology: v5e:2x2
jax: 0.10.0
libtpu: 0.0.40
codegen_flags: <defaults>
</compile_context>

<pallas_src>
import functools

import jax
import jax.numpy as jnp
from jax import lax
from jax.experimental import pallas as pl
from jax.experimental.pallas import tpu as pltpu


def _round_up(x, m):
    return (x + m - 1) // m * m


# The constant weight/bias/mask operands never change across the batch grid,
# so they could be single-buffered (pl.Buffered(1)) to reclaim VMEM.  At
# num_feat=32 / num_block=2 the saving is negligible, so it is off by default
# and becomes worthwhile only once row-strip tiling makes VMEM tight.
_SINGLE_BUFFER_CONSTS = False


def _vmem_limit_bytes(default=64 * 1024 * 1024):
    """Generation-aware VMEM budget: ~75% of physical capacity."""
    try:
        cap = getattr(pltpu.get_tpu_info(), "vmem_capacity_bytes", None)
        if cap:
            return int(min(cap * 3 // 4, 128 * 1024 * 1024))
    except Exception:
        pass
    return default


# ----------------------------------------------------------------------------
# Fused kernel
# ----------------------------------------------------------------------------
def _make_kernel(num_block, wp, npad, num_feat):
    def kernel(x_ref, mask_ref, wf_ref, bf_ref, wb_ref, bb_ref,
               wl_ref, bl_ref, wc_ref, bc_ref, o_ref, stack_ref):
        cdt = stack_ref.dtype                      # compute dtype (bf16 / f32)
        mask = mask_ref[...].astype(jnp.float32)   # (1, Np) interior mask
        x = x_ref[0].astype(cdt)                   # (Cin, Np)

        # ---- conv_first + ReLU: Cin is tiny, so nine K=Cin matmuls are still
        # below one MXU pass; keeps the stacked scratch tile-aligned. ----
        acc = None
        for dy in range(3):
            for dx in range(3):
                off = (dy - 1) * wp + (dx - 1)
                xs = x if off == 0 else pltpu.roll(x, shift=(-off) % npad, axis=1)
                t = jnp.dot(wf_ref[3 * dy + dx], xs,
                            preferred_element_type=jnp.float32)
                acc = t if acc is None else acc + t
        y = jnp.maximum(acc + bf_ref[...].astype(jnp.float32), 0.0) * mask

        # ---- stacked-K 3x3 conv helpers (Cin == num_feat) ----
        def stack_taps(a):
            # Row shifts first (+/-wp), then lane shifts (+/-1) of each; every
            # shifted copy is stored straight into its K-slice of the scratch
            # (no concatenate, no relayout copies).
            rows = (pltpu.roll(a, shift=wp, axis=1),           # x[p - wp]
                    a,                                         # x[p]
                    pltpu.roll(a, shift=npad - wp, axis=1))    # x[p + wp]
            for dy in range(3):
                r = rows[dy]
                for dx in range(3):
                    if dx == 0:
                        v = pltpu.roll(r, shift=1, axis=1)         # x[p - 1]
                    elif dx == 1:
                        v = r
                    else:
                        v = pltpu.roll(r, shift=npad - 1, axis=1)  # x[p + 1]
                    tap = 3 * dy + dx
                    stack_ref[tap * num_feat:(tap + 1) * num_feat, :] = v

        def conv3x3_stacked(a, w, b, apply_mask):
            # One (Cout, 9*Cin) x (9*Cin, Np) MXU matmul; bias/ReLU/mask in f32.
            stack_taps(a.astype(cdt))
            out = jnp.maximum(
                jnp.dot(w, stack_ref[...], preferred_element_type=jnp.float32)
                + b, 0.0)
            return out * mask if apply_mask else out

        # ---- backbone convs + ReLU (fori_loop: bounded live ranges, compact
        # body even for deep backbones) ----
        if num_block > 0:
            def body(l, a):
                return conv3x3_stacked(a, wb_ref[l],
                                       bb_ref[l].astype(jnp.float32), True)
            y = lax.fori_loop(0, num_block, body, y)

        # ---- conv_last + ReLU.  The interior mask is skipped ONLY because the
        # following conv is 1x1 and the wrapper crops the pad ring / lane tail;
        # re-enable apply_mask if another 3x3 layer is ever appended. ----
        y = conv3x3_stacked(y, wl_ref[...], bl_ref[...].astype(jnp.float32), False)

        # ---- conv_clip (1x1) + ReLU; the upscale==3 channel drop is folded
        # into the packed clip weights (only kept output rows are computed). ----
        y = jnp.maximum(
            jnp.dot(wc_ref[...], y.astype(cdt),
                    preferred_element_type=jnp.float32)
            + bc_ref[...].astype(jnp.float32), 0.0)
        o_ref[0] = y.astype(o_ref.dtype)
    return kernel


# ----------------------------------------------------------------------------
# pallas_call wrapper
# ----------------------------------------------------------------------------
def _edgesr_pallas(x_flat, mask, wf, bf, wb, bb, wl, bl, wc, bc, *, wp):
    B, cin, npad = x_flat.shape
    num_block, num_feat = wb.shape[0], wb.shape[1]
    cfin = wc.shape[0]

    def const_spec(arr):
        nd = arr.ndim
        kw = {"pipeline_mode": pl.Buffered(1)} if _SINGLE_BUFFER_CONSTS else {}
        return pl.BlockSpec(arr.shape, lambda b: (0,) * nd, **kw)

    grid_spec = pltpu.PrefetchScalarGridSpec(
        num_scalar_prefetch=0,
        grid=(B,),
        in_specs=[
            pl.BlockSpec((1, cin, npad), lambda b: (b, 0, 0)),
            const_spec(mask),
            const_spec(wf), const_spec(bf),
            const_spec(wb), const_spec(bb),
            const_spec(wl), const_spec(bl),
            const_spec(wc), const_spec(bc),
        ],
        out_specs=pl.BlockSpec((1, cfin, npad), lambda b: (b, 0, 0)),
        scratch_shapes=[pltpu.VMEM((9 * num_feat, npad), wb.dtype)],
    )
    return pl.pallas_call(
        _make_kernel(num_block, wp, npad, num_feat),
        out_shape=jax.ShapeDtypeStruct((B, cfin, npad), x_flat.dtype),
        grid_spec=grid_spec,
        compiler_params=pltpu.CompilerParams(
            dimension_semantics=("parallel",),
            vmem_limit_bytes=_vmem_limit_bytes()),
    )(x_flat, mask, wf, bf, wb, bb, wl, bl, wc, bc)


# ----------------------------------------------------------------------------
# Public forward: NCHW in -> NCHW (upscaled) out, matching PyTorch semantics
# ----------------------------------------------------------------------------
@functools.partial(jax.jit, static_argnames=("upscale",))
def edgesr_forward(x_nchw, packed, *, upscale):
    B, cin, H, W = x_nchw.shape
    hp, wp = H + 2, W + 2
    np_raw = hp * wp
    npad = _round_up(np_raw, 128)

    # zero-pad (first conv's padding=1), flatten spatial, lane-pad to 128.
    xp = jnp.pad(x_nchw, ((0, 0), (0, 0), (1, 1), (1, 1)))
    x_flat = jnp.pad(xp.reshape(B, cin, np_raw),
                     ((0, 0), (0, 0), (0, npad - np_raw)))

    # interior mask (1 at real pixels, 0 at pad ring / lane tail); constant
    # under jit (depends only on static shapes).
    m = jnp.pad(jnp.ones((H, W), jnp.float32), ((1, 1), (1, 1)))
    mask = jnp.pad(m.reshape(1, np_raw), ((0, 0), (0, npad - np_raw)))

    y_flat = _edgesr_pallas(
        x_flat, mask, packed["wf"], packed["bf"], packed["wb"], packed["bb"],
        packed["wl"], packed["bl"], packed["wc"], packed["bc"], wp=wp)

    cfin = y_flat.shape[1]
    r = upscale
    c_out = cfin // (r * r)
    y = y_flat[:, :, :np_raw].reshape(B, cfin, hp, wp)[:, :, 1:-1, 1:-1]
    # PixelShuffle (pure layout; left to XLA — see in-kernel-compaction TODO)
    y = (y.reshape(B, c_out, r, r, H, W)
          .transpose(0, 1, 4, 2, 5, 3)
          .reshape(B, c_out, H * r, W * r))
    return y


# ----------------------------------------------------------------------------
# Parameter construction (PyTorch OIHW layout) and one-time packing
# ----------------------------------------------------------------------------
def make_edgesr_params(key, num_in_ch, num_out_ch, upscale, num_block, num_feat):
    assert num_out_ch == num_in_ch
    c_clip = num_out_ch * upscale ** 2 + (1 if upscale == 3 else 0)
    keys = jax.random.split(key, 2 * (num_block + 3))

    def w(k, co, ci, ks):
        return jax.random.normal(k, (co, ci, ks, ks), jnp.float32) * 0.1

    def b(k, co):
        return jax.random.normal(k, (co,), jnp.float32) * 0.1

    return {
        "conv_first.w": w(keys[0], num_feat, num_in_ch, 3),
        "conv_first.b": b(keys[1], num_feat),
        "backbone.w": [w(keys[2 + 2 * i], num_feat, num_feat, 3)
                       for i in range(num_block)],
        "backbone.b": [b(keys[3 + 2 * i], num_feat) for i in range(num_block)],
        "conv_last.w": w(keys[2 + 2 * num_block], c_clip, num_feat, 3),
        "conv_last.b": b(keys[3 + 2 * num_block], c_clip),
        "conv_clip.w": w(keys[4 + 2 * num_block], c_clip, c_clip, 1),
        "conv_clip.b": b(keys[5 + 2 * num_block], c_clip),
    }


def pack_edgesr_params(params, upscale, num_out_ch, dtype=jnp.bfloat16):
    """Pre-pack weights for the kernel (hoisted out of the inference hot path).

    conv_first -> per-tap (9, Co, Ci); backbone/conv_last -> stacked-K
    (Co, 9*Ci) with column = tap*Ci + ci, tap = 3*kh + kw; biases -> (Co,1)
    f32; the upscale==3 'drop last channel' is folded into the clip weights.
    bf16 is the portable MXU-native fast path (f32 accumulation in-kernel);
    int8 weights would be MXU-native on v5e/v6e but NOT v7x (fp8 only), so
    bf16 stays the default cross-generation dtype.
    """
    def taps_first(w_oihw):                       # (Co,Ci,3,3) -> (9, Co, Ci)
        co, ci = w_oihw.shape[:2]
        return jnp.transpose(w_oihw, (2, 3, 0, 1)).reshape(9, co, ci).astype(dtype)

    def taps_k(w_oihw):                           # (Co,Ci,3,3) -> (Co, 9*Ci)
        co, ci = w_oihw.shape[:2]
        return jnp.transpose(w_oihw, (0, 2, 3, 1)).reshape(co, 9 * ci).astype(dtype)

    c_fin = num_out_ch * upscale ** 2
    return {
        "wf": taps_first(params["conv_first.w"]),
        "bf": params["conv_first.b"][:, None].astype(jnp.float32),
        "wb": jnp.stack([taps_k(w) for w in params["backbone.w"]]),
        "bb": jnp.stack([b[:, None] for b in params["backbone.b"]]
                        ).astype(jnp.float32),
        "wl": taps_k(params["conv_last.w"]),
        "bl": params["conv_last.b"][:, None].astype(jnp.float32),
        "wc": params["conv_clip.w"][:c_fin, :, 0, 0].astype(dtype),
        "bc": params["conv_clip.b"][:c_fin, None].astype(jnp.float32),
    }


# ----------------------------------------------------------------------------
# Pure-JAX reference (lax.conv) for correctness checking
# ----------------------------------------------------------------------------
def edgesr_reference(x, params, upscale):
    def conv(x, w, b, pad):
        dn = jax.lax.conv_dimension_numbers(x.shape, w.shape,
                                            ("NCHW", "OIHW", "NCHW"))
        y = jax.lax.conv_general_dilated(
            x, w, (1, 1), [(pad, pad), (pad, pad)], dimension_numbers=dn,
            precision=jax.lax.Precision.HIGHEST)
        return y + b[None, :, None, None]

    x = jax.nn.relu(conv(x, params["conv_first.w"], params["conv_first.b"], 1))
    for w, b in zip(params["backbone.w"], params["backbone.b"]):
        x = jax.nn.relu(conv(x, w, b, 1))
    x = jax.nn.relu(conv(x, params["conv_last.w"], params["conv_last.b"], 1))
    x = jax.nn.relu(conv(x, params["conv_clip.w"], params["conv_clip.b"], 0))
    if upscale == 3:
        x = x[:, :-1]
    B, C, H, W = x.shape
    r = upscale
    c = C // (r * r)
    return (x.reshape(B, c, r, r, H, W)
             .transpose(0, 1, 4, 2, 5, 3)
             .reshape(B, c, H * r, W * r))


if __name__ == "__main__":
    key = jax.random.PRNGKey(0)
    kx, kp = jax.random.split(key)

    B, num_in_ch, H, W = 2, 4, 16, 16
    num_feat, num_block = 32, 2
    x = jax.random.normal(kx, (B, num_in_ch, H, W), dtype=jnp.float32)

    # f32-packed runs use a tight tolerance (bounded by MXU f32 multi-pass
    # accumulation-order differences vs the HIGHEST-precision XLA conv — far
    # below any tap/indexing bug, which would be O(1e-1)); the bf16 fast path
    # uses a loose tolerance consistent with bf16 weight/activation rounding.
    configs = [
        (2, jnp.float32, 2e-3, 2e-3),   # exercises the non-drop conv_clip branch
        (3, jnp.float32, 2e-3, 2e-3),   # exercises the upscale==3 channel drop
        (3, jnp.bfloat16, 1e-1, 5e-2),  # bf16 fast path
    ]
    for upscale, wdtype, atol, rtol in configs:
        params = make_edgesr_params(kp, num_in_ch, num_in_ch, upscale,
                                    num_block, num_feat)
        packed = pack_edgesr_params(params, upscale, num_in_ch, dtype=wdtype)

        y = jax.block_until_ready(edgesr_forward(x, packed, upscale=upscale))
        y_ref = jax.block_until_ready(edgesr_reference(x, params, upscale))

        assert y.shape == (B, num_in_ch, H * upscale, W * upscale), y.shape
        err = float(jnp.max(jnp.abs(y - y_ref)))
        assert jnp.allclose(y, y_ref, atol=atol, rtol=rtol), (
            "max abs err", err, "upscale", upscale, "dtype", str(wdtype))

    print("KERNEL_OK")
</pallas_src>

<mosaic_0001>
module attributes {stable_mosaic.version = 11 : i64} {
  func.func @kernel(%arg0: i32, %arg1: memref<1x4x384xf32, #tpu.memory_space<vmem>>, %arg2: memref<1x384xf32, #tpu.memory_space<vmem>>, %arg3: memref<9x32x4xf32, #tpu.memory_space<vmem>>, %arg4: memref<32x1xf32, #tpu.memory_space<vmem>>, %arg5: memref<2x32x288xf32, #tpu.memory_space<vmem>>, %arg6: memref<2x32x1xf32, #tpu.memory_space<vmem>>, %arg7: memref<16x288xf32, #tpu.memory_space<vmem>>, %arg8: memref<16x1xf32, #tpu.memory_space<vmem>>, %arg9: memref<16x16xf32, #tpu.memory_space<vmem>>, %arg10: memref<16x1xf32, #tpu.memory_space<vmem>>, %arg11: memref<1x16x384xf32, #tpu.memory_space<vmem>>, %arg12: memref<288x384xf32, #tpu.memory_space<vmem>>) attributes {dimension_semantics = [#tpu.dimension_semantics<parallel>], iteration_bounds = array<i64: 2>, scalar_prefetch = 0 : i64, scratch_operands = 1 : i64, tpu.core_type = #tpu.core_type<tc>, window_params = [{transform_indices = @transform_0, window_bounds = array<i64: 1, 4, 384>}, {pipeline_mode = #tpu.pipeline_mode<synchronous>, transform_indices = @transform_1, window_bounds = array<i64: 1, 384>}, {pipeline_mode = #tpu.pipeline_mode<synchronous>, transform_indices = @transform_2, window_bounds = array<i64: 9, 32, 4>}, {pipeline_mode = #tpu.pipeline_mode<synchronous>, transform_indices = @transform_3, window_bounds = array<i64: 32, 1>}, {pipeline_mode = #tpu.pipeline_mode<synchronous>, transform_indices = @transform_4, window_bounds = array<i64: 2, 32, 288>}, {pipeline_mode = #tpu.pipeline_mode<synchronous>, transform_indices = @transform_5, window_bounds = array<i64: 2, 32, 1>}, {pipeline_mode = #tpu.pipeline_mode<synchronous>, transform_indices = @transform_6, window_bounds = array<i64: 16, 288>}, {pipeline_mode = #tpu.pipeline_mode<synchronous>, transform_indices = @transform_7, window_bounds = array<i64: 16, 1>}, {pipeline_mode = #tpu.pipeline_mode<synchronous>, transform_indices = @transform_8, window_bounds = array<i64: 16, 16>}, {pipeline_mode = #tpu.pipeline_mode<synchronous>, transform_indices = @transform_9, window_bounds = array<i64: 16, 1>}, {transform_indices = @transform_10, window_bounds = array<i64: 1, 16, 384>}]} {
    %c0 = arith.constant 0 : index
    %c0_0 = arith.constant 0 : index
    %0 = vector.load %arg2[%c0, %c0_0] : memref<1x384xf32, #tpu.memory_space<vmem>>, vector<1x384xf32>
    %c0_1 = arith.constant 0 : index
    %c0_2 = arith.constant 0 : index
    %c0_3 = arith.constant 0 : index
    %1 = vector.load %arg1[%c0_1, %c0_2, %c0_3] : memref<1x4x384xf32, #tpu.memory_space<vmem>>, vector<1x4x384xf32>
    %2 = vector.shape_cast %1 : vector<1x4x384xf32> to vector<4x384xf32>
    %c19_i32 = arith.constant 19 : i32
    %3 = tpu.dynamic_rotate %2 by %c19_i32 dim 1 : vector<4x384xf32>, i32 -> vector<4x384xf32>
    %c0_4 = arith.constant 0 : index
    %c0_5 = arith.constant 0 : index
    %c0_6 = arith.constant 0 : index
    %4 = vector.load %arg3[%c0_4, %c0_5, %c0_6] : memref<9x32x4xf32, #tpu.memory_space<vmem>>, vector<1x32x4xf32>
    %5 = vector.shape_cast %4 : vector<1x32x4xf32> to vector<32x4xf32>
    %cst = arith.constant dense<0.000000e+00> : vector<32x384xf32>
    %6 = tpu.matmul %5, %3, %cst {dimension_numbers = #tpu.dot_dimension_numbers<[1], [0], [0], [1], [0, 0, 1, 1], [], []>} : vector<32x4xf32>, vector<4x384xf32>, vector<32x384xf32> -> vector<32x384xf32>
    %c18_i32 = arith.constant 18 : i32
    %7 = tpu.dynamic_rotate %2 by %c18_i32 dim 1 : vector<4x384xf32>, i32 -> vector<4x384xf32>
    %c1 = arith.constant 1 : index
    %c0_7 = arith.constant 0 : index
    %c0_8 = arith.constant 0 : index
    %8 = vector.load %arg3[%c1, %c0_7, %c0_8] : memref<9x32x4xf32, #tpu.memory_space<vmem>>, vector<1x32x4xf32>
    %9 = vector.shape_cast %8 : vector<1x32x4xf32> to vector<32x4xf32>
    %cst_9 = arith.constant dense<0.000000e+00> : vector<32x384xf32>
    %10 = tpu.matmul %9, %7, %cst_9 {dimension_numbers = #tpu.dot_dimension_numbers<[1], [0], [0], [1], [0, 0, 1, 1], [], []>} : vector<32x4xf32>, vector<4x384xf32>, vector<32x384xf32> -> vector<32x384xf32>
    %11 = arith.addf %6, %10 : vector<32x384xf32>
    %c17_i32 = arith.constant 17 : i32
    %12 = tpu.dynamic_rotate %2 by %c17_i32 dim 1 : vector<4x384xf32>, i32 -> vector<4x384xf32>
    %c2 = arith.constant 2 : index
    %c0_10 = arith.constant 0 : index
    %c0_11 = arith.constant 0 : index
    %13 = vector.load %arg3[%c2, %c0_10, %c0_11] : memref<9x32x4xf32, #tpu.memory_space<vmem>>, vector<1x32x4xf32>
    %14 = vector.shape_cast %13 : vector<1x32x4xf32> to vector<32x4xf32>
    %cst_12 = arith.constant dense<0.000000e+00> : vector<32x384xf32>
    %15 = tpu.matmul %14, %12, %cst_12 {dimension_numbers = #tpu.dot_dimension_numbers<[1], [0], [0], [1], [0, 0, 1, 1], [], []>} : vector<32x4xf32>, vector<4x384xf32>, vector<32x384xf32> -> vector<32x384xf32>
    %16 = arith.addf %11, %15 : vector<32x384xf32>
    %c1_i32 = arith.constant 1 : i32
    %17 = tpu.dynamic_rotate %2 by %c1_i32 dim 1 : vector<4x384xf32>, i32 -> vector<4x384xf32>
    %c3 = arith.constant 3 : index
    %c0_13 = arith.constant 0 : index
    %c0_14 = arith.constant 0 : index
    %18 = vector.load %arg3[%c3, %c0_13, %c0_14] : memref<9x32x4xf32, #tpu.memory_space<vmem>>, vector<1x32x4xf32>
    %19 = vector.shape_cast %18 : vector<1x32x4xf32> to vector<32x4xf32>
    %cst_15 = arith.constant dense<0.000000e+00> : vector<32x384xf32>
    %20 = tpu.matmul %19, %17, %cst_15 {dimension_numbers = #tpu.dot_dimension_numbers<[1], [0], [0], [1], [0, 0, 1, 1], [], []>} : vector<32x4xf32>, vector<4x384xf32>, vector<32x384xf32> -> vector<32x384xf32>
    %21 = arith.addf %16, %20 : vector<32x384xf32>
    %c4 = arith.constant 4 : index
    %c0_16 = arith.constant 0 : index
    %c0_17 = arith.constant 0 : index
    %22 = vector.load %arg3[%c4, %c0_16, %c0_17] : memref<9x32x4xf32, #tpu.memory_space<vmem>>, vector<1x32x4xf32>
    %23 = vector.shape_cast %22 : vector<1x32x4xf32> to vector<32x4xf32>
    %cst_18 = arith.constant dense<0.000000e+00> : vector<32x384xf32>
    %24 = tpu.matmul %23, %2, %cst_18 {dimension_numbers = #tpu.dot_dimension_numbers<[1], [0], [0], [1], [0, 0, 1, 1], [], []>} : vector<32x4xf32>, vector<4x384xf32>, vector<32x384xf32> -> vector<32x384xf32>
    %25 = arith.addf %21, %24 : vector<32x384xf32>
    %c383_i32 = arith.constant 383 : i32
    %26 = tpu.dynamic_rotate %2 by %c383_i32 dim 1 : vector<4x384xf32>, i32 -> vector<4x384xf32>
    %c5 = arith.constant 5 : index
    %c0_19 = arith.constant 0 : index
    %c0_20 = arith.constant 0 : index
    %27 = vector.load %arg3[%c5, %c0_19, %c0_20] : memref<9x32x4xf32, #tpu.memory_space<vmem>>, vector<1x32x4xf32>
    %28 = vector.shape_cast %27 : vector<1x32x4xf32> to vector<32x4xf32>
    %cst_21 = arith.constant dense<0.000000e+00> : vector<32x384xf32>
    %29 = tpu.matmul %28, %26, %cst_21 {dimension_numbers = #tpu.dot_dimension_numbers<[1], [0], [0], [1], [0, 0, 1, 1], [], []>} : vector<32x4xf32>, vector<4x384xf32>, vector<32x384xf32> -> vector<32x384xf32>
    %30 = arith.addf %25, %29 : vector<32x384xf32>
    %c367_i32 = arith.constant 367 : i32
    %31 = tpu.dynamic_rotate %2 by %c367_i32 dim 1 : vector<4x384xf32>, i32 -> vector<4x384xf32>
    %c6 = arith.constant 6 : index
    %c0_22 = arith.constant 0 : index
    %c0_23 = arith.constant 0 : index
    %32 = vector.load %arg3[%c6, %c0_22, %c0_23] : memref<9x32x4xf32, #tpu.memory_space<vmem>>, vector<1x32x4xf32>
    %33 = vector.shape_cast %32 : vector<1x32x4xf32> to vector<32x4xf32>
    %cst_24 = arith.constant dense<0.000000e+00> : vector<32x384xf32>
    %34 = tpu.matmul %33, %31, %cst_24 {dimension_numbers = #tpu.dot_dimension_numbers<[1], [0], [0], [1], [0, 0, 1, 1], [], []>} : vector<32x4xf32>, vector<4x384xf32>, vector<32x384xf32> -> vector<32x384xf32>
    %35 = arith.addf %30, %34 : vector<32x384xf32>
    %c366_i32 = arith.constant 366 : i32
    %36 = tpu.dynamic_rotate %2 by %c366_i32 dim 1 : vector<4x384xf32>, i32 -> vector<4x384xf32>
    %c7 = arith.constant 7 : index
    %c0_25 = arith.constant 0 : index
    %c0_26 = arith.constant 0 : index
    %37 = vector.load %arg3[%c7, %c0_25, %c0_26] : memref<9x32x4xf32, #tpu.memory_space<vmem>>, vector<1x32x4xf32>
    %38 = vector.shape_cast %37 : vector<1x32x4xf32> to vector<32x4xf32>
    %cst_27 = arith.constant dense<0.000000e+00> : vector<32x384xf32>
    %39 = tpu.matmul %38, %36, %cst_27 {dimension_numbers = #tpu.dot_dimension_numbers<[1], [0], [0], [1], [0, 0, 1, 1], [], []>} : vector<32x4xf32>, vector<4x384xf32>, vector<32x384xf32> -> vector<32x384xf32>
    %40 = arith.addf %35, %39 : vector<32x384xf32>
    %c365_i32 = arith.constant 365 : i32
    %41 = tpu.dynamic_rotate %2 by %c365_i32 dim 1 : vector<4x384xf32>, i32 -> vector<4x384xf32>
    %c8 = arith.constant 8 : index
    %c0_28 = arith.constant 0 : index
    %c0_29 = arith.constant 0 : index
    %42 = vector.load %arg3[%c8, %c0_28, %c0_29] : memref<9x32x4xf32, #tpu.memory_space<vmem>>, vector<1x32x4xf32>
    %43 = vector.shape_cast %42 : vector<1x32x4xf32> to vector<32x4xf32>
    %cst_30 = arith.constant dense<0.000000e+00> : vector<32x384xf32>
    %44 = tpu.matmul %43, %41, %cst_30 {dimension_numbers = #tpu.dot_dimension_numbers<[1], [0], [0], [1], [0, 0, 1, 1], [], []>} : vector<32x4xf32>, vector<4x384xf32>, vector<32x384xf32> -> vector<32x384xf32>
    %45 = arith.addf %40, %44 : vector<32x384xf32>
    %c0_31 = arith.constant 0 : index
    %c0_32 = arith.constant 0 : index
    %46 = vector.load %arg4[%c0_31, %c0_32] : memref<32x1xf32, #tpu.memory_space<vmem>>, vector<32x1xf32>
    %47 = vector.broadcast %46 : vector<32x1xf32> to vector<32x384xf32>
    %48 = arith.addf %45, %47 : vector<32x384xf32>
    %cst_33 = arith.constant 0.000000e+00 : f32
    %49 = vector.broadcast %cst_33 : f32 to vector<32x384xf32>
    %50 = arith.maximumf %48, %49 : vector<32x384xf32>
    %51 = vector.broadcast %0 : vector<1x384xf32> to vector<32x384xf32>
    %52 = arith.mulf %50, %51 : vector<32x384xf32>
    %c0_i32 = arith.constant 0 : i32
    %c2_i32 = arith.constant 2 : i32
    %53 = arith.addi %c0_i32, %c2_i32 : i32
    %c1_i32_34 = arith.constant 1 : i32
    %54 = scf.for %arg13 = %c0_i32 to %53 step %c1_i32_34 iter_args(%arg14 = %52) -> (vector<32x384xf32>)  : i32 {
      %90 = arith.index_cast %arg13 : i32 to index
      %c0_71 = arith.constant 0 : index
      %c0_72 = arith.constant 0 : index
      %91 = vector.load %arg5[%90, %c0_71, %c0_72] : memref<2x32x288xf32, #tpu.memory_space<vmem>>, vector<1x32x288xf32>
      %92 = vector.shape_cast %91 : vector<1x32x288xf32> to vector<32x288xf32>
      %93 = arith.index_cast %arg13 : i32 to index
      %c0_73 = arith.constant 0 : index
      %c0_74 = arith.constant 0 : index
      %94 = vector.load %arg6[%93, %c0_73, %c0_74] : memref<2x32x1xf32, #tpu.memory_space<vmem>>, vector<1x32x1xf32>
      %95 = vector.shape_cast %94 : vector<1x32x1xf32> to vector<32x1xf32>
      %c18_i32_75 = arith.constant 18 : i32
      %96 = tpu.dynamic_rotate %arg14 by %c18_i32_75 dim 1 : vector<32x384xf32>, i32 -> vector<32x384xf32>
      %c366_i32_76 = arith.constant 366 : i32
      %97 = tpu.dynamic_rotate %arg14 by %c366_i32_76 dim 1 : vector<32x384xf32>, i32 -> vector<32x384xf32>
      %c1_i32_77 = arith.constant 1 : i32
      %98 = tpu.dynamic_rotate %96 by %c1_i32_77 dim 1 : vector<32x384xf32>, i32 -> vector<32x384xf32>
      %c0_78 = arith.constant 0 : index
      %c0_79 = arith.constant 0 : index
      %99 = vector.load %arg12[%c0_78, %c0_79] : memref<288x384xf32, #tpu.memory_space<vmem>>, vector<32x384xf32>
      tpu.vector_store %arg12[%c0_78, %c0_79], %98 {strides = array<i32>} : memref<288x384xf32, #tpu.memory_space<vmem>>, vector<32x384xf32>,
      %c32_80 = arith.constant 32 : index
      %c0_81 = arith.constant 0 : index
      %100 = vector.load %arg12[%c32_80, %c0_81] : memref<288x384xf32, #tpu.memory_space<vmem>>, vector<32x384xf32>
      tpu.vector_store %arg12[%c32_80, %c0_81], %96 {strides = array<i32>} : memref<288x384xf32, #tpu.memory_space<vmem>>, vector<32x384xf32>,
      %c383_i32_82 = arith.constant 383 : i32
      %101 = tpu.dynamic_rotate %96 by %c383_i32_82 dim 1 : vector<32x384xf32>, i32 -> vector<32x384xf32>
      %c64_83 = arith.constant 64 : index
      %c0_84 = arith.constant 0 : index
      %102 = vector.load %arg12[%c64_83, %c0_84] : memref<288x384xf32, #tpu.memory_space<vmem>>, vector<32x384xf32>
      tpu.vector_store %arg12[%c64_83, %c0_84], %101 {strides = array<i32>} : memref<288x384xf32, #tpu.memory_space<vmem>>, vector<32x384xf32>,
      %c1_i32_85 = arith.constant 1 : i32
      %103 = tpu.dynamic_rotate %arg14 by %c1_i32_85 dim 1 : vector<32x384xf32>, i32 -> vector<32x384xf32>
      %c96_86 = arith.constant 96 : index
      %c0_87 = arith.constant 0 : index
      %104 = vector.load %arg12[%c96_86, %c0_87] : memref<288x384xf32, #tpu.memory_space<vmem>>, vector<32x384xf32>
      tpu.vector_store %arg12[%c96_86, %c0_87], %103 {strides = array<i32>} : memref<288x384xf32, #tpu.memory_space<vmem>>, vector<32x384xf32>,
      %c128_88 = arith.constant 128 : index
      %c0_89 = arith.constant 0 : index
      %105 = vector.load %arg12[%c128_88, %c0_89] : memref<288x384xf32, #tpu.memory_space<vmem>>, vector<32x384xf32>
      tpu.vector_store %arg12[%c128_88, %c0_89], %arg14 {strides = array<i32>} : memref<288x384xf32, #tpu.memory_space<vmem>>, vector<32x384xf32>,
      %c383_i32_90 = arith.constant 383 : i32
      %106 = tpu.dynamic_rotate %arg14 by %c383_i32_90 dim 1 : vector<32x384xf32>, i32 -> vector<32x384xf32>
      %c160_91 = arith.constant 160 : index
      %c0_92 = arith.constant 0 : index
      %107 = vector.load %arg12[%c160_91, %c0_92] : memref<288x384xf32, #tpu.memory_space<vmem>>, vector<32x384xf32>
      tpu.vector_store %arg12[%c160_91, %c0_92], %106 {strides = array<i32>} : memref<288x384xf32, #tpu.memory_space<vmem>>, vector<32x384xf32>,
      %c1_i32_93 = arith.constant 1 : i32
      %108 = tpu.dynamic_rotate %97 by %c1_i32_93 dim 1 : vector<32x384xf32>, i32 -> vector<32x384xf32>
      %c192_94 = arith.constant 192 : index
      %c0_95 = arith.constant 0 : index
      %109 = vector.load %arg12[%c192_94, %c0_95] : memref<288x384xf32, #tpu.memory_space<vmem>>, vector<32x384xf32>
      tpu.vector_store %arg12[%c192_94, %c0_95], %108 {strides = array<i32>} : memref<288x384xf32, #tpu.memory_space<vmem>>, vector<32x384xf32>,
      %c224_96 = arith.constant 224 : index
      %c0_97 = arith.constant 0 : index
      %110 = vector.load %arg12[%c224_96, %c0_97] : memref<288x384xf32, #tpu.memory_space<vmem>>, vector<32x384xf32>
      tpu.vector_store %arg12[%c224_96, %c0_97], %97 {strides = array<i32>} : memref<288x384xf32, #tpu.memory_space<vmem>>, vector<32x384xf32>,
      %c383_i32_98 = arith.constant 383 : i32
      %111 = tpu.dynamic_rotate %97 by %c383_i32_98 dim 1 : vector<32x384xf32>, i32 -> vector<32x384xf32>
      %c256_99 = arith.constant 256 : index
      %c0_100 = arith.constant 0 : index
      %112 = vector.load %arg12[%c256_99, %c0_100] : memref<288x384xf32, #tpu.memory_space<vmem>>, vector<32x384xf32>
      tpu.vector_store %arg12[%c256_99, %c0_100], %111 {strides = array<i32>} : memref<288x384xf32, #tpu.memory_space<vmem>>, vector<32x384xf32>,
      %c0_101 = arith.constant 0 : index
      %c0_102 = arith.constant 0 : index
      %113 = vector.load %arg12[%c0_101, %c0_102] : memref<288x384xf32, #tpu.memory_space<vmem>>, vector<288x384xf32>
      %cst_103 = arith.constant dense<0.000000e+00> : vector<32x384xf32>
      %114 = tpu.matmul %92, %113, %cst_103 {dimension_numbers = #tpu.dot_dimension_numbers<[1], [0], [0], [1], [0, 0, 1, 1], [], []>} : vector<32x288xf32>, vector<288x384xf32>, vector<32x384xf32> -> vector<32x384xf32>
      %115 = vector.broadcast %95 : vector<32x1xf32> to vector<32x384xf32>
      %116 = arith.addf %114, %115 : vector<32x384xf32>
      %cst_104 = arith.constant 0.000000e+00 : f32
      %117 = vector.broadcast %cst_104 : f32 to vector<32x384xf32>
      %118 = arith.maximumf %116, %117 : vector<32x384xf32>
      %119 = vector.broadcast %0 : vector<1x384xf32> to vector<32x384xf32>
      %120 = arith.mulf %118, %119 : vector<32x384xf32>
      scf.yield %120 : vector<32x384xf32>
    }
    %c2_i32_35 = arith.constant 2 : i32
    %c0_36 = arith.constant 0 : index
    %c0_37 = arith.constant 0 : index
    %55 = vector.load %arg7[%c0_36, %c0_37] : memref<16x288xf32, #tpu.memory_space<vmem>>, vector<16x288xf32>
    %c0_38 = arith.constant 0 : index
    %c0_39 = arith.constant 0 : index
    %56 = vector.load %arg8[%c0_38, %c0_39] : memref<16x1xf32, #tpu.memory_space<vmem>>, vector<16x1xf32>
    %c18_i32_40 = arith.constant 18 : i32
    %57 = tpu.dynamic_rotate %54 by %c18_i32_40 dim 1 : vector<32x384xf32>, i32 -> vector<32x384xf32>
    %c366_i32_41 = arith.constant 366 : i32
    %58 = tpu.dynamic_rotate %54 by %c366_i32_41 dim 1 : vector<32x384xf32>, i32 -> vector<32x384xf32>
    %c1_i32_42 = arith.constant 1 : i32
    %59 = tpu.dynamic_rotate %57 by %c1_i32_42 dim 1 : vector<32x384xf32>, i32 -> vector<32x384xf32>
    %c0_43 = arith.constant 0 : index
    %c0_44 = arith.constant 0 : index
    %60 = vector.load %arg12[%c0_43, %c0_44] : memref<288x384xf32, #tpu.memory_space<vmem>>, vector<32x384xf32>
    tpu.vector_store %arg12[%c0_43, %c0_44], %59 {strides = array<i32>} : memref<288x384xf32, #tpu.memory_space<vmem>>, vector<32x384xf32>,
    %c32 = arith.constant 32 : index
    %c0_45 = arith.constant 0 : index
    %61 = vector.load %arg12[%c32, %c0_45] : memref<288x384xf32, #tpu.memory_space<vmem>>, vector<32x384xf32>
    tpu.vector_store %arg12[%c32, %c0_45], %57 {strides = array<i32>} : memref<288x384xf32, #tpu.memory_space<vmem>>, vector<32x384xf32>,
    %c383_i32_46 = arith.constant 383 : i32
    %62 = tpu.dynamic_rotate %57 by %c383_i32_46 dim 1 : vector<32x384xf32>, i32 -> vector<32x384xf32>
    %c64 = arith.constant 64 : index
    %c0_47 = arith.constant 0 : index
    %63 = vector.load %arg12[%c64, %c0_47] : memref<288x384xf32, #tpu.memory_space<vmem>>, vector<32x384xf32>
    tpu.vector_store %arg12[%c64, %c0_47], %62 {strides = array<i32>} : memref<288x384xf32, #tpu.memory_space<vmem>>, vector<32x384xf32>,
    %c1_i32_48 = arith.constant 1 : i32
    %64 = tpu.dynamic_rotate %54 by %c1_i32_48 dim 1 : vector<32x384xf32>, i32 -> vector<32x384xf32>
    %c96 = arith.constant 96 : index
    %c0_49 = arith.constant 0 : index
    %65 = vector.load %arg12[%c96, %c0_49] : memref<288x384xf32, #tpu.memory_space<vmem>>, vector<32x384xf32>
    tpu.vector_store %arg12[%c96, %c0_49], %64 {strides = array<i32>} : memref<288x384xf32, #tpu.memory_space<vmem>>, vector<32x384xf32>,
    %c128 = arith.constant 128 : index
    %c0_50 = arith.constant 0 : index
    %66 = vector.load %arg12[%c128, %c0_50] : memref<288x384xf32, #tpu.memory_space<vmem>>, vector<32x384xf32>
    tpu.vector_store %arg12[%c128, %c0_50], %54 {strides = array<i32>} : memref<288x384xf32, #tpu.memory_space<vmem>>, vector<32x384xf32>,
    %c383_i32_51 = arith.constant 383 : i32
    %67 = tpu.dynamic_rotate %54 by %c383_i32_51 dim 1 : vector<32x384xf32>, i32 -> vector<32x384xf32>
    %c160 = arith.constant 160 : index
    %c0_52 = arith.constant 0 : index
    %68 = vector.load %arg12[%c160, %c0_52] : memref<288x384xf32, #tpu.memory_space<vmem>>, vector<32x384xf32>
    tpu.vector_store %arg12[%c160, %c0_52], %67 {strides = array<i32>} : memref<288x384xf32, #tpu.memory_space<vmem>>, vector<32x384xf32>,
    %c1_i32_53 = arith.constant 1 : i32
    %69 = tpu.dynamic_rotate %58 by %c1_i32_53 dim 1 : vector<32x384xf32>, i32 -> vector<32x384xf32>
    %c192 = arith.constant 192 : index
    %c0_54 = arith.constant 0 : index
    %70 = vector.load %arg12[%c192, %c0_54] : memref<288x384xf32, #tpu.memory_space<vmem>>, vector<32x384xf32>
    tpu.vector_store %arg12[%c192, %c0_54], %69 {strides = array<i32>} : memref<288x384xf32, #tpu.memory_space<vmem>>, vector<32x384xf32>,
    %c224 = arith.constant 224 : index
    %c0_55 = arith.constant 0 : index
    %71 = vector.load %arg12[%c224, %c0_55] : memref<288x384xf32, #tpu.memory_space<vmem>>, vector<32x384xf32>
    tpu.vector_store %arg12[%c224, %c0_55], %58 {strides = array<i32>} : memref<288x384xf32, #tpu.memory_space<vmem>>, vector<32x384xf32>,
    %c383_i32_56 = arith.constant 383 : i32
    %72 = tpu.dynamic_rotate %58 by %c383_i32_56 dim 1 : vector<32x384xf32>, i32 -> vector<32x384xf32>
    %c256 = arith.constant 256 : index
    %c0_57 = arith.constant 0 : index
    %73 = vector.load %arg12[%c256, %c0_57] : memref<288x384xf32, #tpu.memory_space<vmem>>, vector<32x384xf32>
    tpu.vector_store %arg12[%c256, %c0_57], %72 {strides = array<i32>} : memref<288x384xf32, #tpu.memory_space<vmem>>, vector<32x384xf32>,
    %c0_58 = arith.constant 0 : index
    %c0_59 = arith.constant 0 : index
    %74 = vector.load %arg12[%c0_58, %c0_59] : memref<288x384xf32, #tpu.memory_space<vmem>>, vector<288x384xf32>
    %cst_60 = arith.constant dense<0.000000e+00> : vector<16x384xf32>
    %75 = tpu.matmul %55, %74, %cst_60 {dimension_numbers = #tpu.dot_dimension_numbers<[1], [0], [0], [1], [0, 0, 1, 1], [], []>} : vector<16x288xf32>, vector<288x384xf32>, vector<16x384xf32> -> vector<16x384xf32>
    %76 = vector.broadcast %56 : vector<16x1xf32> to vector<16x384xf32>
    %77 = arith.addf %75, %76 : vector<16x384xf32>
    %cst_61 = arith.constant 0.000000e+00 : f32
    %78 = vector.broadcast %cst_61 : f32 to vector<16x384xf32>
    %79 = arith.maximumf %77, %78 : vector<16x384xf32>
    %c0_62 = arith.constant 0 : index
    %c0_63 = arith.constant 0 : index
    %80 = vector.load %arg9[%c0_62, %c0_63] : memref<16x16xf32, #tpu.memory_space<vmem>>, vector<16x16xf32>
    %cst_64 = arith.constant dense<0.000000e+00> : vector<16x384xf32>
    %81 = tpu.matmul %80, %79, %cst_64 {dimension_numbers = #tpu.dot_dimension_numbers<[1], [0], [0], [1], [0, 0, 1, 1], [], []>} : vector<16x16xf32>, vector<16x384xf32>, vector<16x384xf32> -> vector<16x384xf32>
    %c0_65 = arith.constant 0 : index
    %c0_66 = arith.constant 0 : index
    %82 = vector.load %arg10[%c0_65, %c0_66] : memref<16x1xf32, #tpu.memory_space<vmem>>, vector<16x1xf32>
    %83 = vector.broadcast %82 : vector<16x1xf32> to vector<16x384xf32>
    %84 = arith.addf %81, %83 : vector<16x384xf32>
    %cst_67 = arith.constant 0.000000e+00 : f32
    %85 = vector.broadcast %cst_67 : f32 to vector<16x384xf32>
    %86 = arith.maximumf %84, %85 : vector<16x384xf32>
    %c0_68 = arith.constant 0 : index
    %c0_69 = arith.constant 0 : index
    %c0_70 = arith.constant 0 : index
    %87 = vector.load %arg11[%c0_68, %c0_69, %c0_70] : memref<1x16x384xf32, #tpu.memory_space<vmem>>, vector<1x16x384xf32>
    %88 = vector.shape_cast %87 : vector<1x16x384xf32> to vector<16x384xf32>
    %89 = vector.shape_cast %86 : vector<16x384xf32> to vector<1x16x384xf32>
    tpu.vector_store %arg11[%c0_68, %c0_69, %c0_70], %89 {strides = array<i32>} : memref<1x16x384xf32, #tpu.memory_space<vmem>>, vector<1x16x384xf32>,
    return
  }
  func.func @transform_0(%arg0: i32) -> (i32, i32, i32) {
    %c0_i32 = arith.constant 0 : i32
    %c0_i32_0 = arith.constant 0 : i32
    %c0_i32_1 = arith.constant 0 : i32
    return %arg0, %c0_i32, %c0_i32_0 : i32, i32, i32
  }
  func.func @transform_1(%arg0: i32) -> (i32, i32) {
    %c0_i32 = arith.constant 0 : i32
    %c0_i32_0 = arith.constant 0 : i32
    %c0_i32_1 = arith.constant 0 : i32
    return %c0_i32, %c0_i32_0 : i32, i32
  }
  func.func @transform_2(%arg0: i32) -> (i32, i32, i32) {
    %c0_i32 = arith.constant 0 : i32
    %c0_i32_0 = arith.constant 0 : i32
    %c0_i32_1 = arith.constant 0 : i32
    %c0_i32_2 = arith.constant 0 : i32
    return %c0_i32, %c0_i32_0, %c0_i32_1 : i32, i32, i32
  }
  func.func @transform_3(%arg0: i32) -> (i32, i32) {
    %c0_i32 = arith.constant 0 : i32
    %c0_i32_0 = arith.constant 0 : i32
    %c0_i32_1 = arith.constant 0 : i32
    return %c0_i32, %c0_i32_0 : i32, i32
  }
  func.func @transform_4(%arg0: i32) -> (i32, i32, i32) {
    %c0_i32 = arith.constant 0 : i32
    %c0_i32_0 = arith.constant 0 : i32
    %c0_i32_1 = arith.constant 0 : i32
    %c0_i32_2 = arith.constant 0 : i32
    return %c0_i32, %c0_i32_0, %c0_i32_1 : i32, i32, i32
  }
  func.func @transform_5(%arg0: i32) -> (i32, i32, i32) {
    %c0_i32 = arith.constant 0 : i32
    %c0_i32_0 = arith.constant 0 : i32
    %c0_i32_1 = arith.constant 0 : i32
    %c0_i32_2 = arith.constant 0 : i32
    return %c0_i32, %c0_i32_0, %c0_i32_1 : i32, i32, i32
  }
  func.func @transform_6(%arg0: i32) -> (i32, i32) {
    %c0_i32 = arith.constant 0 : i32
    %c0_i32_0 = arith.constant 0 : i32
    %c0_i32_1 = arith.constant 0 : i32
    return %c0_i32, %c0_i32_0 : i32, i32
  }
  func.func @transform_7(%arg0: i32) -> (i32, i32) {
    %c0_i32 = arith.constant 0 : i32
    %c0_i32_0 = arith.constant 0 : i32
    %c0_i32_1 = arith.constant 0 : i32
    return %c0_i32, %c0_i32_0 : i32, i32
  }
  func.func @transform_8(%arg0: i32) -> (i32, i32) {
    %c0_i32 = arith.constant 0 : i32
    %c0_i32_0 = arith.constant 0 : i32
    %c0_i32_1 = arith.constant 0 : i32
    return %c0_i32, %c0_i32_0 : i32, i32
  }
  func.func @transform_9(%arg0: i32) -> (i32, i32) {
    %c0_i32 = arith.constant 0 : i32
    %c0_i32_0 = arith.constant 0 : i32
    %c0_i32_1 = arith.constant 0 : i32
    return %c0_i32, %c0_i32_0 : i32, i32
  }
  func.func @transform_10(%arg0: i32) -> (i32, i32, i32) {
    %c0_i32 = arith.constant 0 : i32
    %c0_i32_0 = arith.constant 0 : i32
    %c0_i32_1 = arith.constant 0 : i32
    return %arg0, %c0_i32, %c0_i32_0 : i32, i32, i32
  }
}

</mosaic_0001>

<bundles_post_ra>
// kernel: edgesr_forward.1
= control target key start
LH: loop header
LB: loop body
LE: loop exit
PB: predicated region body
PF: predicated region fallthrough
CT: control target
= control target key end

     0   :  { %s4022_s13 = smov 0   ;;  %s5972_s0 = inlined_call_operand.vmem [shape: f32[2,4,384], index: 0, kind: input, shape index: {}]   ;;  %s5973_s1 = inlined_call_operand.vmem [shape: f32[1,384], index: 1, kind: input, shape index: {}]   ;;  %s5974_s2 = inlined_call_operand.vmem [shape: f32[9,32,4], index: 2, kind: input, shape index: {}]   ;;  %s5975_s3 = inlined_call_operand.vmem [shape: f32[32,1], index: 3, kind: input, shape index: {}]   ;;  %s5976_s4 = inlined_call_operand.vmem [shape: f32[2,32,288], index: 4, kind: input, shape index: {}]   ;;  %s5977_s5 = inlined_call_operand.vmem [shape: f32[2,32,1], index: 5, kind: input, shape index: {}]   ;;  %s5978_s6 = inlined_call_operand.vmem [shape: f32[16,288], index: 6, kind: input, shape index: {}]   ;;  %s5979_s7 = inlined_call_operand.vmem [shape: f32[16,1], index: 7, kind: input, shape index: {}]   ;;  %s5980_s8 = inlined_call_operand.vmem [shape: f32[16,16], index: 8, kind: input, shape index: {}]   ;;  %s5981_s9 = inlined_call_operand.vmem [shape: f32[16,1], index: 9, kind: input, shape index: {}]   ;;  %s5982_s10 = inlined_call_operand.vmem [shape: f32[2,16,384], index: 10, kind: output, shape index: {}]  }
   0x1 LB: > { %s3496_s14 = sadd.s32 4294967295, %s3899_s13   ;;  %p3500_p0 = scmp.ge.s32.totalorder %s3899_s13, 1  ;;  %s3899_s13 = sphi %s4022_s13, %s20_s13  }
   0x2   : > { %p312_p1 = scmp.lt.s32.totalorder %s3899_s13, 3 }
   0x4   : > { %p313_p2 = pnand %p3500_p0, %p312_p1 }
   0x5   : > { %p350_p3 = scmp.lt.s32.totalorder (!%p313_p2), %s3496_s14, 1  ;;  %s3953_s23 = smov (!%p313_p2), 19  }
   0x6   : > { %316 = sbr.rel (%p313_p2) target bundleno = 1786 (0x6fa), region = 60  ;;  %s3954_s24 = smov (!%p313_p2), 18  }
   0x7   : > { %s3955_s25 = smov (!%p313_p2), 17   ;;  %s3956_s26 = smov (!%p313_p2), 1  }
   0x8   : > { %s3957_s27 = smov (!%p313_p2), 127   ;;  %s3958_s28 = smov (!%p313_p2), 111  }
   0x9   : > { %s3959_s29 = smov (!%p313_p2), 110  }
   0xb   : > { %s6008_s14 = smov (!%p350_p3, %s3496_s14), 1  ;;  %v380_v24 = vlaneseq  ;;  %vm427_vm1 = vcmask 1043456   ;;  %v3504_v31 = vld [vmem:[%s5974_s2 + $0x28] sm:$0xff]  ;;  %vm414_vm2 = vcmask 31744   ;;  %v3503_v35 = vld [vmem:[%s5974_s2 + $0x20] sm:$0xff]  ;;  %v3505_v39 = vld [vmem:[%s5974_s2 + $0x30] sm:$0xff] }
   0xc   : > { %s3704_s15 = smul.u32 12, %s6008_s14  ;;  %v3506_v48 = vld [vmem:[%s5974_s2 + $0x38] sm:$0xff]  ;;  %v386_v57 = vld [vmem:[%s5974_s2] sm:$0xff]  ;;  %v387_v58 = vld [vmem:[%s5974_s2 + $0x8] sm:$0xff] }
   0xd   : > { %s3705_s16 = smul.u32 48, %s6008_s14  ;;  %v4076_v27 = vand.u32 127, %v380_v24  ;;  %v3537_v60 = vld [vmem:[%s5974_s2 + $0x40] sm:$0xff]  ;;  %v388_v61 = vld [vmem:[%s5974_s2 + $0x10] sm:$0xff]  ;;  %v3538_v62 = vld [vmem:[%s5974_s2 + $0x48] sm:$0xff] }
   0xe   : > { %s354_s19 = scalar_lea.vmem %s5972_s0, %s3704_s15 }
   0xf   : > { %s4036_s22 = scalar_lea.vmem %s5982_s10, %s3705_s16  ;;  %v4038_v0 = vld [vmem:[%s354_s19] sm:$0xff]  ;;  %v4040_v1 = vld [vmem:[%s354_s19 + $0x8] sm:$0xf]  ;;  %vm405_vm0 = vcmp.lt.s32.totalorder %v4076_v27, 18  ;;  %vm382_vm3 = vcmp.lt.s32.totalorder %v4076_v27, 19  ;;  %vm647_vm4 = vcmp.lt.s32.totalorder %v4076_v27, 17 }
  0x10   : > { %365 = vst [vmem:[#allocation1] ss:$2 sm:$0xff] %v4038_v0  ;;  %vm791_vm5 = vcmp.lt.s32.totalorder %v4076_v27, 1  ;;  %s3960_s19 = smov 109   ;;  %vm1063_vm6 = vcmp.lt.s32.totalorder %v4076_v27, 127  ;;  %vm1207_vm7 = vcmp.lt.s32.totalorder %v4076_v27, 111 }
  0x11   : > { %367 = vst [vmem:[#allocation1 + $0x10] ss:$2 sm:$0xff] %v4040_v1  ;;  %vm1351_vm8 = vcmp.lt.s32.totalorder %v4076_v27, 110  ;;  %vm1495_vm9 = vcmp.lt.s32.totalorder %v4076_v27, 109 }
  0x17   : > { %v368_v2 = vld.sshfl [vmem:[#allocation1] sm:$0xff pattern:$0x75316420]  ;;  %v369_v3 = vld.sshfl [vmem:[#allocation1 + $0x8] sm:$0xff pattern:$0x75316420] }
  0x18   : > { %390 = vst [vmem:[#allocation1] ss:$2 sm:$0xff] %v4038_v0  ;;  %v370_v4 = vld.sshfl [vmem:[#allocation1 + $0x10] sm:$0xff pattern:$0x75316420] }
  0x19   : > { %392 = vst [vmem:[#allocation1 + $0x10] ss:$2 sm:$0xff] %v4040_v1  ;;  %378 = vrot.lane.b32.xlu2 %v370_v4, %s3953_s23  ;;  %v3540_v4 = vld [vmem:[%s5974_s2 + $0x58] sm:$0xff] }
  0x1f   : > { %v394_v5 = vld.sshfl [vmem:[#allocation1 + $0x8] sm:$0xff pattern:$0x75316420]  ;;  %v393_v6 = vld.sshfl [vmem:[#allocation1] sm:$0xff pattern:$0x75316420] }
  0x20   : > { %401 = vrot.lane.b32.xlu1 %v394_v5, %s3954_s24  ;;  %399 = vrot.lane.b32.xlu0 %v393_v6, %s3954_s24  ;;  %632 = vst [vmem:[#allocation1] ss:$2 sm:$0xff] %v4038_v0  ;;  %v395_v7 = vld.sshfl [vmem:[#allocation1 + $0x10] sm:$0xff pattern:$0x75316420] }
  0x21   : > { %634 = vst [vmem:[#allocation1 + $0x10] ss:$2 sm:$0xff] %v4040_v1 }
  0x27   : > { %v635_v8 = vld.sshfl [vmem:[#allocation1] sm:$0xff pattern:$0x75316420]  ;;  %v636_v9 = vld.sshfl [vmem:[#allocation1 + $0x8] sm:$0xff pattern:$0x75316420] }
  0x28   : > { %374 = vrot.lane.b32.xlu1 %v368_v2, %s3953_s23  ;;  %403 = vrot.lane.b32.xlu0 %v395_v7, %s3954_s24  ;;  %v637_v10 = vld.sshfl [vmem:[#allocation1 + $0x10] sm:$0xff pattern:$0x75316420]  ;;  %776 = vst [vmem:[#allocation1] ss:$2 sm:$0xff] %v4038_v0 }
  0x29   : > { %778 = vst [vmem:[#allocation1 + $0x10] ss:$2 sm:$0xff] %v4040_v1  ;;  %641 = vrot.lane.b32.xlu2 %v635_v8, %s3955_s25 }
  0x2f   : > { %v780_v11 = vld.sshfl [vmem:[#allocation1 + $0x8] sm:$0xff pattern:$0x75316420]  ;;  %v779_v12 = vld.sshfl [vmem:[#allocation1] sm:$0xff pattern:$0x75316420] }
  0x30   : > { %376 = vrot.lane.b32.xlu1 %v369_v3, %s3953_s23  ;;  %645 = vrot.lane.b32.xlu0 %v637_v10, %s3955_s25  ;;  %925 = vst [vmem:[#allocation1] ss:$2 sm:$0xff] %v4038_v0  ;;  %v781_v13 = vld.sshfl [vmem:[#allocation1 + $0x10] sm:$0xff pattern:$0x75316420]  ;;  %v3556_v3 = vld [vmem:[%s5974_s2 + $0x60] sm:$0xff] }
  0x31   : > { %643 = vrot.lane.b32.xlu2 %v636_v9, %s3955_s25  ;;  %927 = vst [vmem:[#allocation1 + $0x10] ss:$2 sm:$0xff] %v4040_v1  ;;  %v3557_v9 = vld [vmem:[%s5974_s2 + $0x68] sm:$0xff] }
  0x37   : > { %v4055_v14 = vld.sshfl [vmem:[#allocation1] sm:$0xff pattern:$0x75316420]  ;;  %v4057_v15 = vld.sshfl [vmem:[#allocation1 + $0x8] sm:$0xff pattern:$0x75316420] }
  0x38   : > { %787 = vrot.lane.b32.xlu1 %v780_v11, %s3956_s26  ;;  %785 = vrot.lane.b32.xlu0 %v779_v12, %s3956_s26  ;;  %1048 = vst [vmem:[#allocation1] ss:$2 sm:$0xff] %v4038_v0  ;;  %v4062_v16 = vld.sshfl [vmem:[#allocation1 + $0x10] sm:$0xff pattern:$0x75316420] }
  0x39   : > { %1050 = vst [vmem:[#allocation1 + $0x10] ss:$2 sm:$0xff] %v4040_v1  ;;  %789 = vrot.lane.b32.xlu2 %v781_v13, %s3956_s26 }
  0x3f   : > { %v1052_v17 = vld.sshfl [vmem:[#allocation1 + $0x8] sm:$0xff pattern:$0x75316420]  ;;  %v1051_v18 = vld.sshfl [vmem:[#allocation1] sm:$0xff pattern:$0x75316420] }
  0x40   : > { %1059 = vrot.lane.b32.xlu1 %v1052_v17, %s3957_s27  ;;  %v1053_v19 = vld.sshfl [vmem:[#allocation1 + $0x10] sm:$0xff pattern:$0x75316420]  ;;  %1057 = vrot.lane.b32.xlu0 %v1051_v18, %s3957_s27  ;;  %1192 = vst [vmem:[#allocation1] ss:$2 sm:$0xff] %v4038_v0 }
  0x41   : > { %1194 = vst [vmem:[#allocation1 + $0x10] ss:$2 sm:$0xff] %v4040_v1 }
  0x47   : > { %v1196_v20 = vld.sshfl [vmem:[#allocation1 + $0x8] sm:$0xff pattern:$0x75316420]  ;;  %v1195_v21 = vld.sshfl [vmem:[#allocation1] sm:$0xff pattern:$0x75316420] }
  0x48   : > { %1061 = vrot.lane.b32.xlu1 %v1053_v19, %s3957_s27  ;;  %1203 = vrot.lane.b32.xlu0 %v1196_v20, %s3958_s28  ;;  %1336 = vst [vmem:[#allocation1] ss:$2 sm:$0xff] %v4038_v0  ;;  %v1197_v22 = vld.sshfl [vmem:[#allocation1 + $0x10] sm:$0xff pattern:$0x75316420]  ;;  %v3576_v19 = vld [vmem:[%s5974_s2 + $0x88] sm:$0xff] }
  0x49   : > { %1201 = vrot.lane.b32.xlu2 %v1195_v21, %s3958_s28  ;;  %1338 = vst [vmem:[#allocation1 + $0x10] ss:$2 sm:$0xff] %v4040_v1  ;;  %v3577_v21 = vld [vmem:[%s5974_s2 + $0x90] sm:$0xff] }
  0x4f   : > { %v1340_v26 = vld.sshfl [vmem:[#allocation1 + $0x8] sm:$0xff pattern:$0x75316420]  ;;  %v1339_v42 = vld.sshfl [vmem:[#allocation1] sm:$0xff pattern:$0x75316420] }
  0x50   : > { %v1341_v25 = vld.sshfl [vmem:[#allocation1 + $0x10] sm:$0xff pattern:$0x75316420]  ;;  %1347 = vrot.lane.b32.xlu0 %v1340_v26, %s3959_s29  ;;  %1480 = vst [vmem:[#allocation1] ss:$2 sm:$0xff] %v4038_v0  ;;  %v389_v0 = vld [vmem:[%s5974_s2 + $0x18] sm:$0xff] }
  0x51   : > { %1205 = vrot.lane.b32.xlu2 %v1197_v22, %s3958_s28  ;;  %1482 = vst [vmem:[#allocation1 + $0x10] ss:$2 sm:$0xff] %v4040_v1  ;;  %1349 = vrot.lane.b32.xlu1 %v1341_v25, %s3959_s29  ;;  %v3539_v1 = vld [vmem:[%s5974_s2 + $0x50] sm:$0xff]  ;;  %s4543_s28 = smov 0  }
  0x57   : > { %v1483_v51 = vld.sshfl [vmem:[#allocation1] sm:$0xff pattern:$0x75316420]  ;;  %v1484_v63 = vld.sshfl [vmem:[#allocation1 + $0x8] sm:$0xff pattern:$0x75316420] }
  0x58   : > { %v1485_v50 = vld.sshfl [vmem:[#allocation1 + $0x10] sm:$0xff pattern:$0x75316420]  ;;  %1489 = vrot.lane.b32.xlu0 %v1483_v51, %s3960_s19 }
  0x59   : > { %1345 = vrot.lane.b32.xlu2 %v1339_v42, %s3959_s29  ;;  %1493 = vrot.lane.b32.xlu1 %v1485_v50, %s3960_s19 }
  0x61   : > { %1491 = vrot.lane.b32.xlu2 %v1484_v63, %s3960_s19 }
  0x73   : > { %v379_v23 = vpop.permute.xlu2 %378 }
  0x83   : > { %v642_v28 = vpop.permute.xlu2 %641 }
  0x8b   : > { %v644_v38 = vpop.permute.xlu2 %643 }
  0x8c   : > { %v649_v41 = vsel %vm647_vm4, %v642_v28, %v644_v38 }
  0x92   : > { %v402_v29 = vpop.permute.xlu1 %401  ;;  %v400_v30 = vpop.permute.xlu0 %399 }
  0x93   : > { %v407_v32 = vsel %vm405_vm0, %v400_v30, %v402_v29  ;;  %v790_v49 = vpop.permute.xlu2 %789 }
  0x94   : > { %3700 = vmatpush.msk.msra.mxu1 %vm427_vm1, %v407_v32 }
  0x95   : > { %3514 = vmatmul.msk.f32.vlgmr.msra.gmra.mxu1 %vm414_vm2, %v3504_v31 }
  0x9a   : > { %v375_v33 = vpop.permute.xlu1 %374  ;;  %v404_v34 = vpop.permute.xlu0 %403 }
  0x9b   : > { %v408_v36 = vsel %vm405_vm0, %v404_v34, %v400_v30  ;;  %v406_v37 = vsel %vm405_vm0, %v402_v29, %v404_v34  ;;  %v385_v40 = vsel %vm382_vm3, %v379_v23, %v375_v33  ;;  %v3594_v29 = vld [vmem:[%s5974_s2 + $0xa0] sm:$0xff] }
  0x9c   : > { %3507 = vmatpush.msk.msra.mxu0 %vm427_vm1, %v408_v36  ;;  %3699 = vmatpush.msk.msra.mxu3 %vm427_vm1, %v408_v36  ;;  %v3596_v36 = vld [vmem:[%s5974_s2 + $0xb0] sm:$0xff] }
  0x9d   : > { %3701 = vmatpush.msk.msra.mxu2 %vm427_vm1, %v406_v37  ;;  %3508 = vmatmul.msk.f32.vlgmr.msra.gmra.mxu0 %vm414_vm2, %v3503_v35 }
  0x9e   : > { %3509 = vmatmul.msk.f32.vlgmr.msra.gmra.mxu3 %vm414_vm2, %v3504_v31  ;;  %3512 = vmatpush.msk.msrb.mxu0 %vm427_vm1, %v407_v32 }
  0x9f   : > { %3515 = vmatmul.msk.f32.gmra.mxu1 %vm414_vm2, %v3505_v39  ;;  %3522 = vmatpush.msk.msrb.mxu3 %vm427_vm1, %v385_v40 }
  0xa0   : > { %3517 = vmatpush.msk.msra.mxu0 %vm427_vm1, %v406_v37  ;;  %3519 = vmatmul.msk.f32.vlgmr.msra.gmra.mxu2 %vm414_vm2, %v3504_v31  ;;  %v3595_v31 = vld [vmem:[%s5974_s2 + $0xa8] sm:$0xff] }
  0xa1   : > { %3546 = vmatpush.msk.msra.mxu3 %vm427_vm1, %v649_v41  ;;  %v3614_v37 = vld [vmem:[%s5974_s2 + $0xc8] sm:$0xff] }
  0xa2   : > { %v377_v43 = vpop.permute.xlu1 %376  ;;  %v646_v44 = vpop.permute.xlu0 %645 }
  0xa3   : > { %v384_v45 = vsel %vm382_vm3, %v375_v33, %v377_v43  ;;  %v383_v46 = vsel %vm382_vm3, %v377_v43, %v379_v23  ;;  %v650_v47 = vsel %vm647_vm4, %v646_v44, %v642_v28  ;;  %v648_v54 = vsel %vm647_vm4, %v644_v38, %v646_v44  ;;  %v1202_v11 = vpop.permute.xlu2 %1201  ;;  %v3578_v28 = vld [vmem:[%s5974_s2 + $0x98] sm:$0xff]  ;;  %v3613_v33 = vld [vmem:[%s5974_s2 + $0xc0] sm:$0xff] }
  0xa4   : > { %3532 = vmatpush.msk.msrb.mxu1 %vm427_vm1, %v383_v46  ;;  %3541 = vmatpush.msk.msrb.mxu2 %vm427_vm1, %v650_v47 }
  0xa5   : > { %3513 = vmatmul.msk.f32.vlgmr.msrb.gmra.mxu0 %vm414_vm2, %v3503_v35 }
  0xa6   : > { %3510 = vmatmul.msk.f32.gmra.mxu3 %vm414_vm2, %v3505_v39  ;;  %3527 = vmatpush.msk.msrb.mxu0 %vm427_vm1, %v384_v45 }
  0xa7   : > { %3516 = vmatmul.msk.f32.gmra.mxu1 %vm414_vm2, %v3506_v48 }
  0xa8   : > { %3520 = vmatmul.msk.f32.gmra.mxu2 %vm414_vm2, %v3505_v39 }
  0xaa   : > { %v788_v52 = vpop.permute.xlu1 %787  ;;  %v786_v53 = vpop.permute.xlu0 %785 }
  0xab   : > { %v793_v55 = vsel %vm791_vm5, %v786_v53, %v788_v52  ;;  %v794_v56 = vsel %vm791_vm5, %v790_v49, %v786_v53  ;;  %v792_v59 = vsel %vm791_vm5, %v788_v52, %v790_v49  ;;  %v1206_v17 = vpop.permute.xlu2 %1205  ;;  %v3615_v49 = vld [vmem:[%s5974_s2 + $0xd0] sm:$0xff] }
  0xac   : > { %3560 = vmatpush.msk.msra.mxu1 %vm427_vm1, %v794_v56  ;;  %3565 = vmatpush.msk.msra.mxu2 %vm427_vm1, %v793_v55  ;;  %v1210_v18 = vsel %vm1207_vm7, %v1206_v17, %v1202_v11  ;;  %v3616_v56 = vld [vmem:[%s5974_s2 + $0xd8] sm:$0xff] }
  0xad   : > { %3518 = vmatmul.msk.f32.vlgmr.msra.gmra.mxu0 %vm414_vm2, %v3503_v35 }
  0xae   : > { %3511 = vmatmul.msk.f32.gmra.mxu3 %vm414_vm2, %v3506_v48  ;;  %3551 = vmatpush.msk.msra.mxu0 %vm427_vm1, %v648_v54  ;;  %v4327_v54 = vld [vmem:[%s5974_s2 + $0xe0] sm:$0xff] }
  0xaf   : > { %3533 = vmatmul.msk.f32.vlgmr.msrb.gmra.mxu1 %vm414_vm2, %v386_v57 }
  0xb0   : > { %3521 = vmatmul.msk.f32.gmra.mxu2 %vm414_vm2, %v3506_v48  ;;  %3584 = vmatpush.msk.msrb.mxu1 %vm427_vm1, %v4057_v15  ;;  %v3559_v15 = vld [vmem:[%s5974_s2 + $0x78] sm:$0xff] }
  0xb1   : > { %v3597_v48 = vld [vmem:[%s5974_s2 + $0xb8] sm:$0xff] }
  0xb2   : > { %v1060_v2 = vpop.permute.xlu1 %1059  ;;  %v1058_v6 = vpop.permute.xlu0 %1057 }
  0xb3   : > { %v1065_v10 = vsel %vm1063_vm6, %v1058_v6, %v1060_v2  ;;  %v1346_v25 = vpop.permute.xlu2 %1345 }
  0xb5   : > { %3528 = vmatmul.msk.f32.vlgmr.msrb.gmra.mxu0 %vm414_vm2, %v386_v57 }
  0xb6   : > { %3523 = vmatmul.msk.f32.vlgmr.msrb.gmra.mxu3 %vm414_vm2, %v386_v57  ;;  %3579 = vmatpush.msk.msrb.mxu0 %vm427_vm1, %v4055_v14  ;;  %v3558_v14 = vld [vmem:[%s5974_s2 + $0x70] sm:$0xff] }
  0xb7   : > { %3534 = vmatmul.msk.f32.gmra.mxu1 %vm414_vm2, %v387_v58  ;;  %3570 = vmatpush.msk.msrb.mxu3 %vm427_vm1, %v792_v59 }
  0xb8   : > { %3542 = vmatmul.msk.f32.vlgmr.msrb.gmra.mxu2 %vm414_vm2, %v3537_v60 }
  0xb9   : > { %3589 = vmatpush.msk.msrb.mxu2 %vm427_vm1, %v4062_v16  ;;  %v3575_v16 = vld [vmem:[%s5974_s2 + $0x80] sm:$0xff] }
  0xba   : > { %v1062_v5 = vpop.permute.xlu1 %1061  ;;  %v1204_v12 = vpop.permute.xlu0 %1203 }
  0xbb   : > { %v1066_v7 = vsel %vm1063_vm6, %v1062_v5, %v1058_v6  ;;  %v1064_v8 = vsel %vm1063_vm6, %v1060_v2, %v1062_v5  ;;  %v1209_v13 = vsel %vm1207_vm7, %v1202_v11, %v1204_v12  ;;  %v1208_v20 = vsel %vm1207_vm7, %v1204_v12, %v1206_v17  ;;  %v1492_v39 = vpop.permute.xlu2 %1491  ;;  %v1624_v6 = vld [vmem:[%s5975_s3] sm:$0xff] }
  0xbc   : > { %v3961_v5 = vmov 0  }
  0xbd   : > { %3529 = vmatmul.msk.f32.gmra.mxu0 %vm414_vm2, %v387_v58  ;;  %3832 = vset.pattern.permute.xlu0 %v3961_v5 }
  0xbe   : > { %3524 = vmatmul.msk.f32.gmra.mxu3 %vm414_vm2, %v387_v58  ;;  %3833 = vset.pattern.permute.xlu1 %v3961_v5 }
  0xbf   : > { %3535 = vmatmul.msk.f32.gmra.mxu1 %vm414_vm2, %v388_v61  ;;  %1630 = vperm.xlu0 %3832, %v1624_v6  }
  0xc0   : > { %3543 = vmatmul.msk.f32.gmra.mxu2 %vm414_vm2, %v3538_v62  ;;  %3834 = vset.pattern.permute.xlu2 %v3961_v5 }
  0xc2   : > { %v1348_v23 = vpop.permute.xlu0 %1347 }
  0xc3   : > { %v1350_v22 = vpop.permute.xlu1 %1349  ;;  %v1353_v26 = vsel %vm1351_vm8, %v1346_v25, %v1348_v23 }
  0xc4   : > { %v1352_v24 = vsel %vm1351_vm8, %v1348_v23, %v1350_v22  ;;  %v1354_v32 = vsel %vm1351_vm8, %v1350_v22, %v1346_v25 }
  0xc5   : > { %3530 = vmatmul.msk.f32.gmra.mxu0 %vm414_vm2, %v388_v61 }
  0xc6   : > { %3525 = vmatmul.msk.f32.gmra.mxu3 %vm414_vm2, %v388_v61 }
  0xc7   : > { %3536 = vmatmul.msk.f32.gmra.mxu1 %vm414_vm2, %v389_v0 }
  0xc8   : > { %3544 = vmatmul.msk.f32.gmra.mxu2 %vm414_vm2, %v3539_v1 }
  0xca   : > { %v1490_v41 = vpop.permute.xlu0 %1489 }
  0xcb   : > { %v1494_v38 = vpop.permute.xlu1 %1493  ;;  %v1497_v42 = vsel %vm1495_vm9, %v1490_v41, %v1492_v39 }
  0xcc   : > { %v1496_v40 = vsel %vm1495_vm9, %v1492_v39, %v1494_v38  ;;  %v1498_v43 = vsel %vm1495_vm9, %v1494_v38, %v1490_v41  ;;  %v3652_v39 = vld [vmem:[%s5974_s2 + $0x108] sm:$0xff] }
  0xcd   : > { %3531 = vmatmul.msk.f32.gmra.mxu0 %vm414_vm2, %v389_v0 }
  0xce   : > { %3526 = vmatmul.msk.f32.gmra.mxu3 %vm414_vm2, %v389_v0 }
  0xcf   : > { %3561 = vmatmul.msk.f32.vlgmr.msra.gmra.mxu1 %vm414_vm2, %v3556_v3 }
  0xd0   : > { %3545 = vmatmul.msk.f32.gmra.mxu2 %vm414_vm2, %v3540_v4  ;;  %3608 = vmatpush.msk.msra.mxu1 %vm427_vm1, %v1066_v7 }
  0xd5   : > { %3552 = vmatmul.msk.f32.vlgmr.msra.gmra.mxu0 %vm414_vm2, %v3537_v60 }
  0xd6   : > { %3547 = vmatmul.msk.f32.vlgmr.msra.gmra.mxu3 %vm414_vm2, %v3537_v60  ;;  %3603 = vmatpush.msk.msra.mxu0 %vm427_vm1, %v1064_v8 }
  0xd7   : > { %3562 = vmatmul.msk.f32.gmra.mxu1 %vm414_vm2, %v3557_v9  ;;  %3598 = vmatpush.msk.msra.mxu3 %vm427_vm1, %v1065_v10 }
  0xd8   : > { %3566 = vmatmul.msk.f32.vlgmr.msra.gmra.mxu2 %vm414_vm2, %v3556_v3 }
  0xd9   : > { %3617 = vmatpush.msk.msra.mxu2 %vm427_vm1, %v1209_v13 }
  0xdd   : > { %3553 = vmatmul.msk.f32.gmra.mxu0 %vm414_vm2, %v3538_v62 }
  0xde   : > { %3548 = vmatmul.msk.f32.gmra.mxu3 %vm414_vm2, %v3538_v62  ;;  %v4344_v62 = vld [vmem:[%s5974_s2 + $0xe8] sm:$0xff] }
  0xdf   : > { %3563 = vmatmul.msk.f32.gmra.mxu1 %vm414_vm2, %v3558_v14 }
  0xe0   : > { %3567 = vmatmul.msk.f32.gmra.mxu2 %vm414_vm2, %v3557_v9 }
  0xe5   : > { %3554 = vmatmul.msk.f32.gmra.mxu0 %vm414_vm2, %v3539_v1 }
  0xe6   : > { %3549 = vmatmul.msk.f32.gmra.mxu3 %vm414_vm2, %v3539_v1 }
  0xe7   : > { %3564 = vmatmul.msk.f32.gmra.mxu1 %vm414_vm2, %v3559_v15 }
  0xe8   : > { %3568 = vmatmul.msk.f32.gmra.mxu2 %vm414_vm2, %v3558_v14 }
  0xed   : > { %3555 = vmatmul.msk.f32.gmra.mxu0 %vm414_vm2, %v3540_v4 }
  0xee   : > { %3550 = vmatmul.msk.f32.gmra.mxu3 %vm414_vm2, %v3540_v4 }
  0xef   : > { %3585 = vmatmul.msk.f32.vlgmr.msrb.gmra.mxu1 %vm414_vm2, %v3575_v16 }
  0xf0   : > { %3569 = vmatmul.msk.f32.gmra.mxu2 %vm414_vm2, %v3559_v15  ;;  %3636 = vmatpush.msk.msrb.mxu1 %vm427_vm1, %v1353_v26 }
  0xf5   : > { %3580 = vmatmul.msk.f32.vlgmr.msrb.gmra.mxu0 %vm414_vm2, %v3575_v16 }
  0xf6   : > { %3571 = vmatmul.msk.f32.vlgmr.msrb.gmra.mxu3 %vm414_vm2, %v3556_v3  ;;  %3627 = vmatpush.msk.msrb.mxu0 %vm427_vm1, %v1210_v18 }
  0xf7   : > { %3586 = vmatmul.msk.f32.gmra.mxu1 %vm414_vm2, %v3576_v19  ;;  %3622 = vmatpush.msk.msrb.mxu3 %vm427_vm1, %v1208_v20 }
  0xf8   : > { %3590 = vmatmul.msk.f32.vlgmr.msrb.gmra.mxu2 %vm414_vm2, %v3575_v16  ;;  %v1625_v16 = vld [vmem:[%s5975_s3 + $0x8] sm:$0xff] }
  0xf9   : > { %3641 = vmatpush.msk.msrb.mxu2 %vm427_vm1, %v1352_v24  ;;  %1635 = vperm.xlu1 %3833, %v1625_v16  }
  0xfd   : > { %3581 = vmatmul.msk.f32.gmra.mxu0 %vm414_vm2, %v3576_v19 }
  0xfe   : > { %3572 = vmatmul.msk.f32.gmra.mxu3 %vm414_vm2, %v3557_v9  ;;  %v4364_v9 = vld [vmem:[%s5974_s2 + $0xf0] sm:$0xff] }
  0xff   : > { %3587 = vmatmul.msk.f32.gmra.mxu1 %vm414_vm2, %v3577_v21 }
 0x100   : > { %3591 = vmatmul.msk.f32.gmra.mxu2 %vm414_vm2, %v3576_v19  ;;  %v4384_v19 = vld [vmem:[%s5974_s2 + $0xf8] sm:$0xff] }
 0x105   : > { %3582 = vmatmul.msk.f32.gmra.mxu0 %vm414_vm2, %v3577_v21 }
 0x106   : > { %3573 = vmatmul.msk.f32.gmra.mxu3 %vm414_vm2, %v3558_v14 }
 0x107   : > { %3588 = vmatmul.msk.f32.gmra.mxu1 %vm414_vm2, %v3578_v28 }
 0x108   : > { %3592 = vmatmul.msk.f32.gmra.mxu2 %vm414_vm2, %v3577_v21 }
 0x10d   : > { %3583 = vmatmul.msk.f32.gmra.mxu0 %vm414_vm2, %v3578_v28 }
 0x10e   : > { %3574 = vmatmul.msk.f32.gmra.mxu3 %vm414_vm2, %v3559_v15 }
 0x10f   : > { %3609 = vmatmul.msk.f32.vlgmr.msra.gmra.mxu1 %vm414_vm2, %v3594_v29 }
 0x110   : > { %3593 = vmatmul.msk.f32.gmra.mxu2 %vm414_vm2, %v3578_v28  ;;  %3660 = vmatpush.msk.msra.mxu1 %vm427_vm1, %v1496_v40 }
 0x112   : > { %v486_v30 = vpop.f32.mrf.mxu1 }
 0x115   : > { %3604 = vmatmul.msk.f32.vlgmr.msra.gmra.mxu0 %vm414_vm2, %v3594_v29 }
 0x116   : > { %3599 = vmatmul.msk.f32.vlgmr.msra.gmra.mxu3 %vm414_vm2, %v3594_v29  ;;  %3655 = vmatpush.msk.msra.mxu0 %vm427_vm1, %v1497_v42  ;;  %v3651_v29 = vld [vmem:[%s5974_s2 + $0x100] sm:$0xff] }
 0x117   : > { %3610 = vmatmul.msk.f32.gmra.mxu1 %vm414_vm2, %v3595_v31  ;;  %3646 = vmatpush.msk.msra.mxu3 %vm427_vm1, %v1354_v32 }
 0x118   : > { %3618 = vmatmul.msk.f32.vlgmr.msra.gmra.mxu2 %vm414_vm2, %v3613_v33 }
 0x119   : > { %3665 = vmatpush.msk.msra.mxu2 %vm427_vm1, %v1498_v43 }
 0x11a   : > { %v454_v34 = vpop.f32.mrf.mxu0 }
 0x11c   : > { %v4296_v35 = vpop.f32.mrf.mxu1 }
 0x11d   : > { %3605 = vmatmul.msk.f32.gmra.mxu0 %vm414_vm2, %v3595_v31 }
 0x11e   : > { %3600 = vmatmul.msk.f32.gmra.mxu3 %vm414_vm2, %v3595_v31 }
 0x11f   : > { %3611 = vmatmul.msk.f32.gmra.mxu1 %vm414_vm2, %v3596_v36 }
 0x120   : > { %3619 = vmatmul.msk.f32.gmra.mxu2 %vm414_vm2, %v3614_v37 }
 0x121   : > { %v457_v44 = vpop.f32.mrf.mxu3 }
 0x122   : > { %v483_v45 = vpop.f32.mrf.mxu0 }
 0x123   : > { %v515_v46 = vpop.f32.mrf.mxu2 }
 0x124   : > { %v4312_v47 = vpop.f32.mrf.mxu1 }
 0x125   : > { %3606 = vmatmul.msk.f32.gmra.mxu0 %vm414_vm2, %v3596_v36 }
 0x126   : > { %3601 = vmatmul.msk.f32.gmra.mxu3 %vm414_vm2, %v3596_v36  ;;  %v1627_v36 = vld [vmem:[%s5975_s3 + $0x18] sm:$0xff] }
 0x127   : > { %3612 = vmatmul.msk.f32.gmra.mxu1 %vm414_vm2, %v3597_v48  ;;  %1645 = vperm.xlu1 %3833, %v1627_v36  }
 0x128   : > { %3620 = vmatmul.msk.f32.gmra.mxu2 %vm414_vm2, %v3615_v49 }
 0x129   : > { %v460_v50 = vpop.f32.mrf.mxu3 }
 0x12a   : > { %v512_v51 = vpop.f32.mrf.mxu0 }
 0x12b   : > { %v518_v52 = vpop.f32.mrf.mxu2 }
 0x12c   : > { %v620_v53 = vpop.f32.mrf.mxu1 }
 0x12d   : > { %v4329_v55 = vadd.f32 %v620_v53, %v512_v51  ;;  %3607 = vmatmul.msk.f32.gmra.mxu0 %vm414_vm2, %v3597_v48 }
 0x12e   : > { %3602 = vmatmul.msk.f32.gmra.mxu3 %vm414_vm2, %v3597_v48  ;;  %v3653_v48 = vld [vmem:[%s5974_s2 + $0x110] sm:$0xff] }
 0x12f   : > { %3637 = vmatmul.msk.f32.vlgmr.msrb.gmra.mxu1 %vm414_vm2, %v4327_v54 }
 0x130   : > { %3621 = vmatmul.msk.f32.gmra.mxu2 %vm414_vm2, %v3616_v56 }
 0x131   : > { %v463_v57 = vpop.f32.mrf.mxu3 }
 0x132   : > { %v591_v58 = vpop.f32.mrf.mxu0 }
 0x133   : > { %v521_v59 = vpop.f32.mrf.mxu2  ;;  %v4339_v60 = vadd.f32 %v591_v58, %v483_v45  ;;  %v3654_v58 = vld [vmem:[%s5974_s2 + $0x118] sm:$0xff] }
 0x134   : > { %v623_v61 = vpop.f32.mrf.mxu1 }
 0x135   : > { %v4346_v63 = vadd.f32 %v623_v61, %v515_v46  ;;  %3628 = vmatmul.msk.f32.vlgmr.msrb.gmra.mxu0 %vm414_vm2, %v3613_v33 }
 0x136   : > { %3623 = vmatmul.msk.f32.vlgmr.msrb.gmra.mxu3 %vm414_vm2, %v3613_v33 }
 0x137   : > { %3638 = vmatmul.msk.f32.gmra.mxu1 %vm414_vm2, %v4344_v62 }
 0x138   : > { %3642 = vmatmul.msk.f32.vlgmr.msrb.gmra.mxu2 %vm414_vm2, %v4327_v54 }
 0x139   : > { %v562_v0 = vpop.f32.mrf.mxu3 }
 0x13a   : > { %v563_v1 = vadd.f32 %v562_v0, %v454_v34  ;;  %v594_v2 = vpop.f32.mrf.mxu0 }
 0x13b   : > { %v4354_v3 = vadd.f32 %v594_v2, %v486_v30  ;;  %v694_v4 = vpop.f32.mrf.mxu2 }
 0x13c   : > { %v626_v7 = vpop.f32.mrf.mxu1  ;;  %v764_v8 = vadd.f32 %v694_v4, %v563_v1 }
 0x13d   : > { %v4367_v10 = vadd.f32 %v626_v7, %v518_v52  ;;  %3629 = vmatmul.msk.f32.gmra.mxu0 %vm414_vm2, %v3614_v37 }
 0x13e   : > { %3624 = vmatmul.msk.f32.gmra.mxu3 %vm414_vm2, %v3614_v37 }
 0x13f   : > { %3639 = vmatmul.msk.f32.gmra.mxu1 %vm414_vm2, %v4364_v9 }
 0x140   : > { %3643 = vmatmul.msk.f32.gmra.mxu2 %vm414_vm2, %v4344_v62 }
 0x141   : > { %v565_v11 = vpop.f32.mrf.mxu3 }
 0x142   : > { %v566_v12 = vadd.f32 %v565_v11, %v457_v44  ;;  %v597_v13 = vpop.f32.mrf.mxu0 }
 0x143   : > { %v4376_v14 = vadd.f32 %v597_v13, %v4296_v35  ;;  %v697_v15 = vpop.f32.mrf.mxu2 }
 0x144   : > { %v629_v17 = vpop.f32.mrf.mxu1  ;;  %v767_v18 = vadd.f32 %v697_v15, %v566_v12 }
 0x145   : > { %v4386_v20 = vadd.f32 %v629_v17, %v521_v59  ;;  %3630 = vmatmul.msk.f32.gmra.mxu0 %vm414_vm2, %v3615_v49 }
 0x146   : > { %3625 = vmatmul.msk.f32.gmra.mxu3 %vm414_vm2, %v3615_v49 }
 0x147   : > { %3640 = vmatmul.msk.f32.gmra.mxu1 %vm414_vm2, %v4384_v19 }
 0x148   : > { %3644 = vmatmul.msk.f32.gmra.mxu2 %vm414_vm2, %v4364_v9 }
 0x149   : > { %v568_v21 = vpop.f32.mrf.mxu3 }
 0x14a   : > { %v569_v22 = vadd.f32 %v568_v21, %v460_v50  ;;  %v600_v23 = vpop.f32.mrf.mxu0 }
 0x14b   : > { %v4395_v24 = vadd.f32 %v600_v23, %v4312_v47  ;;  %v700_v25 = vpop.f32.mrf.mxu2 }
 0x14c   : > { %v770_v26 = vadd.f32 %v700_v25, %v569_v22  ;;  %v838_v28 = vpop.f32.mrf.mxu1 }
 0x14d   : > { %v4400_v30 = vadd.f32 %v838_v28, %v764_v8  ;;  %3631 = vmatmul.msk.f32.gmra.mxu0 %vm414_vm2, %v3616_v56 }
 0x14e   : > { %3626 = vmatmul.msk.f32.gmra.mxu3 %vm414_vm2, %v3616_v56 }
 0x14f   : > { %3661 = vmatmul.msk.f32.vlgmr.msra.gmra.mxu1 %vm414_vm2, %v3651_v29 }
 0x150   : > { %3645 = vmatmul.msk.f32.gmra.mxu2 %vm414_vm2, %v4384_v19 }
 0x151   : > { %v571_v31 = vpop.f32.mrf.mxu3 }
 0x152   : > { %v572_v32 = vadd.f32 %v571_v31, %v463_v57  ;;  %v752_v33 = vpop.f32.mrf.mxu0 }
 0x153   : > { %v703_v34 = vpop.f32.mrf.mxu2  ;;  %v766_v35 = vadd.f32 %v752_v33, %v4329_v55  ;;  %v1626_v55 = vld [vmem:[%s5975_s3 + $0x10] sm:$0xff] }
 0x154   : > { %v773_v37 = vadd.f32 %v703_v34, %v572_v32  ;;  %v841_v38 = vpop.f32.mrf.mxu1  ;;  %1640 = vperm.xlu2 %3834, %v1626_v55  }
 0x155   : > { %v911_v40 = vadd.f32 %v841_v38, %v767_v18  ;;  %3656 = vmatmul.msk.f32.vlgmr.msra.gmra.mxu0 %vm414_vm2, %v3651_v29 }
 0x156   : > { %3647 = vmatmul.msk.f32.vlgmr.msra.gmra.mxu3 %vm414_vm2, %v4327_v54 }
 0x157   : > { %3662 = vmatmul.msk.f32.gmra.mxu1 %vm414_vm2, %v3652_v39 }
 0x158   : > { %3666 = vmatmul.msk.f32.vlgmr.msra.gmra.mxu2 %vm414_vm2, %v3651_v29 }
 0x159   : > { %v723_v41 = vpop.f32.mrf.mxu3 }
 0x15a   : > { %v765_v42 = vadd.f32 %v723_v41, %v4339_v60  ;;  %v755_v43 = vpop.f32.mrf.mxu0 }
 0x15b   : > { %v769_v44 = vadd.f32 %v755_v43, %v4346_v63  ;;  %v867_v45 = vpop.f32.mrf.mxu2 }
 0x15c   : > { %v844_v46 = vpop.f32.mrf.mxu1  ;;  %v909_v47 = vadd.f32 %v867_v45, %v765_v42 }
 0x15d   : > { %v914_v49 = vadd.f32 %v844_v46, %v770_v26  ;;  %3657 = vmatmul.msk.f32.gmra.mxu0 %vm414_vm2, %v3652_v39 }
 0x15e   : > { %3648 = vmatmul.msk.f32.gmra.mxu3 %vm414_vm2, %v4344_v62 }
 0x15f   : > { %3663 = vmatmul.msk.f32.gmra.mxu1 %vm414_vm2, %v3653_v48 }
 0x160   : > { %3667 = vmatmul.msk.f32.gmra.mxu2 %vm414_vm2, %v3652_v39 }
 0x161   : > { %v726_v50 = vpop.f32.mrf.mxu3 }
 0x162   : > { %v768_v51 = vadd.f32 %v726_v50, %v4354_v3  ;;  %v758_v52 = vpop.f32.mrf.mxu0 }
 0x163   : > { %v772_v53 = vadd.f32 %v758_v52, %v4367_v10  ;;  %v870_v54 = vpop.f32.mrf.mxu2 }
 0x164   : > { %v847_v56 = vpop.f32.mrf.mxu1  ;;  %v912_v57 = vadd.f32 %v870_v54, %v768_v51 }
 0x165   : > { %v917_v59 = vadd.f32 %v847_v56, %v773_v37  ;;  %3658 = vmatmul.msk.f32.gmra.mxu0 %vm414_vm2, %v3653_v48 }
 0x166   : > { %3649 = vmatmul.msk.f32.gmra.mxu3 %vm414_vm2, %v4364_v9 }
 0x167   : > { %3664 = vmatmul.msk.f32.gmra.mxu1 %vm414_vm2, %v3654_v58 }
 0x168   : > { %3668 = vmatmul.msk.f32.gmra.mxu2 %vm414_vm2, %v3653_v48 }
 0x169   : > { %v729_v60 = vpop.f32.mrf.mxu3 }
 0x16a   : > { %v771_v61 = vadd.f32 %v729_v60, %v4376_v14  ;;  %v761_v62 = vpop.f32.mrf.mxu0 }
 0x16b   : > { %v775_v63 = vadd.f32 %v761_v62, %v4386_v20  ;;  %v873_v0 = vpop.f32.mrf.mxu2 }
 0x16c   : > { %v915_v1 = vadd.f32 %v873_v0, %v771_v61  ;;  %v995_v2 = vpop.f32.mrf.mxu1 }
 0x16d   : > { %v1037_v3 = vadd.f32 %v995_v2, %v909_v47  ;;  %3659 = vmatmul.msk.f32.gmra.mxu0 %vm414_vm2, %v3654_v58 }
 0x16e   : > { %3650 = vmatmul.msk.f32.gmra.mxu3 %vm414_vm2, %v4384_v19 }
 0x170   : > { %3669 = vmatmul.msk.f32.gmra.mxu2 %vm414_vm2, %v3654_v58 }
 0x171   : > { %v732_v4 = vpop.f32.mrf.mxu3 }
 0x172   : > { %v774_v6 = vadd.f32 %v732_v4, %v4395_v24  ;;  %v966_v7 = vpop.f32.mrf.mxu0 }
 0x173   : > { %v876_v8 = vpop.f32.mrf.mxu2  ;;  %v1036_v9 = vadd.f32 %v966_v7, %v4400_v30 }
 0x174   : > { %v918_v10 = vadd.f32 %v876_v8, %v774_v6  ;;  %v998_v11 = vpop.f32.mrf.mxu1 }
 0x175   : > { %v1040_v12 = vadd.f32 %v998_v11, %v912_v57 }
 0x179   : > { %v896_v13 = vpop.f32.mrf.mxu3 }
 0x17a   : > { %v910_v14 = vadd.f32 %v896_v13, %v766_v35  ;;  %v969_v15 = vpop.f32.mrf.mxu0 }
 0x17b   : > { %v1039_v16 = vadd.f32 %v969_v15, %v911_v40  ;;  %v1024_v17 = vpop.f32.mrf.mxu2 }
 0x17c   : > { %v1001_v18 = vpop.f32.mrf.mxu1  ;;  %v1038_v20 = vadd.f32 %v1024_v17, %v910_v14 }
 0x17d   : > { %v1043_v19 = vadd.f32 %v1001_v18, %v915_v1 }
 0x181   : > { %v899_v21 = vpop.f32.mrf.mxu3 }
 0x182   : > { %v913_v22 = vadd.f32 %v899_v21, %v769_v44  ;;  %v972_v23 = vpop.f32.mrf.mxu0 }
 0x183   : > { %v1027_v25 = vpop.f32.mrf.mxu2  ;;  %v1042_v24 = vadd.f32 %v972_v23, %v914_v49  ;;  %v1631_v23 = vpop.permute.xlu0 %1630 }
 0x184   : > { %v1004_v26 = vpop.f32.mrf.mxu1  ;;  %v1041_v28 = vadd.f32 %v1027_v25, %v913_v22  ;;  %v360_v22 = vld [vmem:[%s5973_s1] sm:$0x7] }
 0x185   : > { %v4450_v29 = vadd.f32 %v1004_v26, %v918_v10  ;;  %v4479_v26 = vperm.slane %v360_v22, 1 }
 0x189   : > { %v902_v30 = vpop.f32.mrf.mxu3 }
 0x18a   : > { %v916_v31 = vadd.f32 %v902_v30, %v772_v53  ;;  %v975_v32 = vpop.f32.mrf.mxu0 }
 0x18b   : > { %v4452_v33 = vadd.f32 %v975_v32, %v917_v59  ;;  %v1030_v34 = vpop.f32.mrf.mxu2 }
 0x18c   : > { %v1044_v35 = vadd.f32 %v1030_v34, %v916_v31  ;;  %v1168_v36 = vpop.f32.mrf.mxu1 }
 0x18d   : > { %v4454_v37 = vadd.f32 %v1168_v36, %v1038_v20 }
 0x191   : > { %v905_v38 = vpop.f32.mrf.mxu3 }
 0x192   : > { %v919_v39 = vadd.f32 %v905_v38, %v775_v63  ;;  %v1139_v40 = vpop.f32.mrf.mxu0 }
 0x193   : > { %v1033_v41 = vpop.f32.mrf.mxu2  ;;  %v1181_v42 = vadd.f32 %v1139_v40, %v1037_v3 }
 0x194   : > { %v4456_v43 = vadd.f32 %v1033_v41, %v919_v39  ;;  %v1171_v44 = vpop.f32.mrf.mxu1  ;;  %v1636_v41 = vpop.permute.xlu1 %1635 }
 0x195   : > { %v4458_v45 = vadd.f32 %v1171_v44, %v1041_v28  ;;  %v4484_v44 = vperm.slane %v360_v22, 0 }
 0x199   : > { %v1110_v46 = vpop.f32.mrf.mxu3 }
 0x19a   : > { %v1180_v47 = vadd.f32 %v1110_v46, %v1036_v9  ;;  %v1142_v48 = vpop.f32.mrf.mxu0 }
 0x19b   : > { %v1184_v49 = vadd.f32 %v1142_v48, %v1040_v12  ;;  %v1254_v50 = vpop.f32.mrf.mxu2 }
 0x19c   : > { %v1174_v51 = vpop.f32.mrf.mxu1  ;;  %v1324_v52 = vadd.f32 %v1254_v50, %v1180_v47 }
 0x19d   : > { %v4460_v53 = vadd.f32 %v1174_v51, %v1044_v35 }
 0x1a1   : > { %v1113_v54 = vpop.f32.mrf.mxu3 }
 0x1a2   : > { %v1183_v55 = vadd.f32 %v1113_v54, %v1039_v16  ;;  %v1145_v56 = vpop.f32.mrf.mxu0 }
 0x1a3   : > { %v1187_v57 = vadd.f32 %v1145_v56, %v1043_v19  ;;  %v1257_v58 = vpop.f32.mrf.mxu2 }
 0x1a4   : > { %v4462_v59 = vpop.f32.mrf.mxu1  ;;  %v1327_v60 = vadd.f32 %v1257_v58, %v1183_v55 }
 0x1a9   : > { %v1116_v61 = vpop.f32.mrf.mxu3 }
 0x1aa   : > { %v1186_v62 = vadd.f32 %v1116_v61, %v1042_v24  ;;  %v1148_v63 = vpop.f32.mrf.mxu0 }
 0x1ab   : > { %v1260_v0 = vpop.f32.mrf.mxu2 }
 0x1ac   : > { %v4464_v1 = vadd.f32 %v1260_v0, %v1186_v62  ;;  %v1398_v2 = vpop.f32.mrf.mxu1 }
 0x1ad   : > { %v1468_v30 = vadd.f32 %v1398_v2, %v1324_v52 }
 0x1b1   : > { %v4466_v3 = vpop.f32.mrf.mxu3 }
 0x1b2   : > { %v1312_v4 = vpop.f32.mrf.mxu0 }
 0x1b3   : > { %v4468_v6 = vpop.f32.mrf.mxu2  ;;  %v1326_v50 = vadd.f32 %v1312_v4, %v4454_v37 }
 0x1b4   : > { %v1401_v7 = vpop.f32.mrf.mxu1 }
 0x1b5   : > { %v1471_v51 = vadd.f32 %v1401_v7, %v1327_v60  ;;  %v4494_v7 = vperm.slane %v360_v22, 2  ;;  %v1189_v22 = vadd.f32 %v4466_v3, %v4452_v33 }
 0x1b9   : > { %v1283_v8 = vpop.f32.mrf.mxu3 }
 0x1ba   : > { %v1315_v9 = vpop.f32.mrf.mxu0  ;;  %v1325_v16 = vadd.f32 %v1283_v8, %v1181_v42 }
 0x1bb   : > { %v1427_v10 = vpop.f32.mrf.mxu2 }
 0x1bc   : > { %v1404_v11 = vpop.f32.mrf.mxu1  ;;  %v1469_v20 = vadd.f32 %v1427_v10, %v1325_v16  ;;  %v1641_v10 = vpop.permute.xlu2 %1640 }
 0x1c1   : > { %v1286_v12 = vpop.f32.mrf.mxu3 }
 0x1c2   : > { %v4470_v13 = vpop.f32.mrf.mxu0  ;;  %v1328_v24 = vadd.f32 %v1286_v12, %v1184_v49  ;;  %v1190_v12 = vadd.f32 %v1148_v63, %v4450_v29 }
 0x1c3   : > { %v1430_v14 = vpop.f32.mrf.mxu2 }
 0x1c4   : > { %v4472_v15 = vpop.f32.mrf.mxu1  ;;  %v1472_v35 = vadd.f32 %v1430_v14, %v1328_v24 }
 0x1c9   : > { %v1289_v17 = vpop.f32.mrf.mxu3 }
 0x1ca   : > { %v4474_v18 = vpop.f32.mrf.mxu0  ;;  %v1331_v47 = vadd.f32 %v1289_v17, %v1187_v57 }
 0x1cb   : > { %v1433_v19 = vpop.f32.mrf.mxu2 }
 0x1cc   : > { %v1571_v21 = vpop.f32.mrf.mxu1  ;;  %v1475_v61 = vadd.f32 %v1433_v19, %v1331_v47  ;;  %v1332_v47 = vadd.f32 %v4470_v13, %v4460_v53  ;;  %v1191_v53 = vadd.f32 %v4462_v59, %v4456_v43 }
 0x1cd   : > { %v1613_v25 = vadd.f32 %v1571_v21, %v1469_v20  ;;  %v1329_v20 = vadd.f32 %v1315_v9, %v4458_v45  ;;  %v1474_v21 = vadd.f32 %v1404_v11, %v4464_v1 }
 0x1cf   : > { %v1649_v28 = vadd.f32 %v1631_v23, %v1613_v25 }
 0x1d1   : > { %v1661_v31 = vmax.f32 %v1649_v28, 0.0  ;;  %v1292_v32 = vpop.f32.mrf.mxu3 }
 0x1d2   : > { %v1542_v34 = vpop.f32.mrf.mxu0  ;;  %v1334_v14 = vadd.f32 %v1292_v32, %v1190_v12 }
 0x1d3   : > { %v4482_v36 = vmul.f32 %v4479_v26, %v1661_v31   ;;  %v1436_v38 = vpop.f32.mrf.mxu2  ;;  %v1612_v39 = vadd.f32 %v1542_v34, %v1468_v30 }
 0x1d4   : > { %v1574_v40 = vpop.f32.mrf.mxu1 }
 0x1d5   : > { %v1648_v42 = vadd.f32 %v1631_v23, %v1612_v39  ;;  %v1616_v46 = vadd.f32 %v1574_v40, %v1472_v35  ;;  %v1646_v35 = vpop.permute.xlu1 %1645  ;;  %v1333_v40 = vadd.f32 %v4468_v6, %v1189_v22 }
 0x1d7   : > { %v1660_v48 = vmax.f32 %v1648_v42, 0.0  ;;  %v1652_v49 = vadd.f32 %v1636_v41, %v1616_v46  ;;  %v1477_v33 = vadd.f32 %v4472_v15, %v1333_v40  ;;  %v1335_v15 = vadd.f32 %v4474_v18, %v1191_v53 }
 0x1d9   : > { %v4488_v52 = vmul.f32 %v4484_v44, %v1660_v48   ;;  %v1664_v54 = vmax.f32 %v1652_v49, 0.0  ;;  %v1456_v55 = vpop.f32.mrf.mxu3 }
 0x1da   : > { %v1470_v56 = vadd.f32 %v1456_v55, %v1326_v50  ;;  %v1545_v58 = vpop.f32.mrf.mxu0 }
 0x1db   : > { %v4491_v62 = vmul.f32 %v4479_v26, %v1664_v54   ;;  %v1615_v0 = vadd.f32 %v1545_v58, %v1471_v51  ;;  %v1600_v2 = vpop.f32.mrf.mxu2 }
 0x1dc   : > { %v1577_v8 = vpop.f32.mrf.mxu1  ;;  %v1614_v57 = vadd.f32 %v1600_v2, %v1470_v56 }
 0x1dd   : > { %v1651_v37 = vadd.f32 %v1636_v41, %v1615_v0  ;;  %v1619_v60 = vadd.f32 %v1577_v8, %v1475_v61 }
 0x1de   : > { %v1650_v4 = vadd.f32 %v1631_v23, %v1614_v57  ;;  %v1478_v23 = vadd.f32 %v1436_v38, %v1334_v14 }
 0x1df   : > { %v1663_v16 = vmax.f32 %v1651_v37, 0.0  ;;  %v1655_v17 = vadd.f32 %v1641_v10, %v1619_v60 }
 0x1e0   : > { %v1662_v19 = vmax.f32 %v1650_v4, 0.0 }
 0x1e1   : > { %v1682_v25 = vmul.f32 %v4484_v44, %v1663_v16   ;;  %v1667_v24 = vmax.f32 %v1655_v17, 0.0  ;;  %v1459_v28 = vpop.f32.mrf.mxu3 }
 0x1e2   : > { %v1681_v30 = vmul.f32 %v4494_v7, %v1662_v19   ;;  %v1473_v29 = vadd.f32 %v1459_v28, %v1329_v20  ;;  %v1548_v63 = vpop.f32.mrf.mxu0 }
 0x1e3   : > { %v1686_v31 = vmul.f32 %v4479_v26, %v1667_v24   ;;  %v1618_v32 = vadd.f32 %v1548_v63, %v1474_v21  ;;  %v1603_v34 = vpop.f32.mrf.mxu2 }
 0x1e4   : > { %v1580_v45 = vpop.f32.mrf.mxu1  ;;  %v1617_v9 = vadd.f32 %v1603_v34, %v1473_v29 }
 0x1e5   : > { %v1654_v1 = vadd.f32 %v1641_v10, %v1618_v32  ;;  %v1622_v11 = vadd.f32 %v1580_v45, %v1478_v23 }
 0x1e6   : > { %v1653_v39 = vadd.f32 %v1636_v41, %v1617_v9 }
 0x1e7   : > { %v1666_v42 = vmax.f32 %v1654_v1, 0.0  ;;  %v1658_v46 = vadd.f32 %v1646_v35, %v1622_v11 }
 0x1e8   : > { %v1665_v48 = vmax.f32 %v1653_v39, 0.0 }
 0x1e9   : > { %v1685_v3 = vmul.f32 %v4484_v44, %v1666_v42   ;;  %v1670_v38 = vmax.f32 %v1658_v46, 0.0  ;;  %v1462_v49 = vpop.f32.mrf.mxu3 }
 0x1ea   : > { %v1684_v50 = vmul.f32 %v4494_v7, %v1665_v48   ;;  %v1476_v51 = vadd.f32 %v1462_v49, %v1332_v47  ;;  %v1551_v54 = vpop.f32.mrf.mxu0 }
 0x1eb   : > { %v1689_v41 = vmul.f32 %v4479_v26, %v1670_v38   ;;  %v1621_v55 = vadd.f32 %v1551_v54, %v1477_v33  ;;  %v1606_v6 = vpop.f32.mrf.mxu2 }
 0x1ec   : > { %v1620_v56 = vadd.f32 %v1606_v6, %v1476_v51 }
 0x1ed   : > { %v1657_v58 = vadd.f32 %v1646_v35, %v1621_v55 }
 0x1ee   : > { %v1656_v13 = vadd.f32 %v1641_v10, %v1620_v56 }
 0x1ef   : > { %v1669_v61 = vmax.f32 %v1657_v58, 0.0 }
 0x1f0   : > { %v1668_v0 = vmax.f32 %v1656_v13, 0.0 }
 0x1f1   : > { %v1688_v2 = vmul.f32 %v4484_v44, %v1669_v61   ;;  %v1465_v8 = vpop.f32.mrf.mxu3 }
 0x1f2   : > { %v1687_v57 = vmul.f32 %v4494_v7, %v1668_v0   ;;  %v1479_v12 = vadd.f32 %v1465_v8, %v1335_v15 }
 0x1f3   : > { %v1609_v37 = vpop.f32.mrf.mxu2 }
 0x1f4   : > { %v1623_v60 = vadd.f32 %v1609_v37, %v1479_v12 }
 0x1f6   : > { %v1659_v4 = vadd.f32 %v1646_v35, %v1623_v60 }
 0x1f8   : > { %v1671_v14 = vmax.f32 %v1659_v4, 0.0 }
 0x1fa   : > { %v1690_v16 = vmul.f32 %v4494_v7, %v1671_v14  }
 0x1fb LB: >> { %s3962_s30 = smov 110   ;;  %1969 = vst [vmem:[#allocation2] sm:$0xff] %v3903_v16  ;;  %s3963_s11 = smov 18   ;;  %vm2254_vm10 = vcmask 261120   ;;  %s3951_s28 = sphi %s4543_s28, %s1696_s28   ;;  %v3947_v52 = vphi %v4488_v52, %v6006_v52   ;;  %v3943_v36 = vphi %v4482_v36, %v6005_v36   ;;  %v3939_v30 = vphi %v1681_v30, %v6004_v30   ;;  %v3935_v25 = vphi %v1682_v25, %v6003_v25   ;;  %v3931_v62 = vphi %v4491_v62, %v6002_v62   ;;  %v3927_v50 = vphi %v1684_v50, %v6001_v50   ;;  %v3923_v3 = vphi %v1685_v3, %v6000_v3   ;;  %v3919_v31 = vphi %v1686_v31, %v5999_v31   ;;  %v3915_v57 = vphi %v1687_v57, %v5998_v57   ;;  %v3911_v2 = vphi %v1688_v2, %v5997_v2   ;;  %v3907_v41 = vphi %v1689_v41, %v5996_v41   ;;  %v3903_v16 = vphi %v1690_v16, %v5995_v16  }
 0x1fc   : >> { %1772 = vrot.lane.b32.xlu0 %v3911_v2, %s3962_s30  ;;  %1788 = vrot.lane.b32.xlu1 %v3903_v16, %s3962_s30  ;;  %1966 = vst [vmem:[#allocation2 + $0x270] sm:$0xff] %v3915_v57  ;;  %s3964_s12 = smov 1   ;;  %s3965_s14 = smov 127  }
 0x1fd   : >> { %1778 = vrot.lane.b32.xlu2 %v3919_v31, %s3962_s30  ;;  %1963 = vst [vmem:[#allocation2 + $0x208] sm:$0xff] %v3927_v50  ;;  %s3698_s15 = smul.u32 96, %s3951_s28  ;;  %s3671_s20 = sshll.u32 %s3951_s28, 5 }
 0x1fe   : >> { %1960 = vst [vmem:[#allocation2 + $0x178] sm:$0xff] %v3939_v30  ;;  %s5126_s19 = scalar_lea.vmem %s5977_s5, %s3671_s20  ;;  %s1696_s28 = sadd.s32 1, %s3951_s28  }
 0x1ff   : >> { %s5006_s18 = scalar_lea.vmem %s5976_s4, %s3698_s15  ;;  %p5293_p4 = scmp.ge.s32.totalorder %s1696_s28, 2  }
 0x200   : > { %vm3308_vm11 = vcmask (%p5293_p4), 130048  }
 0x204   : >> { %1780 = vrot.lane.b32.xlu0 %v3907_v41, %s3962_s30  ;;  %1770 = vrot.lane.b32.xlu1 %v3923_v3, %s3962_s30 }
 0x205   : >> { %1786 = vrot.lane.b32.xlu2 %v3915_v57, %s3962_s30 }
 0x20c   : >> { %1768 = vrot.lane.b32.xlu0 %v3935_v25, %s3962_s30  ;;  %1776 = vrot.lane.b32.xlu1 %v3931_v62, %s3962_s30 }
 0x20d   : >> { %1784 = vrot.lane.b32.xlu2 %v3927_v50, %s3962_s30 }
 0x214   : >> { %1766 = vrot.lane.b32.xlu0 %v3947_v52, %s3962_s30  ;;  %1774 = vrot.lane.b32.xlu1 %v3943_v36, %s3962_s30 }
 0x215   : >> { %1782 = vrot.lane.b32.xlu2 %v3939_v30, %s3962_s30 }
 0x21c   : >> { %1736 = vrot.lane.b32.xlu0 %v3911_v2, %s3963_s11  ;;  %1744 = vrot.lane.b32.xlu1 %v3907_v41, %s3963_s11 }
 0x21d   : >> { %1752 = vrot.lane.b32.xlu2 %v3903_v16, %s3963_s11 }
 0x224   : >> { %1734 = vrot.lane.b32.xlu0 %v3923_v3, %s3963_s11  ;;  %1742 = vrot.lane.b32.xlu1 %v3919_v31, %s3963_s11 }
 0x225   : >> { %1750 = vrot.lane.b32.xlu2 %v3915_v57, %s3963_s11 }
 0x22c   : >> { %1732 = vrot.lane.b32.xlu0 %v3935_v25, %s3963_s11  ;;  %1740 = vrot.lane.b32.xlu1 %v3931_v62, %s3963_s11 }
 0x22d   : >> { %1748 = vrot.lane.b32.xlu2 %v3927_v50, %s3963_s11 }
 0x234   : >> { %1730 = vrot.lane.b32.xlu0 %v3947_v52, %s3963_s11  ;;  %1738 = vrot.lane.b32.xlu1 %v3943_v36, %s3963_s11 }
 0x235   : >> { %1746 = vrot.lane.b32.xlu2 %v3939_v30, %s3963_s11 }
 0x23c   : >> { %1916 = vrot.lane.b32.xlu0 %v3911_v2, %s3964_s12  ;;  %1924 = vrot.lane.b32.xlu1 %v3907_v41, %s3964_s12 }
 0x23d   : >> { %1922 = vrot.lane.b32.xlu2 %v3919_v31, %s3964_s12 }
 0x244   : >> { %1912 = vrot.lane.b32.xlu0 %v3935_v25, %s3964_s12  ;;  %1914 = vrot.lane.b32.xlu1 %v3923_v3, %s3964_s12 }
 0x245   : >> { %1910 = vrot.lane.b32.xlu2 %v3947_v52, %s3964_s12 }
 0x24c   : >> { %1918 = vrot.lane.b32.xlu0 %v3943_v36, %s3964_s12  ;;  %1920 = vrot.lane.b32.xlu1 %v3931_v62, %s3964_s12 }
 0x254   : >> { %1932 = vrot.lane.b32.xlu0 %v3903_v16, %s3964_s12 }
 0x257   : >> { %v1779_v43 = vpop.permute.xlu2 %1778 }
 0x25f   : >> { %v1787_v59 = vpop.permute.xlu2 %1786 }
 0x260   : >> { %v4632_v18 = vsel %vm1351_vm8, %v1779_v43, %v1787_v59 }
 0x267   : >> { %v1785_v19 = vpop.permute.xlu2 %1784 }
 0x26e   : >> { %v1773_v10 = vpop.permute.xlu0 %1772  ;;  %v1789_v17 = vpop.permute.xlu1 %1788 }
 0x26f   : >> { %v4636_v20 = vsel %vm1351_vm8, %v1789_v17, %v1773_v10  ;;  %v1783_v35 = vpop.permute.xlu2 %1782 }
 0x276   : >> { %v1781_v21 = vpop.permute.xlu0 %1780  ;;  %v1771_v24 = vpop.permute.xlu1 %1770 }
 0x277   : >> { %v1797_v28 = vsel %vm1351_vm8, %v1773_v10, %v1781_v21  ;;  %v4642_v29 = vsel %vm1351_vm8, %v1781_v21, %v1789_v17  ;;  %v1796_v63 = vsel %vm1351_vm8, %v1771_v24, %v1779_v43  ;;  %v4651_v22 = vsel %vm1351_vm8, %v1787_v59, %v1771_v24  ;;  %v1753_v46 = vpop.permute.xlu2 %1752 }
 0x278   : >> { %2084 = vrot.lane.b32.xlu0 %v1797_v28, %s3965_s14  ;;  %2092 = vrot.lane.b32.xlu1 %v4642_v29, %s3965_s14 }
 0x279   : >> { %2082 = vrot.lane.b32.xlu2 %v1796_v63, %s3965_s14  ;;  %2296 = vmatpush.msra.mxu1 %v1797_v28 }
 0x27b   : >> { %2297 = vmatpush.msra.mxu1 %v1796_v63 }
 0x27e   : >> { %v1769_v23 = vpop.permute.xlu0 %1768  ;;  %v1777_v32 = vpop.permute.xlu1 %1776 }
 0x27f   : >> { %v4656_v34 = vsel %vm1351_vm8, %v1769_v23, %v1777_v32  ;;  %v4660_v45 = vsel %vm1351_vm8, %v1777_v32, %v1785_v19  ;;  %v4664_v9 = vsel %vm1351_vm8, %v1785_v19, %v1769_v23  ;;  %v1751_v51 = vpop.permute.xlu2 %1750 }
 0x280   : >> { %2090 = vrot.lane.b32.xlu0 %v4632_v18, %s3965_s14  ;;  %2080 = vrot.lane.b32.xlu1 %v4656_v34, %s3965_s14 }
 0x281   : >> { %2088 = vrot.lane.b32.xlu2 %v4660_v45, %s3965_s14  ;;  %2298 = vmatpush.msra.mxu1 %v4656_v34 }
 0x286   : >> { %v1767_v1 = vpop.permute.xlu0 %1766  ;;  %v1775_v11 = vpop.permute.xlu1 %1774 }
 0x287   : >> { %v4675_v39 = vsel %vm1351_vm8, %v1767_v1, %v1775_v11  ;;  %v4679_v40 = vsel %vm1351_vm8, %v1775_v11, %v1783_v35  ;;  %v4683_v42 = vsel %vm1351_vm8, %v1783_v35, %v1767_v1  ;;  %v1749_v53 = vpop.permute.xlu2 %1748 }
 0x288   : >> { %2086 = vrot.lane.b32.xlu0 %v4679_v40, %s3965_s14  ;;  %2299 = vmatpush.msra.mxu1 %v4675_v39 }
 0x289   : >> { %2078 = vrot.lane.b32.xlu2 %v4675_v39, %s3965_s14 }
 0x28e   : >> { %v1737_v47 = vpop.permute.xlu0 %1736  ;;  %v1745_v48 = vpop.permute.xlu1 %1744 }
 0x28f   : >> { %v4692_v33 = vsel %vm405_vm0, %v1737_v47, %v1745_v48  ;;  %v4696_v38 = vsel %vm405_vm0, %v1745_v48, %v1753_v46  ;;  %v4700_v49 = vsel %vm405_vm0, %v1753_v46, %v1737_v47  ;;  %v1747_v12 = vpop.permute.xlu2 %1746 }
 0x290   : >> { %1930 = vrot.lane.b32.xlu0 %v3915_v57, %s3964_s12  ;;  %1876 = vrot.lane.b32.xlu1 %v4692_v33, %s3965_s14  ;;  %1861 = vst [vmem:[#allocation2 + $0x110] sm:$0xff] %v4696_v38 }
 0x291   : >> { %1884 = vrot.lane.b32.xlu2 %v4696_v38, %s3965_s14 }
 0x296   : >> { %v1735_v54 = vpop.permute.xlu0 %1734  ;;  %v1743_v55 = vpop.permute.xlu1 %1742 }
 0x297   : >> { %v4711_v6 = vsel %vm405_vm0, %v1735_v54, %v1743_v55  ;;  %v4715_v56 = vsel %vm405_vm0, %v1743_v55, %v1751_v51  ;;  %v4719_v58 = vsel %vm405_vm0, %v1751_v51, %v1735_v54  ;;  %v4770_v19 = vpop.permute.xlu2 %1922 }
 0x298   : >> { %1874 = vrot.lane.b32.xlu1 %v4711_v6, %s3965_s14  ;;  %1858 = vst [vmem:[#allocation2 + $0x2d0] sm:$0xff] %v4715_v56 }
 0x299   : >> { %1882 = vrot.lane.b32.xlu2 %v4715_v56, %s3965_s14 }
 0x29e   : >> { %v1733_v13 = vpop.permute.xlu0 %1732  ;;  %v1741_v61 = vpop.permute.xlu1 %1740 }
 0x29f   : >> { %v4728_v15 = vsel %vm405_vm0, %v1733_v13, %v1741_v61  ;;  %v4732_v0 = vsel %vm405_vm0, %v1741_v61, %v1749_v53  ;;  %v4736_v8 = vsel %vm405_vm0, %v1749_v53, %v1733_v13 }
 0x2a0   : >> { %2024 = vrot.lane.b32.xlu1 %v1797_v28, %s3964_s12  ;;  %1872 = vrot.lane.b32.xlu0 %v4728_v15, %s3965_s14  ;;  %1855 = vst [vmem:[#allocation2 + $0x188] sm:$0xff] %v4732_v0 }
 0x2a1   : >> { %2032 = vrot.lane.b32.xlu2 %v4642_v29, %s3964_s12 }
 0x2a6   : >> { %v1731_v37 = vpop.permute.xlu0 %1730  ;;  %v1739_v60 = vpop.permute.xlu1 %1738 }
 0x2a7   : >> { %v4746_v4 = vsel %vm405_vm0, %v1731_v37, %v1739_v60  ;;  %v4750_v14 = vsel %vm405_vm0, %v1739_v60, %v1747_v12  ;;  %v4754_v43 = vsel %vm405_vm0, %v1747_v12, %v1731_v37 }
 0x2a8   : >> { %2022 = vrot.lane.b32.xlu0 %v1796_v63, %s3964_s12  ;;  %1880 = vrot.lane.b32.xlu1 %v4732_v0, %s3965_s14  ;;  %1852 = vst [vmem:[#allocation2 + $0x318] sm:$0xff] %v4750_v14  ;;  %v4786_v63 = vpop.permute.xlu2 %1910 }
 0x2a9   : >> { %1928 = vrot.lane.b32.xlu2 %v3927_v50, %s3964_s12 }
 0x2ae   : >> { %v1917_v59 = vpop.permute.xlu0 %1916  ;;  %v1925_v10 = vpop.permute.xlu1 %1924 }
 0x2af   : >> { %v1941_v17 = vsel %vm791_vm5, %v1917_v59, %v1925_v10 }
 0x2b0   : >> { %2030 = vrot.lane.b32.xlu1 %v4632_v18, %s3964_s12  ;;  %1870 = vrot.lane.b32.xlu0 %v4746_v4, %s3965_s14 }
 0x2b1   : >> { %2040 = vrot.lane.b32.xlu2 %v4636_v20, %s3964_s12  ;;  %2354 = vmatpush.msra.mxu3 %v1941_v17 }
 0x2b6   : >> { %v4772_v21 = vpop.permute.xlu0 %1912  ;;  %v4774_v24 = vpop.permute.xlu1 %1914 }
 0x2b7   : >> { %v1940_v28 = vsel %vm791_vm5, %v4774_v24, %v4770_v19 }
 0x2b8   : >> { %2020 = vrot.lane.b32.xlu0 %v4656_v34, %s3964_s12  ;;  %1878 = vrot.lane.b32.xlu1 %v4750_v14, %s3965_s14 }
 0x2b9   : >> { %1926 = vrot.lane.b32.xlu2 %v3939_v30, %s3964_s12  ;;  %2355 = vmatpush.msra.mxu3 %v1940_v28 }
 0x2be   : >> { %v4788_v23 = vpop.permute.xlu0 %1918  ;;  %v4790_v32 = vpop.permute.xlu1 %1920 }
 0x2bf   : >> { %v1938_v35 = vsel %vm791_vm5, %v4786_v63, %v4788_v23  ;;  %v1939_v34 = vsel %vm791_vm5, %v4772_v21, %v4790_v32 }
 0x2c0   : >> { %1868 = vrot.lane.b32.xlu0 %v4700_v49, %s3965_s14  ;;  %2028 = vrot.lane.b32.xlu1 %v4660_v45, %s3964_s12 }
 0x2c1   : >> { %2038 = vrot.lane.b32.xlu2 %v4651_v22, %s3964_s12  ;;  %2356 = vmatpush.msra.mxu3 %v1939_v34 }
 0x2c3   : >> { %2357 = vmatpush.msra.mxu3 %v1938_v35 }
 0x2c6   : >> { %v1933_v1 = vpop.permute.xlu0 %1932 }
 0x2c7   : >> { %v4808_v11 = vsel %vm791_vm5, %v1925_v10, %v1933_v1  ;;  %v1945_v46 = vsel %vm791_vm5, %v1933_v1, %v1917_v59 }
 0x2c8   : >> { %2036 = vrot.lane.b32.xlu0 %v4664_v9, %s3964_s12  ;;  %2018 = vrot.lane.b32.xlu1 %v4675_v39, %s3964_s12 }
 0x2c9   : >> { %2026 = vrot.lane.b32.xlu2 %v4679_v40, %s3964_s12  ;;  %2267 = vmatpush.msra.mxu0 %v1945_v46 }
 0x2d0   : >> { %1992 = vrot.lane.b32.xlu0 %v3903_v16, %s3965_s14  ;;  %1866 = vrot.lane.b32.xlu1 %v4719_v58, %s3965_s14 }
 0x2d1   : >> { %1984 = vrot.lane.b32.xlu2 %v3907_v41, %s3965_s14 }
 0x2d3   : >> { %v4824_v47 = vpop.permute.xlu2 %2082 }
 0x2d8   : >> { %1976 = vrot.lane.b32.xlu0 %v3911_v2, %s3965_s14  ;;  %2034 = vrot.lane.b32.xlu1 %v4683_v42, %s3964_s12 }
 0x2d9   : >> { %1864 = vrot.lane.b32.xlu2 %v4736_v8, %s3965_s14 }
 0x2db   : >> { %v4832_v39 = vpop.permute.xlu2 %2088 }
 0x2e0   : >> { %1862 = vrot.lane.b32.xlu0 %v4754_v43, %s3965_s14  ;;  %1982 = vrot.lane.b32.xlu1 %v3919_v31, %s3965_s14 }
 0x2e1   : >> { %1990 = vrot.lane.b32.xlu2 %v3915_v57, %s3965_s14 }
 0x2e3   : >> { %v4840_v16 = vpop.permute.xlu2 %2078 }
 0x2e8   : >> { %1988 = vrot.lane.b32.xlu0 %v3927_v50, %s3965_s14  ;;  %1974 = vrot.lane.b32.xlu1 %v3923_v3, %s3965_s14 }
 0x2e9   : >> { %1980 = vrot.lane.b32.xlu2 %v3931_v62, %s3965_s14 }
 0x2ea   : >> { %v4848_v48 = vpop.permute.xlu0 %2084  ;;  %v4850_v51 = vpop.permute.xlu1 %2092 }
 0x2eb   : >> { %v4852_v54 = vpop.permute.xlu2 %1884  ;;  %v2109_v57 = vsel %vm1063_vm6, %v4848_v48, %v4850_v51 }
 0x2ec   : >> { %2337 = vmatpush.msra.mxu2 %v2109_v57 }
 0x2f0   : >> { %1972 = vrot.lane.b32.xlu0 %v3935_v25, %s3965_s14  ;;  %1808 = vrot.lane.b32.xlu1 %v4700_v49, %s3964_s12 }
 0x2f1   : >> { %1816 = vrot.lane.b32.xlu2 %v4692_v33, %s3964_s12 }
 0x2f2   : >> { %v4864_v50 = vpop.permute.xlu0 %2090  ;;  %v4866_v55 = vpop.permute.xlu1 %2080 }
 0x2f3   : >> { %v2108_v53 = vsel %vm1063_vm6, %v4824_v47, %v4864_v50  ;;  %v4872_v13 = vpop.permute.xlu2 %1882  ;;  %v2107_v61 = vsel %vm1063_vm6, %v4866_v55, %v4832_v39 }
 0x2f4   : >> { %2338 = vmatpush.msra.mxu2 %v2108_v53 }
 0x2f6   : >> { %2339 = vmatpush.msra.mxu2 %v2107_v61 }
 0x2f8   : >> { %1806 = vrot.lane.b32.xlu0 %v4719_v58, %s3964_s12  ;;  %1978 = vrot.lane.b32.xlu1 %v3943_v36, %s3965_s14 }
 0x2f9   : >> { %1986 = vrot.lane.b32.xlu2 %v3939_v30, %s3965_s14 }
 0x2fa   : >> { %v4884_v12 = vpop.permute.xlu0 %2086 }
 0x2fb   : >> { %v2106_v37 = vsel %vm1063_vm6, %v4840_v16, %v4884_v12  ;;  %v2033_v60 = vpop.permute.xlu2 %2032 }
 0x2fc   : >> { %2340 = vmatpush.msra.mxu2 %v2106_v37 }
 0x2fe   : >> { %2383 = vmatpush.msrb.mxu2 %v4642_v29 }
 0x300   : >> { %2384 = vmatpush.msrb.mxu2 %v4632_v18  ;;  %1804 = vrot.lane.b32.xlu0 %v4736_v8, %s3964_s12 }
 0x301   : >> { %1814 = vrot.lane.b32.xlu1 %v4711_v6, %s3964_s12  ;;  %1970 = vrot.lane.b32.xlu2 %v3947_v52, %s3965_s14 }
 0x302   : >> { %2385 = vmatpush.msrb.mxu2 %v4660_v45  ;;  %v1931_v30 = vpop.permute.xlu0 %1930  ;;  %v1877_v59 = vpop.permute.xlu1 %1876 }
 0x303   : >> { %v4902_v10 = vsel %vm791_vm5, %v4770_v19, %v1931_v30  ;;  %v1944_v18 = vsel %vm791_vm5, %v1931_v30, %v4774_v24  ;;  %v1929_v29 = vpop.permute.xlu2 %1928  ;;  %v1889_v17 = vsel %vm1063_vm6, %v1877_v59, %v4852_v54 }
 0x304   : >> { %2386 = vmatpush.msrb.mxu2 %v4679_v40  ;;  %v4914_v45 = vsel %vm791_vm5, %v4790_v32, %v1929_v29  ;;  %v1943_v19 = vsel %vm791_vm5, %v1929_v29, %v4772_v21  ;;  %2268 = vmatpush.msra.mxu0 %v1944_v18 }
 0x305   : >> { %2358 = vmatpush.msra.mxu3 %v1889_v17 }
 0x306   : >> { %2269 = vmatpush.msra.mxu0 %v1943_v19 }
 0x308   : >> { %1810 = vrot.lane.b32.xlu0 %v4746_v4, %s3964_s12 }
 0x309   : >> { %1812 = vrot.lane.b32.xlu1 %v4728_v15, %s3964_s12  ;;  %1802 = vrot.lane.b32.xlu2 %v4754_v43, %s3964_s12 }
 0x30a   : >> { %v4925_v40 = vpop.permute.xlu1 %1874 }
 0x30b   : >> { %v2041_v24 = vpop.permute.xlu2 %2040  ;;  %v1888_v21 = vsel %vm1063_vm6, %v4925_v40, %v4872_v13 }
 0x30c   : >> { %v4933_v28 = vsel %vm791_vm5, %v2033_v60, %v2041_v24  ;;  %2359 = vmatpush.msra.mxu3 %v1888_v21 }
 0x310   : >> { %1820 = vrot.lane.b32.xlu0 %v4732_v0, %s3964_s12 }
 0x311   : >> { %1824 = vrot.lane.b32.xlu1 %v4696_v38, %s3964_s12  ;;  %1822 = vrot.lane.b32.xlu2 %v4715_v56, %s3964_s12 }
 0x312   : >> { %v1873_v32 = vpop.permute.xlu0 %1872  ;;  %v2025_v35 = vpop.permute.xlu1 %2024 }
 0x313   : >> { %v1927_v34 = vpop.permute.xlu2 %1926  ;;  %v2049_v1 = vsel %vm791_vm5, %v2025_v35, %v2033_v60  ;;  %v2053_v46 = vsel %vm791_vm5, %v2041_v24, %v2025_v35 }
 0x314   : >> { %v4948_v57 = vsel %vm791_vm5, %v4788_v23, %v1927_v34  ;;  %v1942_v53 = vsel %vm791_vm5, %v1927_v34, %v4786_v63  ;;  %2300 = vmatpush.msra.mxu1 %v2053_v46  ;;  %2387 = vmatpush.msrb.mxu2 %v2049_v1 }
 0x315   : >> { %2270 = vmatpush.msra.mxu0 %v1942_v53 }
 0x318   : >> { %2098 = vrot.lane.b32.xlu0 %v4651_v22, %s3965_s14 }
 0x319   : >> { %1818 = vrot.lane.b32.xlu1 %v4750_v14, %s3964_s12  ;;  %2100 = vrot.lane.b32.xlu2 %v4636_v20, %s3965_s14 }
 0x31a   : >> { %v2023_v61 = vpop.permute.xlu0 %2022  ;;  %v1881_v37 = vpop.permute.xlu1 %1880 }
 0x31b   : >> { %v2039_v23 = vpop.permute.xlu2 %2038  ;;  %v1887_v60 = vsel %vm1063_vm6, %v1873_v32, %v1881_v37 }
 0x31c   : >> { %v2052_v63 = vsel %vm791_vm5, %v2039_v23, %v2023_v61  ;;  %2360 = vmatpush.msra.mxu3 %v1887_v60 }
 0x31d   : >> { %2301 = vmatpush.msra.mxu1 %v2052_v63 }
 0x321   : >> { %2096 = vrot.lane.b32.xlu1 %v4664_v9, %s3965_s14  ;;  %2094 = vrot.lane.b32.xlu2 %v4683_v42, %s3965_s14 }
 0x322   : >> { %v1871_v30 = vpop.permute.xlu0 %1870  ;;  %v2031_v18 = vpop.permute.xlu1 %2030 }
 0x323   : >> { %v2027_v29 = vpop.permute.xlu2 %2026  ;;  %v4969_v17 = vsel %vm791_vm5, %v2031_v18, %v2039_v23  ;;  %v2048_v19 = vsel %vm791_vm5, %v2023_v61, %v2031_v18 }
 0x324   : >> { %2388 = vmatpush.msrb.mxu2 %v2048_v19 }
 0x32a   : >> { %v2021_v24 = vpop.permute.xlu0 %2020  ;;  %v1879_v21 = vpop.permute.xlu1 %1878 }
 0x32b   : >> { %v1985_v35 = vpop.permute.xlu2 %1984  ;;  %v1886_v34 = vsel %vm1063_vm6, %v1871_v30, %v1879_v21 }
 0x32c   : >> { %2361 = vmatpush.msra.mxu3 %v1886_v34 }
 0x32e   : >> { %2362 = vmatpush.msra.mxu3 %v4692_v33 }
 0x330   : >> { %2363 = vmatpush.msra.mxu3 %v4711_v6 }
 0x332   : >> { %v1869_v1 = vpop.permute.xlu0 %1868  ;;  %v2029_v46 = vpop.permute.xlu1 %2028  ;;  %2364 = vmatpush.msra.mxu3 %v4728_v15 }
 0x333   : >> { %v1865_v53 = vpop.permute.xlu2 %1864  ;;  %v1893_v61 = vsel %vm1063_vm6, %v1869_v1, %v1877_v59  ;;  %v2047_v23 = vsel %vm791_vm5, %v2021_v24, %v2029_v46  ;;  %v4991_v6 = vsel %vm1063_vm6, %v4852_v54, %v1869_v1 }
 0x334   : >> { %v1891_v60 = vsel %vm1063_vm6, %v1865_v53, %v1873_v32  ;;  %v4986_v33 = vsel %vm1063_vm6, %v1881_v37, %v1865_v53  ;;  %2271 = vmatpush.msra.mxu0 %v1893_v61  ;;  %2365 = vmatpush.msra.mxu3 %v4746_v4 }
 0x335   : >> { %2389 = vmatpush.msrb.mxu2 %v2047_v23 }
 0x33a   : >> { %v2037_v15 = vpop.permute.xlu0 %2036  ;;  %v2019_v59 = vpop.permute.xlu1 %2018 }
 0x33b   : >> { %v1991_v63 = vpop.permute.xlu2 %1990  ;;  %v4996_v18 = vsel %vm791_vm5, %v2029_v46, %v2037_v15  ;;  %v2051_v32 = vsel %vm791_vm5, %v2037_v15, %v2021_v24  ;;  %v2046_v37 = vsel %vm791_vm5, %v2019_v59, %v2027_v29  ;;  %v5019_v46 = vld [vmem:[%s5006_s18 + $0x10] sm:$0xff] }
 0x33c   : >> { %2302 = vmatpush.msra.mxu1 %v2051_v32  ;;  %2390 = vmatpush.msrb.mxu2 %v2046_v37 }
 0x33d   : >> { %3672 = vmatmul.msk.f32.vlgmr.msra.gmra.mxu2 %vm2254_vm10, %v5019_v46 }
 0x342   : >> { %v1993_v4 = vpop.permute.xlu0 %1992  ;;  %v1867_v54 = vpop.permute.xlu1 %1866 }
 0x343   : >> { %v1981_v19 = vpop.permute.xlu2 %1980  ;;  %v1997_v34 = vsel %vm1063_vm6, %v1985_v35, %v1993_v4  ;;  %v1892_v24 = vsel %vm1063_vm6, %v1867_v54, %v4925_v40  ;;  %v5016_v1 = vsel %vm1063_vm6, %v4872_v13, %v1867_v54 }
 0x344   : >> { %2272 = vmatpush.msra.mxu0 %v1892_v24  ;;  %2391 = vmatpush.msrb.mxu2 %v1997_v34  ;;  %v5051_v34 = vld [vmem:[%s5006_s18 + $0x40] sm:$0xff] }
 0x346   : >> { %2273 = vmatpush.msra.mxu0 %v1891_v60  ;;  %v5038_v60 = vld [vmem:[%s5006_s18 + $0x28] sm:$0xff] }
 0x347   : >> { %3673 = vmatmul.msk.f32.gmra.mxu2 %vm2254_vm10, %v5038_v60 }
 0x34a   : >> { %v1977_v53 = vpop.permute.xlu0 %1976  ;;  %v2035_v61 = vpop.permute.xlu1 %2034 }
 0x34b   : >> { %v5023_v23 = vpop.permute.xlu2 %1816  ;;  %v2001_v40 = vsel %vm1063_vm6, %v1977_v53, %v1985_v35  ;;  %v5029_v13 = vsel %vm1063_vm6, %v1993_v4, %v1977_v53  ;;  %v2050_v15 = vsel %vm791_vm5, %v2035_v61, %v2019_v59  ;;  %v5035_v32 = vsel %vm791_vm5, %v2027_v29, %v2035_v61 }
 0x34c   : >> { %2303 = vmatpush.msra.mxu1 %v2050_v15 }
 0x34e   : >> { %2304 = vmatpush.msra.mxu1 %v2001_v40 }
 0x34f   : >> { %3674 = vmatmul.msk.f32.gmra.mxu2 %vm2254_vm10, %v5051_v34 }
 0x352   : >> { %v1863_v35 = vpop.permute.xlu0 %1862  ;;  %v1983_v37 = vpop.permute.xlu1 %1982 }
 0x353   : >> { %v1987_v54 = vpop.permute.xlu2 %1986  ;;  %v1890_v4 = vsel %vm1063_vm6, %v1863_v35, %v1871_v30  ;;  %v5046_v59 = vsel %vm1063_vm6, %v1879_v21, %v1863_v35  ;;  %v1996_v29 = vsel %vm1063_vm6, %v1983_v37, %v1991_v63 }
 0x354   : >> { %2274 = vmatpush.msra.mxu0 %v1890_v4  ;;  %2392 = vmatpush.msrb.mxu2 %v1996_v29 }
 0x356   : >> { %2275 = vmatpush.msra.mxu0 %v4700_v49 }
 0x358   : >> { %2276 = vmatpush.msra.mxu0 %v4719_v58  ;;  %v5072_v58 = vld [vmem:[%s5006_s18 + $0x58] sm:$0xff] }
 0x359   : >> { %3675 = vmatmul.msk.f32.gmra.mxu2 %vm2254_vm10, %v5072_v58 }
 0x35a   : >> { %v1989_v30 = vpop.permute.xlu0 %1988  ;;  %v1975_v24 = vpop.permute.xlu1 %1974  ;;  %2277 = vmatpush.msra.mxu0 %v4736_v8 }
 0x35b   : >> { %v1971_v21 = vpop.permute.xlu2 %1970  ;;  %v1995_v53 = vsel %vm1063_vm6, %v1981_v19, %v1989_v30  ;;  %v2000_v61 = vsel %vm1063_vm6, %v1975_v24, %v1983_v37  ;;  %v5068_v49 = vsel %vm1063_vm6, %v1991_v63, %v1975_v24 }
 0x35c   : >> { %v5064_v40 = vsel %vm1063_vm6, %v1987_v54, %v1971_v21  ;;  %2278 = vmatpush.msra.mxu0 %v4754_v43  ;;  %2305 = vmatpush.msra.mxu1 %v2000_v61 }
 0x35d   : >> { %2393 = vmatpush.msrb.mxu2 %v1995_v53 }
 0x362   : >> { %v1973_v8 = vpop.permute.xlu0 %1972  ;;  %v5076_v15 = vpop.permute.xlu1 %1808 }
 0x363   : >> { %v5078_v35 = vpop.permute.xlu2 %1802  ;;  %v1999_v37 = vsel %vm1063_vm6, %v1973_v8, %v1981_v19  ;;  %v5084_v63 = vsel %vm1063_vm6, %v1989_v30, %v1973_v8  ;;  %v1833_v43 = vsel %vm791_vm5, %v5076_v15, %v5023_v23 }
 0x364   : >> { %2306 = vmatpush.msra.mxu1 %v1999_v37  ;;  %2366 = vmatpush.msra.mxu3 %v1833_v43  ;;  %v5108_v37 = vld [vmem:[%s5006_s18 + $0x8] sm:$0xff]  ;;  %v5155_v43 = vld [vmem:[%s5006_s18] sm:$0xff] }
 0x36a   : >> { %v1807_v4 = vpop.permute.xlu0 %1806  ;;  %v1979_v29 = vpop.permute.xlu1 %1978 }
 0x36b   : >> { %v1823_v24 = vpop.permute.xlu2 %1822  ;;  %v1994_v53 = vsel %vm1063_vm6, %v1979_v29, %v1987_v54  ;;  %v1998_v19 = vsel %vm1063_vm6, %v1971_v21, %v1979_v29 }
 0x36c   : >> { %v5096_v30 = vsel %vm791_vm5, %v1823_v24, %v1807_v4  ;;  %2307 = vmatpush.msra.mxu1 %v1998_v19  ;;  %2394 = vmatpush.msrb.mxu2 %v1994_v53 }
 0x36e   : >> { %2308 = vmatpush.msra.mxu1 %v3911_v2  ;;  %2395 = vmatpush.msrb.mxu2 %v3907_v41 }
 0x370   : >> { %2309 = vmatpush.msra.mxu1 %v3923_v3  ;;  %2396 = vmatpush.msrb.mxu2 %v3919_v31 }
 0x372   : >> { %v1805_v54 = vpop.permute.xlu0 %1804  ;;  %2310 = vmatpush.msra.mxu1 %v3935_v25  ;;  %2397 = vmatpush.msrb.mxu2 %v3931_v62  ;;  %v3966_v62 = vmov 0  }
 0x373   : >> { %v1815_v61 = vpop.permute.xlu1 %1814  ;;  %v2101_v21 = vpop.permute.xlu2 %2100  ;;  %3835 = vset.pattern.permute.xlu0 %v3966_v62  ;;  %3836 = vset.pattern.permute.xlu1 %v3966_v62 }
 0x374   : >> { %v1832_v8 = vsel %vm791_vm5, %v1807_v4, %v1815_v61  ;;  %v5113_v41 = vsel %vm1063_vm6, %v4850_v51, %v2101_v21  ;;  %v2113_v31 = vsel %vm1063_vm6, %v2101_v21, %v4848_v48  ;;  %v5120_v25 = vsel %vm791_vm5, %v1815_v61, %v1823_v24  ;;  %2311 = vmatpush.msra.mxu1 %v3947_v52  ;;  %v1726_v52 = vld [vmem:[%s5126_s19] sm:$0xff] }
 0x375   : >> { %2367 = vmatpush.msra.mxu3 %v1832_v8  ;;  %2398 = vmatpush.msrb.mxu2 %v3943_v36  ;;  %v5142_v51 = vld [vmem:[%s5006_s18 + $0x20] sm:$0xff] }
 0x376   : >> { %2441 = vmatpush.msrb.mxu1 %v4808_v11  ;;  %2399 = vmatmul.f32.vlgmr.msrb.gmra.mxu2 %v5108_v37 }
 0x377   : >> { %2511 = vmatpush.msra.mxu2 %v2113_v31  ;;  %2312 = vmatmul.f32.vlgmr.msra.gmra.mxu1 %v5108_v37 }
 0x378   : >> { %2442 = vmatpush.msrb.mxu1 %v4902_v10  ;;  %2236 = vperm.xlu0 %3835, %v1726_v52  }
 0x379   : >> { %3837 = vset.pattern.permute.xlu2 %v3966_v62 }
 0x37a   : >> { %2443 = vmatpush.msrb.mxu1 %v4914_v45  ;;  %v1811_v36 = vpop.permute.xlu0 %1810 }
 0x37b   : >> { %v1813_v3 = vpop.permute.xlu1 %1812  ;;  %v2095_v2 = vpop.permute.xlu2 %2094  ;;  %v1830_v11 = vsel %vm791_vm5, %v5078_v35, %v1811_v36 }
 0x37c   : >> { %v1831_v48 = vsel %vm791_vm5, %v1805_v54, %v1813_v3  ;;  %2444 = vmatpush.msrb.mxu1 %v4948_v57  ;;  %v5147_v10 = vsel %vm1063_vm6, %v4884_v12, %v2095_v2  ;;  %v5152_v45 = vsel %vm1063_vm6, %v2095_v2, %v4840_v16  ;;  %v1727_v57 = vld [vmem:[%s5126_s19 + $0x8] sm:$0xff] }
 0x37d   : >> { %2368 = vmatpush.msra.mxu3 %v1831_v48  ;;  %2241 = vperm.xlu1 %3836, %v1727_v57  }
 0x37e   : >> { %2445 = vmatpush.msrb.mxu1 %v4991_v6  ;;  %2402 = vmatmul.f32.gmra.mxu2 %v5142_v51 }
 0x37f   : >> { %2369 = vmatpush.msra.mxu3 %v1830_v11  ;;  %2315 = vmatmul.f32.gmra.mxu1 %v5142_v51 }
 0x380   : >> { %2370 = vmatmul.f32.vlgmr.msra.gmra.mxu3 %v5155_v43  ;;  %2446 = vmatpush.msrb.mxu1 %v5016_v1  ;;  %v5185_v1 = vld [vmem:[%s5006_s18 + $0x38] sm:$0xff] }
 0x381   : >> { %2470 = vmatpush.msrb.mxu3 %v4636_v20  ;;  %3838 = vset.pattern.permute.xlu0 (%p5293_p4), %v3961_v5 }
 0x382   : >> { %2447 = vmatpush.msrb.mxu1 %v4986_v33  ;;  %v1821_v16 = vpop.permute.xlu0 %1820 }
 0x383   : >> { %v1825_v12 = vpop.permute.xlu1 %1824  ;;  %2471 = vmatpush.msrb.mxu3 %v4651_v22  ;;  %v1827_v6 = vsel %vm791_vm5, %v1813_v3, %v1821_v16  ;;  %v1835_v4 = vsel %vm791_vm5, %v1821_v16, %v1805_v54  ;;  %v5179_v22 = vld [vmem:[%s5006_s18 + $0x18] sm:$0xff] }
 0x384   : >> { %v1837_v20 = vsel %vm791_vm5, %v1825_v12, %v5076_v15  ;;  %2448 = vmatpush.msrb.mxu1 %v5046_v59  ;;  %v1829_v33 = vsel %vm791_vm5, %v5023_v23, %v1825_v12  ;;  %v2176_v59 = vld [vmem:[#allocation2 + $0x178] sm:$0xff] }
 0x385   : >> { %2472 = vmatpush.msrb.mxu3 %v4664_v9  ;;  %2279 = vmatpush.msra.mxu0 %v1837_v20 }
 0x386   : >> { %2449 = vmatpush.msrb.mxu1 %v4696_v38  ;;  %2405 = vmatmul.f32.gmra.mxu2 %v5185_v1 }
 0x387   : >> { %2473 = vmatpush.msrb.mxu3 %v4683_v42  ;;  %2280 = vmatpush.msra.mxu0 %v5096_v30 }
 0x388   : >> { %2373 = vmatmul.f32.gmra.mxu3 %v5179_v22  ;;  %2450 = vmatpush.msrb.mxu1 %v4715_v56 }
 0x389   : >> { %2474 = vmatpush.msrb.mxu3 %v4933_v28  ;;  %2281 = vmatpush.msra.mxu0 %v1835_v4 }
 0x38a   : >> { %2451 = vmatpush.msrb.mxu1 %v4732_v0  ;;  %v2099_v9 = vpop.permute.xlu0 %2098 }
 0x38b   : >> { %v1819_v38 = vpop.permute.xlu1 %1818  ;;  %2475 = vmatpush.msrb.mxu3 %v4969_v17  ;;  %2318 = vmatmul.f32.gmra.mxu1 %v5185_v1  ;;  %v2104_v42 = vsel %vm1063_vm6, %v4864_v50, %v2099_v9  ;;  %v2112_v56 = vsel %vm1063_vm6, %v2099_v9, %v4824_v47  ;;  %v1718_v50 = vld [vmem:[%s5006_s18 + $0x30] sm:$0xff]  ;;  %v1729_v47 = vld [vmem:[%s5126_s19 + $0x18] sm:$0xff] }
 0x38c   : >> { %v1834_v0 = vsel %vm791_vm5, %v1819_v38, %v5078_v35  ;;  %2452 = vmatpush.msrb.mxu1 %v4750_v14  ;;  %v1826_v28 = vsel %vm791_vm5, %v1811_v36, %v1819_v38  ;;  %2512 = vmatpush.msra.mxu2 %v2112_v56  ;;  %v1722_v17 = vld [vmem:[%s5006_s18 + $0x50] sm:$0xff] }
 0x38d   : >> { %2476 = vmatpush.msrb.mxu3 %v4996_v18  ;;  %2282 = vmatpush.msra.mxu0 %v1834_v0 }
 0x38e   : >> { %2283 = vmatmul.f32.vlgmr.msra.gmra.mxu0 %v5155_v43  ;;  %2453 = vmatpush.msrb.mxu1 %v1829_v33 }
 0x38f   : >> { %2424 = vmatpush.msrb.mxu0 %v5113_v41  ;;  %2477 = vmatpush.msrb.mxu3 %v5035_v32  ;;  %v2185_v32 = vld [vmem:[#allocation2] sm:$0xff] }
 0x390   : >> { %2251 = vperm.xlu1 %3836, %v1729_v47   ;;  %2376 = vmatmul.f32.gmra.mxu3 %v1718_v50 }
 0x391   : >> { %2425 = vmatpush.msrb.mxu0 %v2104_v42  ;;  %2454 = vmatpush.msrb.mxu1 %v5120_v25 }
 0x392   : >> { %2478 = vmatpush.msrb.mxu3 %v5029_v13  ;;  %2408 = vmatmul.f32.gmra.mxu2 %v1722_v17  ;;  %v1721_v13 = vld [vmem:[%s5006_s18 + $0x48] sm:$0xff] }
 0x393   : >> { %v2097_v14 = vpop.permute.xlu1 %2096  ;;  %2321 = vmatmul.f32.gmra.mxu1 %v1722_v17 }
 0x394   : >> { %v2103_v18 = vsel %vm1063_vm6, %v4832_v39, %v2097_v14  ;;  %v2111_v23 = vsel %vm1063_vm6, %v2097_v14, %v4866_v55  ;;  %2455 = vmatpush.msrb.mxu1 %v1827_v6  ;;  %2479 = vmatpush.msrb.mxu3 %v5068_v49  ;;  %v2182_v39 = vld [vmem:[#allocation2 + $0x270] sm:$0xff]  ;;  %v2179_v55 = vld [vmem:[#allocation2 + $0x208] sm:$0xff] }
 0x395   : >> { %2426 = vmatpush.msrb.mxu0 %v2103_v18  ;;  %2513 = vmatpush.msra.mxu2 %v2111_v23  ;;  %v1728_v49 = vld [vmem:[%s5126_s19 + $0x10] sm:$0xff] }
 0x396   : >> { %2456 = vmatpush.msrb.mxu1 %v1826_v28  ;;  %2480 = vmatpush.msrb.mxu3 %v5084_v63 }
 0x397   : >> { %2286 = vmatmul.f32.gmra.mxu0 %v5179_v22  ;;  %2514 = vmatpush.msra.mxu2 %v5152_v45 }
 0x398   : >> { %2481 = vmatpush.msrb.mxu3 %v5064_v40  ;;  %2427 = vmatpush.msrb.mxu0 %v5147_v10 }
 0x399   : >> { %2379 = vmatmul.f32.gmra.mxu3 %v1721_v13  ;;  %2246 = vperm.xlu2 %3837, %v1728_v49  }
 0x39a   : >> { %2482 = vmatpush.msrb.mxu3 %v2185_v32  ;;  %3680 = vmatmul.msk.f32.vlgmr.msra.gmra.mxu2 %vm2254_vm10, %v5019_v46 }
 0x39b   : >> { %2457 = vmatmul.f32.vlgmr.msrb.gmra.mxu1 %v5155_v43  ;;  %3839 = vset.pattern.permute.xlu1 (%p5293_p4), %v3961_v5 }
 0x39c   : >> { %2483 = vmatpush.msrb.mxu3 %v2182_v39 }
 0x39e   : >> { %2484 = vmatpush.msrb.mxu3 %v2179_v55 }
 0x39f   : >> { %2289 = vmatmul.f32.gmra.mxu0 %v1718_v50 }
 0x3a0   : >> { %2485 = vmatpush.msrb.mxu3 %v2176_v59 }
 0x3a1   : >> { %2486 = vmatmul.f32.vlgmr.msrb.gmra.mxu3 %v5108_v37  ;;  %3840 = vset.pattern.permute.xlu2 (%p5293_p4), %v3961_v5 }
 0x3a2   : >> { %3681 = vmatmul.msk.f32.gmra.mxu2 %vm2254_vm10, %v5038_v60 }
 0x3a3   : >> { %2460 = vmatmul.f32.gmra.mxu1 %v5179_v22 }
 0x3a7   : >> { %2292 = vmatmul.f32.gmra.mxu0 %v1721_v13 }
 0x3a9   : >> { %2489 = vmatmul.f32.gmra.mxu3 %v5142_v51 }
 0x3aa   : >> { %3682 = vmatmul.msk.f32.gmra.mxu2 %vm2254_vm10, %v5051_v34 }
 0x3ab   : >> { %2463 = vmatmul.f32.gmra.mxu1 %v1718_v50 }
 0x3af   : >> { %3676 = vmatmul.msk.f32.vlgmr.msrb.gmra.mxu0 %vm2254_vm10, %v5019_v46 }
 0x3b1   : >> { %2492 = vmatmul.f32.gmra.mxu3 %v5185_v1 }
 0x3b2   : >> { %3683 = vmatmul.msk.f32.gmra.mxu2 %vm2254_vm10, %v5072_v58 }
 0x3b3   : >> { %2466 = vmatmul.f32.gmra.mxu1 %v1721_v13 }
 0x3b7   : >> { %3677 = vmatmul.msk.f32.gmra.mxu0 %vm2254_vm10, %v5038_v60 }
 0x3b9   : >> { %2495 = vmatmul.f32.gmra.mxu3 %v1722_v17 }
 0x3bf   : >> { %3678 = vmatmul.msk.f32.gmra.mxu0 %vm2254_vm10, %v5051_v34 }
 0x3c0   : >> { %v2342_v40 = vpop.f32.mrf.mxu2 }
 0x3c7   : >> { %3679 = vmatmul.msk.f32.gmra.mxu0 %vm2254_vm10, %v5072_v58 }
 0x3ca   : >> { %v2345_v15 = vpop.f32.mrf.mxu2 }
 0x3d2   : >> { %v2348_v35 = vpop.f32.mrf.mxu2 }
 0x3dc   : >> { %v2351_v46 = vpop.f32.mrf.mxu2 }
 0x3ea   : >> { %v2237_v54 = vpop.permute.xlu0 %2236 }
 0x3ef   : >> { %v2242_v31 = vpop.permute.xlu1 %2241 }
 0x3f3   : >> { %v2247_v45 = vpop.permute.xlu2 %2246 }
 0x3f4   : >> { %v2313_v63 = vpop.f32.mrf.mxu1 }
 0x3f9   : >> { %v2400_v29 = vpop.f32.mrf.mxu2 }
 0x3fc   : >> { %v2316_v24 = vpop.f32.mrf.mxu1 }
 0x401   : >> { %v2403_v19 = vpop.f32.mrf.mxu2 }
 0x402   : >> { %v2252_v22 = vpop.permute.xlu1 %2251 }
 0x403   : >> { %v2371_v53 = vpop.f32.mrf.mxu3 }
 0x404   : >> { %v2372_v28 = vadd.f32 %v2371_v53, %v2237_v54 }
 0x406   : >> { %v2401_v39 = vadd.f32 %v2400_v29, %v2372_v28 }
 0x408   : >> { %v2319_v30 = vpop.f32.mrf.mxu1 }
 0x409   : >> { %v5250_v8 = vpop.f32.mrf.mxu2 }
 0x40b   : >> { %v2284_v61 = vpop.f32.mrf.mxu0  ;;  %v2374_v60 = vpop.f32.mrf.mxu3 }
 0x40c   : >> { %v2285_v21 = vadd.f32 %v2284_v61, %v2237_v54 }
 0x40e   : >> { %v2314_v34 = vadd.f32 %v2313_v63, %v2285_v21  ;;  %v2375_v63 = vadd.f32 %v2374_v60, %v2242_v31 }
 0x410   : >> { %v2343_v37 = vadd.f32 %v2342_v40, %v2314_v34  ;;  %v2322_v41 = vpop.f32.mrf.mxu1 }
 0x412   : >> { %v2528_v58 = vmax.f32 %v2343_v37, 0.0 }
 0x413   : >> { %v2377_v62 = vpop.f32.mrf.mxu3 }
 0x414   : >> { %v5253_v52 = vmul.f32 %v2528_v58, %v4484_v44   ;;  %v2287_v25 = vpop.f32.mrf.mxu0 }
 0x415   : >> { %v2288_v36 = vadd.f32 %v2287_v25, %v2242_v31  ;;  %v5255_v3 = vpop.f32.mrf.mxu2 }
 0x416   : >> { %v5983_v11 = vmov %v5253_v52 }
 0x417   : >> { %v2317_v2 = vadd.f32 %v2316_v24, %v2288_v36 }
 0x418   : >> { %v2458_v51 = vpop.f32.mrf.mxu1 }
 0x419   : >> { %v2346_v48 = vadd.f32 %v2345_v15, %v2317_v2  ;;  %v2459_v52 = vadd.f32 %v2458_v51, %v2237_v54 }
 0x41b   : >> { %v2531_v10 = vmax.f32 %v2346_v48, 0.0 }
 0x41c   : >> { %v2290_v43 = vpop.f32.mrf.mxu0  ;;  %v2380_v57 = vpop.f32.mrf.mxu3 }
 0x41d   : >> { %v5258_v25 = vmul.f32 %v2531_v10, %v4484_v44   ;;  %v2291_v16 = vadd.f32 %v2290_v43, %v2247_v45  ;;  %v2516_v6 = vpop.f32.mrf.mxu2 }
 0x41f   : >> { %v5984_v12 = vmov %v5258_v25  ;;  %v2320_v4 = vadd.f32 %v2319_v30, %v2291_v16  ;;  %v2378_v25 = vadd.f32 %v2377_v62, %v2247_v45 }
 0x420   : >> { %v2461_v1 = vpop.f32.mrf.mxu1 }
 0x421   : >> { %v2349_v20 = vadd.f32 %v2348_v35, %v2320_v4  ;;  %v2462_v23 = vadd.f32 %v2461_v1, %v2242_v31  ;;  %v2407_v16 = vadd.f32 %v5250_v8, %v2378_v25  ;;  %v6003_v25 = vmov %v5984_v12 }
 0x423   : >> { %v2534_v33 = vmax.f32 %v2349_v20, 0.0 }
 0x424   : >> { %v2293_v9 = vpop.f32.mrf.mxu0  ;;  %v2487_v38 = vpop.f32.mrf.mxu3 }
 0x425   : >> { %v5261_v42 = vmul.f32 %v2534_v33, %v4484_v44   ;;  %v2294_v56 = vadd.f32 %v2293_v9, %v2252_v22  ;;  %v2488_v0 = vadd.f32 %v2487_v38, %v2459_v52  ;;  %v2519_v17 = vpop.f32.mrf.mxu2  ;;  %v2381_v33 = vadd.f32 %v2380_v57, %v2252_v22 }
 0x427   : >> { %v2323_v50 = vadd.f32 %v2322_v41, %v2294_v56  ;;  %v2517_v47 = vadd.f32 %v2516_v6, %v2488_v0 }
 0x428   : >> { %v2464_v35 = vpop.f32.mrf.mxu1 }
 0x429   : >> { %v2352_v14 = vadd.f32 %v2351_v46, %v2323_v50  ;;  %v2530_v18 = vmax.f32 %v2517_v47, 0.0  ;;  %v2465_v61 = vadd.f32 %v2464_v35, %v2247_v45 }
 0x42b   : >> { %v2537_v13 = vmax.f32 %v2352_v14, 0.0  ;;  %v5264_v30 = vmul.f32 %v2530_v18, %v4494_v7  }
 0x42c   : >> { %v2429_v55 = vpop.f32.mrf.mxu0  ;;  %v2490_v59 = vpop.f32.mrf.mxu3 }
 0x42d   : >> { %v5985_v32 = vmov %v5264_v30  ;;  %v5267_v2 = vmul.f32 %v2537_v13, %v4484_v44   ;;  %v2430_v40 = vadd.f32 %v2429_v55, %v2401_v39  ;;  %v2491_v15 = vadd.f32 %v2490_v59, %v2462_v23  ;;  %v2522_v21 = vpop.f32.mrf.mxu2 }
 0x42e   : >> { %v2404_v30 = vadd.f32 %v2403_v19, %v2375_v63  ;;  %2790 = vst [vmem:[#allocation2 + $0x178] sm:$0xff] (%p5293_p4), %v5985_v32 }
 0x42f   : >> { %v5986_v49 = vmov %v5267_v2  ;;  %v2529_v24 = vmax.f32 %v2430_v40, 0.0  ;;  %v2520_v53 = vadd.f32 %v2519_v17, %v2491_v15 }
 0x430   : >> { %v2467_v60 = vpop.f32.mrf.mxu1  ;;  %2566 = vrot.lane.b32.xlu0 (%p5293_p4), %v5986_v49, %s3954_s24 }
 0x431   : >> { %v5270_v36 = vmul.f32 %v2529_v24, %v4479_v26   ;;  %v2533_v54 = vmax.f32 %v2520_v53, 0.0  ;;  %v2468_v43 = vadd.f32 %v2467_v60, %v2252_v22 }
 0x433   : >> { %v5987_v46 = vmov %v5270_v36  ;;  %v5273_v50 = vmul.f32 %v2533_v54, %v4494_v7  }
 0x434   : >> { %v2432_v34 = vpop.f32.mrf.mxu0  ;;  %v2493_v37 = vpop.f32.mrf.mxu3 }
 0x435   : >> { %v5988_v29 = vmov %v5273_v50  ;;  %v2433_v41 = vadd.f32 %v2432_v34, %v2404_v30  ;;  %v2494_v58 = vadd.f32 %v2493_v37, %v2465_v61  ;;  %v2525_v6 = vpop.f32.mrf.mxu2  ;;  %v6004_v30 = vmov %v5985_v32 }
 0x436   : >> { %v6001_v50 = vmov %v5988_v29  ;;  %2793 = vst [vmem:[#allocation2 + $0x208] sm:$0xff] (%p5293_p4), %v5988_v29 }
 0x437   : >> { %v2532_v2 = vmax.f32 %v2433_v41, 0.0  ;;  %v2523_v48 = vadd.f32 %v2522_v21, %v2494_v58 }
 0x439   : >> { %v5276_v62 = vmul.f32 %v2532_v2, %v4479_v26   ;;  %v2536_v31 = vmax.f32 %v2523_v48, 0.0  ;;  %v5997_v2 = vmov %v5986_v49 }
 0x43b   : >> { %v5989_v51 = vmov %v5276_v62  ;;  %v5279_v36 = vmul.f32 %v2536_v31, %v4494_v7   ;;  %v2410_v62 = vadd.f32 %v5255_v3, %v2381_v33  ;;  %v6000_v3 = vmov %v5261_v42 }
 0x43c   : >> { %v2435_v19 = vpop.f32.mrf.mxu0  ;;  %v2496_v4 = vpop.f32.mrf.mxu3 }
 0x43d   : >> { %v5990_v10 = vmov %v5279_v36  ;;  %v2436_v20 = vadd.f32 %v2435_v19, %v2407_v16  ;;  %v2497_v52 = vadd.f32 %v2496_v4, %v2468_v43  ;;  %v6005_v36 = vmov %v5987_v46 }
 0x43e   : >> { %v5998_v57 = vmov %v5990_v10  ;;  %2796 = vst [vmem:[#allocation2 + $0x270] sm:$0xff] (%p5293_p4), %v5990_v10 }
 0x43f   : >> { %v2535_v45 = vmax.f32 %v2436_v20, 0.0  ;;  %v2526_v1 = vadd.f32 %v2525_v6, %v2497_v52  ;;  %v6006_v52 = vmov %v5983_v11 }
 0x441   : >> { %v5283_v31 = vmul.f32 %v2535_v45, %v4479_v26   ;;  %v2539_v38 = vmax.f32 %v2526_v1, 0.0 }
 0x443   : >> { %v5991_v9 = vmov %v5283_v31  ;;  %v5286_v16 = vmul.f32 %v2539_v38, %v4494_v7  }
 0x444   : >> { %v2438_v0 = vpop.f32.mrf.mxu0  ;;  %v5999_v31 = vmov %v5991_v9  ;;  %2572 = vrot.lane.b32.xlu2 (%p5293_p4), %v5991_v9, %s3954_s24 }
 0x445   : >> { %v5992_v56 = vmov %v5286_v16  ;;  %v2439_v28 = vadd.f32 %v2438_v0, %v2410_v62  ;;  %v6002_v62 = vmov %v5989_v51 }
 0x446   : >> { %v5995_v16 = vmov %v5992_v56  ;;  %2582 = vrot.lane.b32.xlu1 (%p5293_p4), %v5992_v56, %s3954_s24  ;;  %2799 = vst [vmem:[#allocation2] sm:$0xff] (%p5293_p4), %v5992_v56 }
 0x447   : >> { %v2538_v8 = vmax.f32 %v2439_v28, 0.0 }
 0x448   : > { %1695 = sbr.rel (!%p5293_p4) target bundleno = 507 (0x1fb), region = 116 }
 0x449   : >> { %v5290_v41 = vmul.f32 %v2538_v8, %v4479_v26  }
 0x44b   : >> { %v5993_v47 = vmov %v5290_v41 }
 0x44c   : >> { %v5996_v41 = vmov %v5993_v47  ;;  %2574 = vrot.lane.b32.xlu0 (%p5293_p4), %v5993_v47, %s3954_s24  ;;  %2580 = vrot.lane.b32.xlu2 (%p5293_p4), %v5990_v10, %s3954_s24 }
 0x44e   : > { %2564 = vrot.lane.b32.xlu1 %v5261_v42, %s3954_s24 }
 0x454   : > { %2602 = vrot.lane.b32.xlu0 %v5986_v49, %s3959_s29  ;;  %2618 = vrot.lane.b32.xlu2 %v5992_v56, %s3959_s29 }
 0x456   : > { %2610 = vrot.lane.b32.xlu1 %v5993_v47, %s3959_s29 }
 0x45c   : > { %2562 = vrot.lane.b32.xlu0 %v5984_v12, %s3954_s24  ;;  %2578 = vrot.lane.b32.xlu2 %v5988_v29, %s3954_s24 }
 0x45e   : > { %2570 = vrot.lane.b32.xlu1 %v5989_v51, %s3954_s24 }
 0x464   : > { %2600 = vrot.lane.b32.xlu0 %v5261_v42, %s3959_s29  ;;  %2616 = vrot.lane.b32.xlu2 %v5990_v10, %s3959_s29 }
 0x466   : > { %2608 = vrot.lane.b32.xlu1 %v5991_v9, %s3959_s29 }
 0x46c   : > { %2560 = vrot.lane.b32.xlu0 %v5983_v11, %s3954_s24  ;;  %2576 = vrot.lane.b32.xlu2 %v5985_v32, %s3954_s24 }
 0x46e   : > { %2568 = vrot.lane.b32.xlu1 %v5987_v46, %s3954_s24 }
 0x474   : > { %2598 = vrot.lane.b32.xlu0 %v5984_v12, %s3959_s29  ;;  %2614 = vrot.lane.b32.xlu2 %v5988_v29, %s3959_s29 }
 0x476   : > { %2606 = vrot.lane.b32.xlu1 %v5989_v51, %s3959_s29 }
 0x47c   : > { %2596 = vrot.lane.b32.xlu0 %v5983_v11, %s3959_s29  ;;  %2612 = vrot.lane.b32.xlu2 %v5985_v32, %s3959_s29 }
 0x47e   : > { %2604 = vrot.lane.b32.xlu1 %v5987_v46, %s3959_s29 }
 0x484   : > { %2746 = vrot.lane.b32.xlu0 %v5986_v49, %s3956_s26  ;;  %2744 = vrot.lane.b32.xlu2 %v5261_v42, %s3956_s26 }
 0x486   : > { %2754 = vrot.lane.b32.xlu1 %v5993_v47, %s3956_s26 }
 0x48c   : > { %2752 = vrot.lane.b32.xlu0 %v5991_v9, %s3956_s26  ;;  %2742 = vrot.lane.b32.xlu2 %v5984_v12, %s3956_s26 }
 0x48e   : > { %2762 = vrot.lane.b32.xlu1 %v5992_v56, %s3956_s26 }
 0x494   : > { %2750 = vrot.lane.b32.xlu0 %v5989_v51, %s3956_s26  ;;  %2740 = vrot.lane.b32.xlu2 %v5983_v11, %s3956_s26 }
 0x496   : > { %2760 = vrot.lane.b32.xlu1 %v5990_v10, %s3956_s26 }
 0x49c   : > { %2748 = vrot.lane.b32.xlu0 %v5987_v46, %s3956_s26 }
 0x49e   : > { %2758 = vrot.lane.b32.xlu1 %v5988_v29, %s3956_s26  ;;  %v2573_v5 = vpop.permute.xlu2 %2572 }
 0x4a2   : > { %v2567_v3 = vpop.permute.xlu0 %2566 }
 0x4a6   : > { %2756 = vrot.lane.b32.xlu1 %v5985_v32, %s3956_s26  ;;  %v2581_v26 = vpop.permute.xlu2 %2580 }
 0x4a7   : > { %v5418_v44 = vsel %vm405_vm0, %v2573_v5, %v2581_v26 }
 0x4a8   : > { %2688 = vst [vmem:[#allocation2 + $0x2d0] sm:$0xff] %v5418_v44 }
 0x4ae   : > { %2712 = vrot.lane.b32.xlu1 %v5418_v44, %s3957_s27  ;;  %v2619_v18 = vpop.permute.xlu2 %2618 }
 0x4b6   : > { %v2579_v35 = vpop.permute.xlu2 %2578 }
 0x4b8   : > { %v2583_v7 = vpop.permute.xlu1 %2582 }
 0x4b9   : > { %v5425_v57 = vsel %vm405_vm0, %v2583_v7, %v2567_v3 }
 0x4be   : > { %v2575_v50 = vpop.permute.xlu0 %2574  ;;  %v2617_v21 = vpop.permute.xlu2 %2616 }
 0x4bf   : > { %v5429_v17 = vsel %vm405_vm0, %v2567_v3, %v2575_v50  ;;  %v5433_v14 = vsel %vm405_vm0, %v2575_v50, %v2583_v7 }
 0x4c0   : > { %v2565_v22 = vpop.permute.xlu1 %2564  ;;  %2706 = vrot.lane.b32.xlu2 %v5429_v17, %s3957_s27  ;;  %2714 = vrot.lane.b32.xlu0 %v5433_v14, %s3957_s27  ;;  %2691 = vst [vmem:[#allocation2 + $0x110] sm:$0xff] %v5433_v14 }
 0x4c1   : > { %v5437_v23 = vsel %vm405_vm0, %v2565_v22, %v2573_v5  ;;  %v5445_v13 = vsel %vm405_vm0, %v2581_v26, %v2565_v22 }
 0x4c6   : > { %v2603_v55 = vpop.permute.xlu0 %2602  ;;  %v2577_v25 = vpop.permute.xlu2 %2576 }
 0x4c7   : > { %v5456_v15 = vsel %vm1351_vm8, %v2619_v18, %v2603_v55 }
 0x4c8   : > { %v2611_v39 = vpop.permute.xlu1 %2610  ;;  %2698 = vrot.lane.b32.xlu2 %v5425_v57, %s3957_s27  ;;  %2704 = vrot.lane.b32.xlu0 %v5437_v23, %s3957_s27 }
 0x4c9   : > { %v2627_v59 = vsel %vm1351_vm8, %v2603_v55, %v2611_v39  ;;  %v5452_v40 = vsel %vm1351_vm8, %v2611_v39, %v2619_v18 }
 0x4ca   : > { %2914 = vrot.lane.b32.xlu1 %v2627_v59, %s3957_s27  ;;  %3104 = vmatpush.msra.mxu1 %v2627_v59 }
 0x4ce   : > { %v2563_v24 = vpop.permute.xlu0 %2562  ;;  %v2615_v43 = vpop.permute.xlu2 %2614 }
 0x4cf   : > { %v5473_v61 = vsel %vm405_vm0, %v2579_v35, %v2563_v24 }
 0x4d0   : > { %v2571_v63 = vpop.permute.xlu1 %2570  ;;  %2862 = vrot.lane.b32.xlu0 %v5452_v40, %s3956_s26  ;;  %2854 = vrot.lane.b32.xlu2 %v2627_v59, %s3956_s26 }
 0x4d1   : > { %v5465_v53 = vsel %vm405_vm0, %v2563_v24, %v2571_v63  ;;  %v5469_v54 = vsel %vm405_vm0, %v2571_v63, %v2579_v35 }
 0x4d2   : > { %2702 = vrot.lane.b32.xlu1 %v5465_v53, %s3957_s27  ;;  %2685 = vst [vmem:[#allocation2 + $0x188] sm:$0xff] %v5469_v54 }
 0x4d6   : > { %v2601_v34 = vpop.permute.xlu0 %2600  ;;  %v2613_v52 = vpop.permute.xlu2 %2612 }
 0x4d7   : > { %v5489_v58 = vsel %vm1351_vm8, %v2617_v21, %v2601_v34 }
 0x4d8   : > { %v2609_v30 = vpop.permute.xlu1 %2608  ;;  %2696 = vrot.lane.b32.xlu0 %v5445_v13, %s3957_s27  ;;  %2922 = vrot.lane.b32.xlu2 %v5452_v40, %s3957_s27 }
 0x4d9   : > { %v5483_v37 = vsel %vm1351_vm8, %v2609_v30, %v2617_v21  ;;  %v2626_v41 = vsel %vm1351_vm8, %v2601_v34, %v2609_v30  ;;  %v2973_v27 = vld [vmem:[#allocation2 + $0x188] sm:$0xff] }
 0x4da   : > { %2860 = vrot.lane.b32.xlu1 %v5483_v37, %s3956_s26  ;;  %3105 = vmatpush.msra.mxu1 %v2626_v41 }
 0x4de   : > { %v2561_v48 = vpop.permute.xlu0 %2560  ;;  %v2745_v5 = vpop.permute.xlu2 %2744 }
 0x4df   : > { %v5507_v36 = vsel %vm405_vm0, %v2577_v25, %v2561_v48 }
 0x4e0   : > { %v2569_v2 = vpop.permute.xlu1 %2568  ;;  %2710 = vrot.lane.b32.xlu2 %v5469_v54, %s3957_s27  ;;  %2852 = vrot.lane.b32.xlu0 %v2626_v41, %s3956_s26 }
 0x4e1   : > { %v5499_v60 = vsel %vm405_vm0, %v2569_v2, %v2577_v25  ;;  %v5503_v31 = vsel %vm405_vm0, %v2561_v48, %v2569_v2 }
 0x4e2   : > { %2682 = vst [vmem:[#allocation2 + $0x318] sm:$0xff] %v5499_v60  ;;  %2920 = vrot.lane.b32.xlu1 %v5483_v37, %s3957_s27 }
 0x4e6   : > { %v2599_v6 = vpop.permute.xlu0 %2598  ;;  %v2743_v18 = vpop.permute.xlu2 %2742 }
 0x4e7   : > { %v5523_v20 = vsel %vm1351_vm8, %v2615_v43, %v2599_v6 }
 0x4e8   : > { %v2607_v16 = vpop.permute.xlu1 %2606  ;;  %2870 = vrot.lane.b32.xlu2 %v5456_v15, %s3956_s26  ;;  %2912 = vrot.lane.b32.xlu0 %v2626_v41, %s3957_s27 }
 0x4e9   : > { %v5517_v19 = vsel %vm1351_vm8, %v2607_v16, %v2615_v43  ;;  %v2625_v4 = vsel %vm1351_vm8, %v2599_v6, %v2607_v16 }
 0x4ea   : > { %2708 = vrot.lane.b32.xlu1 %v5499_v60, %s3957_s27  ;;  %3106 = vmatpush.msra.mxu1 %v2625_v4 }
 0x4ee   : > { %v2597_v45 = vpop.permute.xlu0 %2596  ;;  %v2741_v24 = vpop.permute.xlu2 %2740 }
 0x4ef   : > { %v5538_v62 = vsel %vm1351_vm8, %v2613_v52, %v2597_v45 }
 0x4f0   : > { %v2605_v33 = vpop.permute.xlu1 %2604  ;;  %2694 = vrot.lane.b32.xlu2 %v5473_v61, %s3957_s27  ;;  %2700 = vrot.lane.b32.xlu0 %v5503_v31, %s3957_s27 }
 0x4f1   : > { %v5532_v1 = vsel %vm1351_vm8, %v2605_v33, %v2613_v52  ;;  %v2624_v38 = vsel %vm1351_vm8, %v2597_v45, %v2605_v33 }
 0x4f2   : > { %2868 = vrot.lane.b32.xlu1 %v5489_v58, %s3956_s26  ;;  %3107 = vmatpush.msra.mxu1 %v2624_v38 }
 0x4f6   : > { %v2747_v28 = vpop.permute.xlu0 %2746 }
 0x4f8   : > { %v2755_v0 = vpop.permute.xlu1 %2754  ;;  %2858 = vrot.lane.b32.xlu0 %v5517_v19, %s3956_s26  ;;  %2850 = vrot.lane.b32.xlu2 %v2625_v4, %s3956_s26 }
 0x4f9   : > { %v2771_v8 = vsel %vm791_vm5, %v2747_v28, %v2755_v0 }
 0x4fa   : > { %2692 = vrot.lane.b32.xlu1 %v5507_v36, %s3957_s27  ;;  %3150 = vmatpush.msra.mxu3 %v2771_v8 }
 0x4fe   : > { %v2753_v7 = vpop.permute.xlu0 %2752 }
 0x4ff   : > { %v2770_v50 = vsel %vm791_vm5, %v2745_v5, %v2753_v7 }
 0x500   : > { %v2763_v26 = vpop.permute.xlu1 %2762  ;;  %2918 = vrot.lane.b32.xlu0 %v5517_v19, %s3957_s27  ;;  %2910 = vrot.lane.b32.xlu2 %v2625_v4, %s3957_s27 }
 0x501   : > { %v5555_v3 = vsel %vm791_vm5, %v2755_v0, %v2763_v26  ;;  %v2775_v22 = vsel %vm791_vm5, %v2763_v26, %v2747_v28  ;;  %3151 = vmatpush.msra.mxu3 %v2770_v50 }
 0x502   : > { %2866 = vrot.lane.b32.xlu1 %v5523_v20, %s3956_s26  ;;  %3081 = vmatpush.msra.mxu0 %v2775_v22 }
 0x506   : > { %v2751_v55 = vpop.permute.xlu0 %2750 }
 0x507   : > { %v2769_v63 = vsel %vm791_vm5, %v2743_v18, %v2751_v55 }
 0x508   : > { %v2761_v39 = vpop.permute.xlu1 %2760  ;;  %2856 = vrot.lane.b32.xlu0 %v5532_v1, %s3956_s26  ;;  %2848 = vrot.lane.b32.xlu2 %v2624_v38, %s3956_s26 }
 0x509   : > { %v2774_v59 = vsel %vm791_vm5, %v2761_v39, %v2745_v5  ;;  %v5570_v35 = vsel %vm791_vm5, %v2753_v7, %v2761_v39  ;;  %3152 = vmatpush.msra.mxu3 %v2769_v63 }
 0x50a   : > { %2814 = vrot.lane.b32.xlu1 %v5993_v47, %s3957_s27  ;;  %3082 = vmatpush.msra.mxu0 %v2774_v59 }
 0x50e   : > { %v2749_v30 = vpop.permute.xlu0 %2748 }
 0x50f   : > { %v2768_v25 = vsel %vm791_vm5, %v2741_v24, %v2749_v30 }
 0x510   : > { %v2759_v21 = vpop.permute.xlu1 %2758  ;;  %2916 = vrot.lane.b32.xlu0 %v5532_v1, %s3957_s27  ;;  %2908 = vrot.lane.b32.xlu2 %v2624_v38, %s3957_s27 }
 0x511   : > { %v2773_v34 = vsel %vm791_vm5, %v2759_v21, %v2743_v18  ;;  %v5583_v41 = vsel %vm791_vm5, %v2751_v55, %v2759_v21  ;;  %3153 = vmatpush.msra.mxu3 %v2768_v25 }
 0x512   : > { %2806 = vrot.lane.b32.xlu1 %v5986_v49, %s3957_s27  ;;  %3083 = vmatpush.msra.mxu0 %v2773_v34 }
 0x518   : > { %v2757_v2 = vpop.permute.xlu1 %2756  ;;  %2864 = vrot.lane.b32.xlu0 %v5538_v62, %s3956_s26  ;;  %2822 = vrot.lane.b32.xlu2 %v5992_v56, %s3957_s27 }
 0x519   : > { %v2772_v48 = vsel %vm791_vm5, %v2757_v2, %v2741_v24  ;;  %v5596_v43 = vsel %vm791_vm5, %v2749_v30, %v2757_v2 }
 0x51a   : > { %2804 = vrot.lane.b32.xlu1 %v5261_v42, %s3957_s27  ;;  %3084 = vmatpush.msra.mxu0 %v2772_v48  ;;  %v2707_v16 = vpop.permute.xlu2 %2706 }
 0x520   : > { %2820 = vrot.lane.b32.xlu0 %v5990_v10, %s3957_s27  ;;  %2812 = vrot.lane.b32.xlu2 %v5991_v9, %s3957_s27  ;;  %v2713_v38 = vpop.permute.xlu1 %2712 }
 0x522   : > { %2638 = vrot.lane.b32.xlu1 %v5425_v57, %s3956_s26  ;;  %v2699_v6 = vpop.permute.xlu2 %2698 }
 0x523   : > { %v2723_v4 = vsel %vm1063_vm6, %v2699_v6, %v2707_v16 }
 0x524   : > { %3085 = vmatpush.msra.mxu0 %v2723_v4 }
 0x528   : > { %2818 = vrot.lane.b32.xlu0 %v5988_v29, %s3957_s27  ;;  %2810 = vrot.lane.b32.xlu2 %v5989_v51, %s3957_s27 }
 0x52a   : > { %2808 = vrot.lane.b32.xlu1 %v5987_v46, %s3957_s27  ;;  %v2855_v52 = vpop.permute.xlu2 %2854 }
 0x530   : > { %2802 = vrot.lane.b32.xlu0 %v5984_v12, %s3957_s27  ;;  %2646 = vrot.lane.b32.xlu2 %v5429_v17, %s3956_s26 }
 0x532   : > { %2644 = vrot.lane.b32.xlu1 %v5437_v23, %s3956_s26  ;;  %v5624_v33 = vpop.permute.xlu2 %2922  ;;  %v2715_v45 = vpop.permute.xlu0 %2714 }
 0x533   : > { %v2719_v0 = vsel %vm1063_vm6, %v2707_v16, %v2715_v45  ;;  %v5630_v28 = vsel %vm1063_vm6, %v2715_v45, %v2699_v6 }
 0x534   : > { %3154 = vmatpush.msra.mxu3 %v2719_v0 }
 0x538   : > { %2636 = vrot.lane.b32.xlu0 %v5445_v13, %s3956_s26  ;;  %2816 = vrot.lane.b32.xlu2 %v5985_v32, %s3957_s27 }
 0x53a   : > { %2634 = vrot.lane.b32.xlu1 %v5473_v61, %s3956_s26  ;;  %v2711_v8 = vpop.permute.xlu2 %2710  ;;  %v2705_v5 = vpop.permute.xlu0 %2704 }
 0x53b   : > { %v2718_v7 = vsel %vm1063_vm6, %v2705_v5, %v2713_v38 }
 0x53c   : > { %v5638_v26 = vpop.permute.xlu1 %2914  ;;  %3155 = vmatpush.msra.mxu3 %v2718_v7 }
 0x53d   : > { %v2939_v22 = vsel %vm1063_vm6, %v5638_v26, %v5624_v33 }
 0x53e   : > { %3139 = vmatpush.msra.mxu2 %v2939_v22 }
 0x540   : > { %2800 = vrot.lane.b32.xlu0 %v5983_v11, %s3957_s27  ;;  %2654 = vrot.lane.b32.xlu2 %v5433_v14, %s3956_s26 }
 0x542   : > { %2632 = vrot.lane.b32.xlu1 %v5507_v36, %s3956_s26  ;;  %v2871_v50 = vpop.permute.xlu2 %2870  ;;  %v2863_v18 = vpop.permute.xlu0 %2862 }
 0x543   : > { %v2883_v39 = vsel %vm791_vm5, %v2871_v50, %v2855_v52  ;;  %v5656_v59 = vsel %vm791_vm5, %v2855_v52, %v2863_v18  ;;  %v5662_v24 = vsel %vm791_vm5, %v2863_v18, %v2871_v50 }
 0x544   : > { %v2703_v55 = vpop.permute.xlu1 %2702  ;;  %3108 = vmatpush.msra.mxu1 %v2883_v39 }
 0x545   : > { %v2717_v63 = vsel %vm1063_vm6, %v2703_v55, %v2711_v8 }
 0x546   : > { %3156 = vmatpush.msra.mxu3 %v2717_v63 }
 0x548   : > { %2652 = vrot.lane.b32.xlu0 %v5418_v44, %s3956_s26  ;;  %2642 = vrot.lane.b32.xlu2 %v5465_v53, %s3956_s26 }
 0x54a   : > { %2648 = vrot.lane.b32.xlu1 %v5499_v60, %s3956_s26  ;;  %v2695_v14 = vpop.permute.xlu2 %2694  ;;  %v2697_v21 = vpop.permute.xlu0 %2696 }
 0x54b   : > { %v2721_v30 = vsel %vm1063_vm6, %v2695_v14, %v2703_v55  ;;  %v5674_v34 = vsel %vm1063_vm6, %v2711_v8, %v2695_v14  ;;  %v2722_v2 = vsel %vm1063_vm6, %v2697_v21, %v2705_v5  ;;  %v5680_v44 = vsel %vm1063_vm6, %v2713_v38, %v2697_v21 }
 0x54c   : > { %v2861_v25 = vpop.permute.xlu1 %2860  ;;  %3086 = vmatpush.msra.mxu0 %v2722_v2 }
 0x54e   : > { %3087 = vmatpush.msra.mxu0 %v2721_v30 }
 0x550   : > { %2650 = vrot.lane.b32.xlu0 %v5469_v54, %s3956_s26  ;;  %2640 = vrot.lane.b32.xlu2 %v5503_v31, %s3956_s26 }
 0x552   : > { %2926 = vrot.lane.b32.xlu1 %v5523_v20, %s3957_s27  ;;  %v2851_v60 = vpop.permute.xlu2 %2850  ;;  %v2853_v48 = vpop.permute.xlu0 %2852 }
 0x553   : > { %v5692_v6 = vsel %vm791_vm5, %v2853_v48, %v2861_v25 }
 0x554   : > { %v5688_v16 = vpop.permute.xlu1 %2920 }
 0x558   : > { %2928 = vrot.lane.b32.xlu0 %v5489_v58, %s3957_s27  ;;  %2930 = vrot.lane.b32.xlu2 %v5456_v15, %s3957_s27 }
 0x55a   : > { %v5698_v54 = vpop.permute.xlu2 %2910  ;;  %v5700_v4 = vpop.permute.xlu0 %2912 }
 0x55b   : > { %v2938_v45 = vsel %vm1063_vm6, %v5700_v4, %v5688_v16 }
 0x55c   : > { %v2709_v52 = vpop.permute.xlu1 %2708  ;;  %3140 = vmatpush.msra.mxu2 %v2938_v45 }
 0x560   : > { %2924 = vrot.lane.b32.xlu2 %v5538_v62, %s3957_s27 }
 0x562   : > { %v2849_v38 = vpop.permute.xlu2 %2848  ;;  %v2701_v0 = vpop.permute.xlu0 %2700 }
 0x563   : > { %v2716_v5 = vsel %vm1063_vm6, %v2701_v0, %v2709_v52 }
 0x564   : > { %v2869_v8 = vpop.permute.xlu1 %2868  ;;  %3157 = vmatpush.msra.mxu3 %v2716_v5 }
 0x565   : > { %v5712_v7 = vsel %vm791_vm5, %v2861_v25, %v2869_v8  ;;  %v2882_v22 = vsel %vm791_vm5, %v2869_v8, %v2853_v48 }
 0x566   : > { %3109 = vmatpush.msra.mxu1 %v2882_v22  ;;  %3158 = vmatpush.msra.mxu3 %v5429_v17 }
 0x568   : > { %3159 = vmatpush.msra.mxu3 %v5437_v23 }
 0x56a   : > { %v5718_v50 = vpop.permute.xlu2 %2908  ;;  %v2859_v18 = vpop.permute.xlu0 %2858  ;;  %3160 = vmatpush.msra.mxu3 %v5465_v53 }
 0x56b   : > { %v2877_v55 = vsel %vm791_vm5, %v2851_v60, %v2859_v18 }
 0x56c   : > { %v2693_v39 = vpop.permute.xlu1 %2692  ;;  %3161 = vmatpush.msra.mxu3 %v5503_v31 }
 0x56d   : > { %v2720_v63 = vsel %vm1063_vm6, %v2693_v39, %v2701_v0  ;;  %v5727_v14 = vsel %vm1063_vm6, %v2709_v52, %v2693_v39 }
 0x56e   : > { %3088 = vmatpush.msra.mxu0 %v2720_v63 }
 0x570   : > { %3089 = vmatpush.msra.mxu0 %v5425_v57 }
 0x572   : > { %3090 = vmatpush.msra.mxu0 %v5445_v13  ;;  %v2823_v17 = vpop.permute.xlu2 %2822  ;;  %v5732_v23 = vpop.permute.xlu0 %2918 }
 0x573   : > { %v2937_v21 = vsel %vm1063_vm6, %v5698_v54, %v5732_v23 }
 0x574   : > { %v2867_v53 = vpop.permute.xlu1 %2866  ;;  %3091 = vmatpush.msra.mxu0 %v5473_v61  ;;  %3141 = vmatpush.msra.mxu2 %v2937_v21 }
 0x575   : > { %v5741_v30 = vsel %vm791_vm5, %v2859_v18, %v2867_v53  ;;  %v2881_v57 = vsel %vm791_vm5, %v2867_v53, %v2851_v60 }
 0x576   : > { %3092 = vmatpush.msra.mxu0 %v5507_v36  ;;  %3110 = vmatpush.msra.mxu1 %v2881_v57 }
 0x57a   : > { %v2813_v13 = vpop.permute.xlu2 %2812  ;;  %v2857_v31 = vpop.permute.xlu0 %2856 }
 0x57b   : > { %v2876_v2 = vsel %vm791_vm5, %v2849_v38, %v2857_v31 }
 0x57c   : > { %v2815_v25 = vpop.permute.xlu1 %2814 }
 0x57d   : > { %v2827_v61 = vsel %vm1063_vm6, %v2815_v25, %v2823_v17 }
 0x582   : > { %v2811_v48 = vpop.permute.xlu2 %2810  ;;  %v5750_v52 = vpop.permute.xlu0 %2916 }
 0x583   : > { %v2936_v60 = vsel %vm1063_vm6, %v5718_v50, %v5750_v52 }
 0x584   : > { %v2807_v45 = vpop.permute.xlu1 %2806  ;;  %3142 = vmatpush.msra.mxu2 %v2936_v60 }
 0x585   : > { %v2831_v36 = vsel %vm1063_vm6, %v2807_v45, %v2815_v25  ;;  %v5760_v0 = vsel %vm1063_vm6, %v2823_v17, %v2807_v45 }
 0x586   : > { %3173 = vmatpush.msrb.mxu2 %v5452_v40 }
 0x588   : > { %3174 = vmatpush.msrb.mxu2 %v5483_v37 }
 0x58a   : > { %3175 = vmatpush.msrb.mxu2 %v5517_v19  ;;  %v2647_v8 = vpop.permute.xlu2 %2646  ;;  %v2865_v5 = vpop.permute.xlu0 %2864 }
 0x58b   : > { %v5767_v18 = vsel %vm791_vm5, %v2857_v31, %v2865_v5  ;;  %v2880_v39 = vsel %vm791_vm5, %v2865_v5, %v2849_v38 }
 0x58c   : > { %v2805_v22 = vpop.permute.xlu1 %2804  ;;  %3176 = vmatpush.msrb.mxu2 %v5532_v1  ;;  %3111 = vmatpush.msra.mxu1 %v2880_v39  ;;  %v2558_v39 = vld [vmem:[%s5979_s7] sm:$0xff] }
 0x58d   : > { %v2830_v63 = vsel %vm1063_vm6, %v2805_v22, %v2813_v13  ;;  %3066 = vperm.xlu1 %3839, %v2558_v39  }
 0x58e   : > { %3177 = vmatpush.msrb.mxu2 %v5656_v59  ;;  %3112 = vmatpush.msra.mxu1 %v2831_v36  ;;  %v5787_v59 = vld [vmem:[%s5978_s6 + $0x10] sm:$0xff] }
 0x58f   : > { %3684 = vmatmul.msk.f32.vlgmr.msra.gmra.mxu2 %vm2254_vm10, %v5787_v59 }
 0x590   : > { %3178 = vmatpush.msrb.mxu2 %v5692_v6  ;;  %3113 = vmatpush.msra.mxu1 %v2830_v63 }
 0x592   : > { %3179 = vmatpush.msrb.mxu2 %v2877_v55  ;;  %v2817_v40 = vpop.permute.xlu2 %2816  ;;  %v2821_v37 = vpop.permute.xlu0 %2820 }
 0x593   : > { %v2826_v17 = vsel %vm1063_vm6, %v2813_v13, %v2821_v37  ;;  %v5780_v1 = vsel %vm1063_vm6, %v2821_v37, %v2805_v22 }
 0x594   : > { %v2639_v19 = vpop.permute.xlu1 %2638  ;;  %3180 = vmatpush.msrb.mxu2 %v2876_v2 }
 0x595   : > { %v2663_v38 = vsel %vm791_vm5, %v2639_v19, %v2647_v8 }
 0x596   : > { %3162 = vmatpush.msra.mxu3 %v2663_v38  ;;  %3181 = vmatpush.msrb.mxu2 %v2827_v61 }
 0x598   : > { %3182 = vmatpush.msrb.mxu2 %v2826_v17 }
 0x59a   : > { %v2655_v6 = vpop.permute.xlu2 %2654  ;;  %v2819_v55 = vpop.permute.xlu0 %2818 }
 0x59b   : > { %v5793_v21 = vsel %vm791_vm5, %v2647_v8, %v2655_v6  ;;  %v2667_v57 = vsel %vm791_vm5, %v2655_v6, %v2639_v19  ;;  %v2825_v13 = vsel %vm1063_vm6, %v2811_v48, %v2819_v55  ;;  %v5847_v6 = vld [vmem:[%s5978_s6] sm:$0xff] }
 0x59c   : > { %v2809_v53 = vpop.permute.xlu1 %2808  ;;  %3093 = vmatpush.msra.mxu0 %v2667_v57  ;;  %3183 = vmatpush.msrb.mxu2 %v2825_v13 }
 0x59d   : > { %v2824_v31 = vsel %vm1063_vm6, %v2809_v53, %v2817_v40 }
 0x59e   : > { %3184 = vmatpush.msrb.mxu2 %v2824_v31 }
 0x5a0   : > { %3185 = vmatpush.msrb.mxu2 %v5993_v47  ;;  %v5816_v47 = vld [vmem:[%s5978_s6 + $0x28] sm:$0xff] }
 0x5a1   : > { %3685 = vmatmul.msk.f32.gmra.mxu2 %vm2254_vm10, %v5816_v47 }
 0x5a2   : > { %v5802_v25 = vpop.permute.xlu2 %2642  ;;  %v2803_v2 = vpop.permute.xlu0 %2802  ;;  %3186 = vmatpush.msrb.mxu2 %v5991_v9 }
 0x5a3   : > { %v2829_v45 = vsel %vm1063_vm6, %v2803_v2, %v2811_v48  ;;  %v5809_v60 = vsel %vm1063_vm6, %v2819_v55, %v2803_v2 }
 0x5a4   : > { %v2645_v61 = vpop.permute.xlu1 %2644  ;;  %3114 = vmatpush.msra.mxu1 %v2829_v45  ;;  %3187 = vmatpush.msrb.mxu2 %v5989_v51 }
 0x5a6   : > { %3188 = vmatpush.msrb.mxu2 %v5987_v46  ;;  %v5828_v46 = vld [vmem:[%s5978_s6 + $0x8] sm:$0xff] }
 0x5a9   : > { %3189 = vmatmul.f32.vlgmr.msrb.gmra.mxu2 %v5828_v46 }
 0x5aa   : > { %v2641_v9 = vpop.permute.xlu2 %2640  ;;  %v2637_v36 = vpop.permute.xlu0 %2636 }
 0x5ab   : > { %v2662_v8 = vsel %vm791_vm5, %v2637_v36, %v2645_v61 }
 0x5ac   : > { %v2635_v48 = vpop.permute.xlu1 %2634  ;;  %3163 = vmatpush.msra.mxu3 %v2662_v8 }
 0x5ad   : > { %v2661_v51 = vsel %vm791_vm5, %v2635_v48, %v5802_v25 }
 0x5ae   : > { %3164 = vmatpush.msra.mxu3 %v2661_v51 }
 0x5b2   : > { %v2931_v5 = vpop.permute.xlu2 %2930  ;;  %v2801_v22 = vpop.permute.xlu0 %2800 }
 0x5b3   : > { %v2935_v37 = vsel %vm1063_vm6, %v5624_v33, %v2931_v5  ;;  %v2943_v19 = vsel %vm1063_vm6, %v2931_v5, %v5638_v26  ;;  %v2828_v17 = vsel %vm1063_vm6, %v2801_v22, %v2809_v53  ;;  %v5852_v33 = vld [vmem:[%s5978_s6 + $0x20] sm:$0xff]  ;;  %v2832_v26 = vsel %vm1063_vm6, %v2817_v40, %v2801_v22 }
 0x5b4   : > { %v2633_v63 = vpop.permute.xlu1 %2632  ;;  %3115 = vmatpush.msra.mxu1 %v2828_v17  ;;  %3277 = vmatpush.msra.mxu2 %v2943_v19 }
 0x5b5   : > { %v2660_v38 = vsel %vm791_vm5, %v2633_v63, %v2641_v9  ;;  %3192 = vmatmul.f32.gmra.mxu2 %v5852_v33 }
 0x5b6   : > { %3165 = vmatpush.msra.mxu3 %v2660_v38  ;;  %3116 = vmatpush.msra.mxu1 %v5986_v49 }
 0x5b7   : > { %3166 = vmatmul.f32.vlgmr.msra.gmra.mxu3 %v5847_v6 }
 0x5b8   : > { %3242 = vmatpush.msrb.mxu3 %v5456_v15  ;;  %3117 = vmatpush.msra.mxu1 %v5261_v42  ;;  %v2559_v15 = vld [vmem:[%s5979_s7 + $0x8] sm:$0xff] }
 0x5b9   : > { %3071 = vperm.xlu0 %3838, %v2559_v15  }
 0x5ba   : > { %3243 = vmatpush.msrb.mxu3 %v5489_v58  ;;  %v2925_v55 = vpop.permute.xlu2 %2924  ;;  %v2653_v53 = vpop.permute.xlu0 %2652  ;;  %3118 = vmatpush.msra.mxu1 %v5984_v12 }
 0x5bb   : > { %v2932_v49 = vsel %vm1063_vm6, %v5750_v52, %v2925_v55  ;;  %v2666_v58 = vsel %vm791_vm5, %v2653_v53, %v2637_v36  ;;  %v5885_v52 = vld [vmem:[%s5978_s6 + $0x18] sm:$0xff]  ;;  %v2658_v57 = vsel %vm791_vm5, %v2645_v61, %v2653_v53  ;;  %v3296_v36 = vld [vmem:[%s5981_s9] sm:$0xff] }
 0x5bc   : > { %3244 = vmatpush.msrb.mxu3 %v5523_v20  ;;  %v2649_v40 = vpop.permute.xlu1 %2648  ;;  %v2940_v20 = vsel %vm1063_vm6, %v2925_v55, %v5718_v50  ;;  %3094 = vmatpush.msra.mxu0 %v2666_v58 }
 0x5bd   : > { %v5874_v42 = vsel %vm791_vm5, %v2641_v9, %v2649_v40  ;;  %v2664_v12 = vsel %vm791_vm5, %v2649_v40, %v2633_v63  ;;  %3119 = vmatpush.msra.mxu1 %v5983_v11  ;;  %v3294_v9 = vld [vmem:[%s5980_s8] sm:$0xff]  ;;  %3300 = vperm.xlu2 %3840, %v3296_v36  }
 0x5be   : > { %3245 = vmatpush.msrb.mxu3 %v5538_v62  ;;  %3120 = vmatmul.f32.vlgmr.msra.gmra.mxu1 %v5828_v46 }
 0x5bf   : > { %3219 = vmatpush.msrb.mxu1 %v5555_v3  ;;  %3169 = vmatmul.f32.gmra.mxu3 %v5885_v52 }
 0x5c0   : > { %3246 = vmatpush.msrb.mxu3 %v5662_v24 }
 0x5c1   : > { %3220 = vmatpush.msrb.mxu1 %v5570_v35 }
 0x5c2   : > { %3247 = vmatpush.msrb.mxu3 %v5712_v7  ;;  %v2651_v62 = vpop.permute.xlu0 %2650 }
 0x5c3   : > { %3221 = vmatpush.msrb.mxu1 %v5583_v41  ;;  %v2665_v50 = vsel %vm791_vm5, %v2651_v62, %v2635_v48  ;;  %v2657_v35 = vsel %vm791_vm5, %v5802_v25, %v2651_v62  ;;  %v3297_v41 = vld [vmem:[%s5981_s9 + $0x8] sm:$0xff] }
 0x5c4   : > { %3248 = vmatpush.msrb.mxu3 %v5741_v30  ;;  %v2927_v11 = vpop.permute.xlu1 %2926  ;;  %3095 = vmatpush.msra.mxu0 %v2665_v50 }
 0x5c5   : > { %v2933_v3 = vsel %vm1063_vm6, %v5732_v23, %v2927_v11  ;;  %v2941_v24 = vsel %vm1063_vm6, %v2927_v11, %v5698_v54  ;;  %3222 = vmatpush.msrb.mxu1 %v5596_v43  ;;  %3305 = vperm.xlu1 %3839, %v3297_v41  }
 0x5c6   : > { %3249 = vmatpush.msrb.mxu3 %v5767_v18  ;;  %3096 = vmatpush.msra.mxu0 %v2664_v12 }
 0x5c7   : > { %3223 = vmatpush.msrb.mxu1 %v5630_v28  ;;  %3097 = vmatmul.f32.vlgmr.msra.gmra.mxu0 %v5847_v6 }
 0x5c8   : > { %3250 = vmatpush.msrb.mxu3 %v5760_v0  ;;  %3123 = vmatmul.f32.gmra.mxu1 %v5852_v33 }
 0x5c9   : > { %3224 = vmatpush.msrb.mxu1 %v5680_v44  ;;  %3208 = vmatpush.msrb.mxu0 %v2935_v37  ;;  %v2979_v44 = vld [vmem:[#allocation2 + $0x110] sm:$0xff] }
 0x5ca   : > { %3251 = vmatpush.msrb.mxu3 %v5780_v1  ;;  %v2929_v43 = vpop.permute.xlu0 %2928 }
 0x5cb   : > { %3225 = vmatpush.msrb.mxu1 %v5674_v34  ;;  %v2934_v28 = vsel %vm1063_vm6, %v5688_v16, %v2929_v43  ;;  %v2942_v54 = vsel %vm1063_vm6, %v2929_v43, %v5700_v4  ;;  %v2976_v34 = vld [vmem:[#allocation2 + $0x2d0] sm:$0xff]  ;;  %v2970_v16 = vld [vmem:[#allocation2 + $0x318] sm:$0xff] }
 0x5cc   : > { %3252 = vmatpush.msrb.mxu3 %v5809_v60  ;;  %3209 = vmatpush.msrb.mxu0 %v2934_v28 }
 0x5cd   : > { %3226 = vmatpush.msrb.mxu1 %v5727_v14  ;;  %3278 = vmatpush.msra.mxu2 %v2942_v54 }
 0x5ce   : > { %3253 = vmatpush.msrb.mxu3 %v2832_v26  ;;  %3210 = vmatpush.msrb.mxu0 %v2933_v3 }
 0x5cf   : > { %3227 = vmatpush.msrb.mxu1 %v2979_v44  ;;  %3279 = vmatpush.msra.mxu2 %v2941_v24 }
 0x5d0   : > { %3254 = vmatpush.msrb.mxu3 %v5992_v56  ;;  %3100 = vmatmul.f32.gmra.mxu0 %v5885_v52 }
 0x5d1   : > { %3228 = vmatpush.msrb.mxu1 %v2976_v34  ;;  %3211 = vmatpush.msrb.mxu0 %v2932_v49 }
 0x5d2   : > { %3280 = vmatpush.msra.mxu2 %v2940_v20  ;;  %3255 = vmatpush.msrb.mxu3 %v5990_v10 }
 0x5d3   : > { %3229 = vmatpush.msrb.mxu1 %v2973_v27  ;;  %3688 = vmatmul.msk.f32.vlgmr.msra.gmra.mxu2 %vm2254_vm10, %v5787_v59 }
 0x5d4   : > { %3256 = vmatpush.msrb.mxu3 %v5988_v29 }
 0x5d5   : > { %3230 = vmatpush.msrb.mxu1 %v2970_v16 }
 0x5d6   : > { %3257 = vmatpush.msrb.mxu3 %v5985_v32 }
 0x5d7   : > { %3231 = vmatpush.msrb.mxu1 %v5793_v21  ;;  %3258 = vmatmul.f32.vlgmr.msrb.gmra.mxu3 %v5828_v46 }
 0x5d8   : > { %3686 = vmatmul.msk.f32.vlgmr.msrb.gmra.mxu0 %vm2254_vm10, %v5787_v59 }
 0x5d9   : > { %3232 = vmatpush.msrb.mxu1 %v2658_v57 }
 0x5db   : > { %3233 = vmatpush.msrb.mxu1 %v2657_v35  ;;  %3689 = vmatmul.msk.f32.gmra.mxu2 %vm2254_vm10, %v5816_v47 }
 0x5dd   : > { %3234 = vmatpush.msrb.mxu1 %v5874_v42 }
 0x5de   : > { %3235 = vmatmul.f32.vlgmr.msrb.gmra.mxu1 %v5847_v6 }
 0x5df   : > { %3261 = vmatmul.f32.gmra.mxu3 %v5852_v33 }
 0x5e0   : > { %3687 = vmatmul.msk.f32.gmra.mxu0 %vm2254_vm10, %v5816_v47  ;;  %v3295_v47 = vld [vmem:[%s5980_s8 + $0x8] sm:$0xff] }
 0x5e6   : > { %3238 = vmatmul.f32.gmra.mxu1 %v5885_v52 }
 0x5ff   : > { %v3067_v14 = vpop.permute.xlu1 %3066 }
 0x612   : > { %v3144_v32 = vpop.f32.mrf.mxu2 }
 0x617   : > { %v3301_v20 = vpop.permute.xlu2 %3300 }
 0x624   : > { %v3147_v29 = vpop.f32.mrf.mxu2 }
 0x62b   : > { %v3072_v30 = vpop.permute.xlu0 %3071 }
 0x62c   : > { %v3190_v4 = vpop.f32.mrf.mxu2 }
 0x637   : > { %v3306_v52 = vpop.permute.xlu1 %3305 }
 0x638   : > { %v3193_v21 = vpop.f32.mrf.mxu2 }
 0x63a   : > { %v3167_v7 = vpop.f32.mrf.mxu3 }
 0x63b   : > { %v3121_v10 = vpop.f32.mrf.mxu1  ;;  %v3168_v48 = vadd.f32 %v3167_v7, %v3067_v14 }
 0x63d   : > { %v3191_v22 = vadd.f32 %v3190_v4, %v3168_v48 }
 0x642   : > { %v3170_v31 = vpop.f32.mrf.mxu3 }
 0x643   : > { %v3171_v8 = vadd.f32 %v3170_v31, %v3072_v30 }
 0x644   : > { %v3098_v56 = vpop.f32.mrf.mxu0 }
 0x645   : > { %v3099_v23 = vadd.f32 %v3098_v56, %v3067_v14  ;;  %v3124_v18 = vpop.f32.mrf.mxu1  ;;  %v3194_v39 = vadd.f32 %v3193_v21, %v3171_v8 }
 0x647   : > { %v3122_v1 = vadd.f32 %v3121_v10, %v3099_v23 }
 0x649   : > { %v3145_v25 = vadd.f32 %v3144_v32, %v3122_v1 }
 0x64b   : > { %v3288_v60 = vmax.f32 %v3145_v25, 0.0 }
 0x64d   : > { %v3101_v0 = vpop.f32.mrf.mxu0 }
 0x64e   : > { %v3102_v59 = vadd.f32 %v3101_v0, %v3072_v30 }
 0x650   : > { %v3125_v13 = vadd.f32 %v3124_v18, %v3102_v59 }
 0x652   : > { %v3148_v2 = vadd.f32 %v3147_v29, %v3125_v13 }
 0x654   : > { %v3291_v61 = vmax.f32 %v3148_v2, 0.0 }
 0x655   : > { %v3213_v45 = vpop.f32.mrf.mxu0 }
 0x656   : > { %3329 = vmatpush.msra.mxu0 %v3291_v61  ;;  %3702 = vmatpush.msra.mxu1 %v3291_v61  ;;  %v3282_v51 = vpop.f32.mrf.mxu2  ;;  %v3214_v37 = vadd.f32 %v3213_v45, %v3191_v22 }
 0x658   : > { %3330 = vmatpush.msra.mxu0 %v3288_v60  ;;  %3703 = vmatpush.msra.mxu1 %v3288_v60  ;;  %v3289_v6 = vmax.f32 %v3214_v37, 0.0 }
 0x659   : > { %3691 = vmatmul.msk.f32.vlgmr.msra.gmra.mxu1 %vm3308_vm11, %v3295_v47  ;;  %3690 = vmatmul.msk.f32.vlgmr.msra.gmra.mxu0 %vm3308_vm11, %v3294_v9 }
 0x65a   : > { %v3259_v5 = vpop.f32.mrf.mxu3 }
 0x65b   : > { %v3236_v46 = vpop.f32.mrf.mxu1 }
 0x65c   : > { %v3237_v17 = vadd.f32 %v3236_v46, %v3067_v14 }
 0x65d   : > { %v3216_v63 = vpop.f32.mrf.mxu0 }
 0x65e   : > { %v3217_v19 = vadd.f32 %v3216_v63, %v3194_v39  ;;  %v3260_v55 = vadd.f32 %v3259_v5, %v3237_v17  ;;  %v3285_v15 = vpop.f32.mrf.mxu2 }
 0x660   : > { %v3292_v38 = vmax.f32 %v3217_v19, 0.0  ;;  %v3283_v49 = vadd.f32 %v3282_v51, %v3260_v55 }
 0x662   : > { %3352 = vmatpush.msrb.mxu2 %v3292_v38  ;;  %v3262_v26 = vpop.f32.mrf.mxu3  ;;  %v3290_v12 = vmax.f32 %v3283_v49, 0.0 }
 0x663   : > { %v3239_v33 = vpop.f32.mrf.mxu1 }
 0x664   : > { %v3240_v53 = vadd.f32 %v3239_v33, %v3072_v30  ;;  %3353 = vmatpush.msrb.mxu2 %v3289_v6 }
 0x665   : > { %3692 = vmatmul.msk.f32.vlgmr.msrb.gmra.mxu2 %vm3308_vm11, %v3294_v9 }
 0x666   : > { %v3263_v40 = vadd.f32 %v3262_v26, %v3240_v53 }
 0x668   : > { %v3286_v58 = vadd.f32 %v3285_v15, %v3263_v40 }
 0x66a   : > { %v3293_v42 = vmax.f32 %v3286_v58, 0.0 }
 0x66c   : > { %3375 = vmatpush.msrb.mxu0 %v3293_v42 }
 0x66d   : > { %3693 = vmatmul.msk.f32.gmra.mxu2 %vm3308_vm11, %v3295_v47 }
 0x66e   : > { %3376 = vmatpush.msrb.mxu0 %v3290_v12 }
 0x66f   : > { %3694 = vmatmul.msk.f32.vlgmr.msrb.gmra.mxu0 %vm3308_vm11, %v3294_v9 }
 0x677   : > { %3695 = vmatmul.msk.f32.gmra.mxu0 %vm3308_vm11, %v3295_v47 }
 0x6d6   : > { %v3335_v57 = vpop.f32.mrf.mxu1  ;;  %v3332_v62 = vpop.f32.mrf.mxu0 }
 0x6d7   : > { %v3336_v11 = vadd.f32 %v3335_v57, %v3306_v52  ;;  %v3333_v50 = vadd.f32 %v3332_v62, %v3301_v20 }
 0x6d9   : > { %v3387_v3 = vmax.f32 %v3336_v11, 0.0  ;;  %v3384_v24 = vmax.f32 %v3333_v50, 0.0 }
 0x6db   : > { %3393 = vst [vmem:[%s4036_s22 + $0x18] sm:$0xff] %v3387_v3 }
 0x6dc   : > { %3390 = vst [vmem:[%s4036_s22] sm:$0xff] %v3384_v24 }
 0x6e8   : > { %v3355_v35 = vpop.f32.mrf.mxu2 }
 0x6e9   : > { %v3356_v41 = vadd.f32 %v3355_v35, %v3301_v20 }
 0x6eb   : > { %v3385_v28 = vmax.f32 %v3356_v41, 0.0 }
 0x6ec   : > { %v3378_v43 = vpop.f32.mrf.mxu0 }
 0x6ed   : > { %v3379_v54 = vadd.f32 %v3378_v43, %v3301_v20  ;;  %3391 = vst [vmem:[%s4036_s22 + $0x8] sm:$0xff] %v3385_v28 }
 0x6ef   : > { %v3386_v44 = vmax.f32 %v3379_v54, 0.0 }
 0x6f0   : > { %v3358_v34 = vpop.f32.mrf.mxu2 }
 0x6f1   : > { %3392 = vst [vmem:[%s4036_s22 + $0x10] sm:$0xff] %v3386_v44  ;;  %v3359_v27 = vadd.f32 %v3358_v34, %v3306_v52 }
 0x6f3   : > { %v3388_v16 = vmax.f32 %v3359_v27, 0.0 }
 0x6f4   : > { %v3381_v32 = vpop.f32.mrf.mxu0 }
 0x6f5   : > { %v3382_v29 = vadd.f32 %v3381_v32, %v3306_v52  ;;  %3394 = vst [vmem:[%s4036_s22 + $0x20] sm:$0xff] %v3388_v16 }
 0x6f7   : > { %v3389_v10 = vmax.f32 %v3382_v29, 0.0 }
 0x6f9   : > { %3395 = vst [vmem:[%s4036_s22 + $0x28] sm:$0xff] %v3389_v10 }
 0x6fa PF: > { %s20_s13 = sadd.s32 1, %s3899_s13  }
 0x6fb   : > { %p17_p5 = scmp.ge.s32.totalorder %s20_s13, 4  }
 0x6fd   :  { %19 = sbr.rel (!%p17_p5) target bundleno = 1 (0x1), region = 127 }

</bundles_post_ra>
